<compile_context>
chip_gen: v6e
topology: v6e:2x2x1
jax: 0.10.0
libtpu: 0.0.40
codegen_flags: <defaults>
</compile_context>

<pallas_src>
import jax
import jax.numpy as jnp
from jax.experimental import pallas as pl
from jax.experimental.pallas import tpu as pltpu

EPS = 1e-5

MATMUL_PRECISION = jax.lax.Precision.HIGHEST  # exact-f32 parity with reference
EXACT = jax.lax.Precision.HIGHEST             # tiny 0/1 selector dots stay exact


def double_conv_kernel(xpad_ref, m1_ref, g1_ref, b1_ref, s1_ref, t1_ref,
                       m2_ref, g2_ref, b2_ref, s2_ref, t2_ref,
                       o_ref, h1pad_ref):
    # xpad_ref  : (N, H+2, W*Cin)      H-padded lane-dense input rows (wrapper)
    # m1_ref    : (3*W*Cin,  W*Cmid)   banded conv1 matrix, dx padding baked in
    # m2_ref    : (3*W*Cmid, W*Cout)   banded conv2 matrix, dx padding baked in
    # g*/b*_ref : (1, C)               BN affine params
    # s*_ref    : (W*C, C)             per-channel stats selector  (lane -> ch)
    # t*_ref    : (C, W*C)             per-channel broadcast selector (ch -> lane)
    # o_ref     : (N*H, W*Cout)        lane-dense output slab
    # h1pad_ref : (N, H+2, W*Cmid)     VMEM scratch: conv1 output + H halo rows
    N = xpad_ref.shape[0]
    H = xpad_ref.shape[1] - 2
    Cmid = g1_ref.shape[-1]
    Cout = g2_ref.shape[-1]
    W = o_ref.shape[-1] // Cout
    NH = N * H
    inv_nhw = 1.0 / float(NH * W)

    def conv_bn_relu(pad_ref, m_ref, g_ref, b_ref, s_ref, t_ref):
        wci = pad_ref.shape[-1]                       # W * C_in of this stage
        # --- 3x3 conv as ONE matmul: im2col over dy only, K = 3*W*C_in ---
        bands = jnp.concatenate(
            [pad_ref[:, dy:dy + H, :].reshape(NH, wci) for dy in range(3)],
            axis=-1)                                  # (NH, 3*W*C_in)
        acc = jnp.dot(bands, m_ref[...],
                      preferred_element_type=jnp.float32,
                      precision=MATMUL_PRECISION)     # (NH, W*C_out)

        # --- BatchNorm (training-mode batch stats, biased var) + ReLU ---
        # One fused (2, W*C) @ (W*C, C) dot reduces sum and sum-of-squares
        # to per-channel values; one fused (2, C) @ (C, W*C) dot broadcasts
        # the folded scale/shift back to the lane-interleaved layout.
        stats = jnp.concatenate(
            [jnp.sum(acc, axis=0, keepdims=True),
             jnp.sum(acc * acc, axis=0, keepdims=True)], axis=0)  # (2, W*C)
        ch = jnp.dot(stats, s_ref[...], preferred_element_type=jnp.float32,
                     precision=EXACT) * inv_nhw                   # (2, C)
        mean, ex2 = ch[0:1], ch[1:2]
        var = ex2 - mean * mean                       # biased batch variance
        alpha = g_ref[...] * jax.lax.rsqrt(var + EPS)  # gamma folded into scale
        beta = b_ref[...] - mean * alpha               # beta/mean folded shift
        ab = jnp.concatenate([alpha, beta], axis=0)    # (2, C)
        ab_l = jnp.dot(ab, t_ref[...], preferred_element_type=jnp.float32,
                       precision=EXACT)                # (2, W*C)
        return jnp.maximum(acc * ab_l[0:1] + ab_l[1:2], 0.0)

    # conv1 -> BN -> ReLU: written ONCE, full lane width, directly into the
    # H-padded stage-2 scratch interior; only the two halo rows are zeroed.
    wcm = W * Cmid
    h1 = conv_bn_relu(xpad_ref, m1_ref, g1_ref, b1_ref, s1_ref, t1_ref)
    h1pad_ref[:, 0:1, :] = jnp.zeros((N, 1, wcm), jnp.float32)
    h1pad_ref[:, H + 1:H + 2, :] = jnp.zeros((N, 1, wcm), jnp.float32)
    h1pad_ref[:, 1:H + 1, :] = h1.reshape(N, H, wcm)

    # conv2 -> BN -> ReLU: written directly into the output slab.
    h2 = conv_bn_relu(h1pad_ref, m2_ref, g2_ref, b2_ref, s2_ref, t2_ref)
    o_ref[...] = h2.astype(o_ref.dtype)


def _conv_matrix(w, W):
    """PyTorch OIHW 3x3 weights -> banded matmul matrix with dx padding baked in.

    Returns M of shape (3*W*Cin, W*Cout) such that, with rows laid out
    lane-dense as row[p*Cin + ci] (p in [0, W), no W padding) and H-padded by
    one zero row top/bottom,
        out[n, co, h, wo] = concat_dy(rows[n, h+dy-1, :]) @ M[:, wo*Cout + co]
    equals Conv2d(kernel=3, padding=1, bias=False).
    """
    Cout, Cin = w.shape[0], w.shape[1]
    w_t = jnp.transpose(w, (2, 3, 1, 0))                     # (dy, dx, ci, co)
    p = jnp.arange(W)[:, None]                               # input column
    wo = jnp.arange(W)[None, :]                               # output column
    dx = p - wo + 1                                           # (W, W)
    valid = ((dx >= 0) & (dx < 3)).astype(w.dtype)
    dx_c = jnp.clip(dx, 0, 2)
    m = w_t[:, dx_c, :, :] * valid[None, :, :, None, None]   # (3, W, W, Ci, Co)
    m = jnp.transpose(m, (0, 1, 3, 2, 4))                    # (3, W, Ci, W, Co)
    return m.reshape(3 * W * Cin, W * Cout)


def _channel_selectors(c, W):
    """0/1 selectors for the lane-interleaved (w*c + ch) layout.

    S (W*c, c): column ch sums every lane whose channel == ch (stats reduce).
    T (c, W*c): row ch broadcasts a per-channel value to its lanes.
    """
    lane_ch = jnp.arange(W * c) % c
    S = (lane_ch[:, None] == jnp.arange(c)[None, :]).astype(jnp.float32)
    return S, S.T


def double_conv(x_nchw, w1, g1, b1, w2, g2, b2):
    """x_nchw: (N, Cin, H, W); w1: (Cmid, Cin, 3, 3); w2: (Cout, Cmid, 3, 3)."""
    N, Cin, H, W = x_nchw.shape
    Cmid, Cout = w1.shape[0], w2.shape[0]

    # Lane-dense rows (channel-minor within a row), H-padded here: the XLA pad
    # fuses, so the DMA delivers data exactly where the kernel consumes it.
    x_rows = jnp.transpose(x_nchw, (0, 2, 3, 1)).reshape(N, H, W * Cin)
    xpad = jnp.pad(x_rows.astype(jnp.float32), ((0, 0), (1, 1), (0, 0)))

    m1 = _conv_matrix(w1.astype(jnp.float32), W)          # (3*W*Cin,  W*Cmid)
    m2 = _conv_matrix(w2.astype(jnp.float32), W)          # (3*W*Cmid, W*Cout)
    s1, t1 = _channel_selectors(Cmid, W)
    s2, t2 = _channel_selectors(Cout, W)

    args = (xpad, m1,
            g1.reshape(1, Cmid).astype(jnp.float32),
            b1.reshape(1, Cmid).astype(jnp.float32),
            s1, t1, m2,
            g2.reshape(1, Cout).astype(jnp.float32),
            b2.reshape(1, Cout).astype(jnp.float32),
            s2, t2)

    flops = 2 * N * H * ((3 * W * Cin) * (W * Cmid) + (3 * W * Cmid) * (W * Cout))
    bytes_accessed = (sum(a.size * a.dtype.itemsize for a in args)
                      + N * H * W * Cout * x_nchw.dtype.itemsize)

    out_slab = pl.pallas_call(
        double_conv_kernel,
        out_shape=jax.ShapeDtypeStruct((N * H, W * Cout), x_nchw.dtype),
        in_specs=[pl.BlockSpec(memory_space=pltpu.MemorySpace.VMEM)] * len(args),
        out_specs=pl.BlockSpec(memory_space=pltpu.MemorySpace.VMEM),
        scratch_shapes=[pltpu.VMEM((N, H + 2, W * Cmid), jnp.float32)],
        compiler_params=pltpu.CompilerParams(
            vmem_limit_bytes=16 * 1024 * 1024),
        cost_estimate=pl.CostEstimate(flops=flops,
                                      transcendentals=Cmid + Cout,
                                      bytes_accessed=bytes_accessed),
    )(*args)

    # (N*H, W*Cout) -> (N, H, W, Cout) (free reshape) -> NCHW (one transpose).
    return jnp.transpose(out_slab.reshape(N, H, W, Cout), (0, 3, 1, 2))


def double_conv_ref(x, w1, g1, b1, w2, g2, b2):
    """Pure-JAX reference with identical (PyTorch training-mode) semantics."""
    def conv(x, w):
        return jax.lax.conv_general_dilated(
            x, w, (1, 1), ((1, 1), (1, 1)),
            dimension_numbers=("NCHW", "OIHW", "NCHW"),
            precision=jax.lax.Precision.HIGHEST)

    def bn_relu(y, g, b):
        mean = jnp.mean(y, axis=(0, 2, 3), keepdims=True)
        var = jnp.mean((y - mean) ** 2, axis=(0, 2, 3), keepdims=True)
        y = (y - mean) * jax.lax.rsqrt(var + EPS)
        y = y * g.reshape(1, -1, 1, 1) + b.reshape(1, -1, 1, 1)
        return jnp.maximum(y, 0.0)

    y = bn_relu(conv(x, w1), g1, b1)
    return bn_relu(conv(y, w2), g2, b2)


if __name__ == "__main__":
    # DoubleConv(in_channels=4, out_channels=8)  ->  mid_channels = 8
    N, Cin, H, W = 2, 4, 16, 16
    Cmid, Cout = 8, 8

    key = jax.random.PRNGKey(0)
    kx, k1, k2, kg1, kb1, kg2, kb2 = jax.random.split(key, 7)

    x = jax.random.normal(kx, (N, Cin, H, W), jnp.float32)
    w1 = 0.2 * jax.random.normal(k1, (Cmid, Cin, 3, 3), jnp.float32)
    w2 = 0.2 * jax.random.normal(k2, (Cout, Cmid, 3, 3), jnp.float32)
    g1 = 1.0 + 0.1 * jax.random.normal(kg1, (Cmid,), jnp.float32)
    b1 = 0.1 * jax.random.normal(kb1, (Cmid,), jnp.float32)
    g2 = 1.0 + 0.1 * jax.random.normal(kg2, (Cout,), jnp.float32)
    b2 = 0.1 * jax.random.normal(kb2, (Cout,), jnp.float32)

    out = jax.block_until_ready(jax.jit(double_conv)(x, w1, g1, b1, w2, g2, b2))
    ref = jax.block_until_ready(double_conv_ref(x, w1, g1, b1, w2, g2, b2))

    assert out.shape == (N, Cout, H, W), out.shape
    max_err = float(jnp.max(jnp.abs(out - ref)))
    assert jnp.allclose(out, ref, atol=1e-3, rtol=1e-3), max_err

    print("KERNEL_OK")
</pallas_src>

<mosaic_0001>
module attributes {stable_mosaic.version = 11 : i64} {
  func.func @double_conv_kernel(%arg0: memref<2x18x64xf32, #tpu.memory_space<vmem>>, %arg1: memref<192x128xf32, #tpu.memory_space<vmem>>, %arg2: memref<1x8xf32, #tpu.memory_space<vmem>>, %arg3: memref<1x8xf32, #tpu.memory_space<vmem>>, %arg4: memref<128x8xf32, #tpu.memory_space<vmem>>, %arg5: memref<8x128xf32, #tpu.memory_space<vmem>>, %arg6: memref<384x128xf32, #tpu.memory_space<vmem>>, %arg7: memref<1x8xf32, #tpu.memory_space<vmem>>, %arg8: memref<1x8xf32, #tpu.memory_space<vmem>>, %arg9: memref<128x8xf32, #tpu.memory_space<vmem>>, %arg10: memref<8x128xf32, #tpu.memory_space<vmem>>, %arg11: memref<32x128xf32, #tpu.memory_space<vmem>>, %arg12: memref<2x18x128xf32, #tpu.memory_space<vmem>>) attributes {dimension_semantics = [], scalar_prefetch = 0 : i64, scratch_operands = 1 : i64, tpu.core_type = #tpu.core_type<tc>} {
    %c0 = arith.constant 0 : index
    %c0_0 = arith.constant 0 : index
    %c0_1 = arith.constant 0 : index
    %0 = vector.load %arg0[%c0, %c0_0, %c0_1] : memref<2x18x64xf32, #tpu.memory_space<vmem>>, vector<2x16x64xf32>
    %1 = vector.shape_cast %0 : vector<2x16x64xf32> to vector<32x64xf32>
    %c0_2 = arith.constant 0 : index
    %c1 = arith.constant 1 : index
    %c0_3 = arith.constant 0 : index
    %2 = vector.load %arg0[%c0_2, %c1, %c0_3] : memref<2x18x64xf32, #tpu.memory_space<vmem>>, vector<2x16x64xf32>
    %3 = vector.shape_cast %2 : vector<2x16x64xf32> to vector<32x64xf32>
    %c0_4 = arith.constant 0 : index
    %c2 = arith.constant 2 : index
    %c0_5 = arith.constant 0 : index
    %4 = vector.load %arg0[%c0_4, %c2, %c0_5] : memref<2x18x64xf32, #tpu.memory_space<vmem>>, vector<2x16x64xf32>
    %5 = vector.shape_cast %4 : vector<2x16x64xf32> to vector<32x64xf32>
    %6 = tpu.concatenate %1, %3, %5 in 1 : vector<32x64xf32>, vector<32x64xf32>, vector<32x64xf32> -> vector<32x192xf32>
    %c0_6 = arith.constant 0 : index
    %c0_7 = arith.constant 0 : index
    %7 = vector.load %arg1[%c0_6, %c0_7] : memref<192x128xf32, #tpu.memory_space<vmem>>, vector<192x128xf32>
    %cst = arith.constant dense<0.000000e+00> : vector<32x128xf32>
    %8 = tpu.matmul %6, %7, %cst {dimension_numbers = #tpu.dot_dimension_numbers<[1], [0], [0], [1], [0, 0, 1, 1], [], []>, precision = #tpu.contract_precision<fp32>} : vector<32x192xf32>, vector<192x128xf32>, vector<32x128xf32> -> vector<32x128xf32>
    %cst_8 = arith.constant dense<0.000000e+00> : vector<128xf32>
    %9 = vector.multi_reduction <add>, %8, %cst_8 [0] : vector<32x128xf32> to vector<128xf32>
    %10 = vector.shape_cast %9 : vector<128xf32> to vector<1x128xf32>
    %11 = arith.mulf %8, %8 : vector<32x128xf32>
    %cst_9 = arith.constant dense<0.000000e+00> : vector<128xf32>
    %12 = vector.multi_reduction <add>, %11, %cst_9 [0] : vector<32x128xf32> to vector<128xf32>
    %13 = vector.shape_cast %12 : vector<128xf32> to vector<1x128xf32>
    %14 = tpu.concatenate %10, %13 in 0 : vector<1x128xf32>, vector<1x128xf32> -> vector<2x128xf32>
    %c0_10 = arith.constant 0 : index
    %c0_11 = arith.constant 0 : index
    %15 = vector.load %arg4[%c0_10, %c0_11] : memref<128x8xf32, #tpu.memory_space<vmem>>, vector<128x8xf32>
    %cst_12 = arith.constant dense<0.000000e+00> : vector<2x8xf32>
    %16 = tpu.matmul %14, %15, %cst_12 {dimension_numbers = #tpu.dot_dimension_numbers<[1], [0], [0], [1], [0, 0, 1, 1], [], []>, precision = #tpu.contract_precision<fp32>} : vector<2x128xf32>, vector<128x8xf32>, vector<2x8xf32> -> vector<2x8xf32>
    %cst_13 = arith.constant 0.001953125 : f32
    %17 = vector.broadcast %cst_13 : f32 to vector<2x8xf32>
    %18 = arith.mulf %16, %17 : vector<2x8xf32>
    %19 = vector.extract_strided_slice %18 {offsets = [0, 0], sizes = [1, 8], strides = [1, 1]} : vector<2x8xf32> to vector<1x8xf32>
    %20 = vector.extract_strided_slice %18 {offsets = [1, 0], sizes = [1, 8], strides = [1, 1]} : vector<2x8xf32> to vector<1x8xf32>
    %21 = arith.mulf %19, %19 : vector<1x8xf32>
    %22 = arith.subf %20, %21 : vector<1x8xf32>
    %c0_14 = arith.constant 0 : index
    %c0_15 = arith.constant 0 : index
    %23 = vector.load %arg2[%c0_14, %c0_15] : memref<1x8xf32, #tpu.memory_space<vmem>>, vector<1x8xf32>
    %cst_16 = arith.constant 9.99999974E-6 : f32
    %24 = vector.broadcast %cst_16 : f32 to vector<1x8xf32>
    %25 = arith.addf %22, %24 : vector<1x8xf32>
    %26 = math.rsqrt %25 : vector<1x8xf32>
    %27 = arith.mulf %23, %26 : vector<1x8xf32>
    %c0_17 = arith.constant 0 : index
    %c0_18 = arith.constant 0 : index
    %28 = vector.load %arg3[%c0_17, %c0_18] : memref<1x8xf32, #tpu.memory_space<vmem>>, vector<1x8xf32>
    %29 = arith.mulf %19, %27 : vector<1x8xf32>
    %30 = arith.subf %28, %29 : vector<1x8xf32>
    %31 = tpu.concatenate %27, %30 in 0 : vector<1x8xf32>, vector<1x8xf32> -> vector<2x8xf32>
    %c0_19 = arith.constant 0 : index
    %c0_20 = arith.constant 0 : index
    %32 = vector.load %arg5[%c0_19, %c0_20] : memref<8x128xf32, #tpu.memory_space<vmem>>, vector<8x128xf32>
    %cst_21 = arith.constant dense<0.000000e+00> : vector<2x128xf32>
    %33 = tpu.matmul %31, %32, %cst_21 {dimension_numbers = #tpu.dot_dimension_numbers<[1], [0], [0], [1], [0, 0, 1, 1], [], []>, precision = #tpu.contract_precision<fp32>} : vector<2x8xf32>, vector<8x128xf32>, vector<2x128xf32> -> vector<2x128xf32>
    %34 = vector.extract_strided_slice %33 {offsets = [0, 0], sizes = [1, 128], strides = [1, 1]} : vector<2x128xf32> to vector<1x128xf32>
    %35 = vector.broadcast %34 : vector<1x128xf32> to vector<32x128xf32>
    %36 = arith.mulf %8, %35 : vector<32x128xf32>
    %37 = vector.extract_strided_slice %33 {offsets = [1, 0], sizes = [1, 128], strides = [1, 1]} : vector<2x128xf32> to vector<1x128xf32>
    %38 = vector.broadcast %37 : vector<1x128xf32> to vector<32x128xf32>
    %39 = arith.addf %36, %38 : vector<32x128xf32>
    %cst_22 = arith.constant 0.000000e+00 : f32
    %40 = vector.broadcast %cst_22 : f32 to vector<32x128xf32>
    %41 = arith.maximumf %39, %40 : vector<32x128xf32>
    %cst_23 = arith.constant 0.000000e+00 : f32
    %42 = vector.broadcast %cst_23 : f32 to vector<2x1x128xf32>
    %c0_24 = arith.constant 0 : index
    %c0_25 = arith.constant 0 : index
    %c0_26 = arith.constant 0 : index
    %43 = vector.load %arg12[%c0_24, %c0_25, %c0_26] : memref<2x18x128xf32, #tpu.memory_space<vmem>>, vector<2x1x128xf32>
    tpu.vector_store %arg12[%c0_24, %c0_25, %c0_26], %42 {strides = array<i32>} : memref<2x18x128xf32, #tpu.memory_space<vmem>>, vector<2x1x128xf32>,
    %cst_27 = arith.constant 0.000000e+00 : f32
    %44 = vector.broadcast %cst_27 : f32 to vector<2x1x128xf32>
    %c0_28 = arith.constant 0 : index
    %c17 = arith.constant 17 : index
    %c0_29 = arith.constant 0 : index
    %45 = vector.load %arg12[%c0_28, %c17, %c0_29] : memref<2x18x128xf32, #tpu.memory_space<vmem>>, vector<2x1x128xf32>
    tpu.vector_store %arg12[%c0_28, %c17, %c0_29], %44 {strides = array<i32>} : memref<2x18x128xf32, #tpu.memory_space<vmem>>, vector<2x1x128xf32>,
    %46 = vector.shape_cast %41 : vector<32x128xf32> to vector<2x16x128xf32>
    %c0_30 = arith.constant 0 : index
    %c1_31 = arith.constant 1 : index
    %c0_32 = arith.constant 0 : index
    %47 = vector.load %arg12[%c0_30, %c1_31, %c0_32] : memref<2x18x128xf32, #tpu.memory_space<vmem>>, vector<2x16x128xf32>
    tpu.vector_store %arg12[%c0_30, %c1_31, %c0_32], %46 {strides = array<i32>} : memref<2x18x128xf32, #tpu.memory_space<vmem>>, vector<2x16x128xf32>,
    %c0_33 = arith.constant 0 : index
    %c0_34 = arith.constant 0 : index
    %c0_35 = arith.constant 0 : index
    %48 = vector.load %arg12[%c0_33, %c0_34, %c0_35] : memref<2x18x128xf32, #tpu.memory_space<vmem>>, vector<2x16x128xf32>
    %49 = vector.shape_cast %48 : vector<2x16x128xf32> to vector<32x128xf32>
    %c0_36 = arith.constant 0 : index
    %c1_37 = arith.constant 1 : index
    %c0_38 = arith.constant 0 : index
    %50 = vector.load %arg12[%c0_36, %c1_37, %c0_38] : memref<2x18x128xf32, #tpu.memory_space<vmem>>, vector<2x16x128xf32>
    %51 = vector.shape_cast %50 : vector<2x16x128xf32> to vector<32x128xf32>
    %c0_39 = arith.constant 0 : index
    %c2_40 = arith.constant 2 : index
    %c0_41 = arith.constant 0 : index
    %52 = vector.load %arg12[%c0_39, %c2_40, %c0_41] : memref<2x18x128xf32, #tpu.memory_space<vmem>>, vector<2x16x128xf32>
    %53 = vector.shape_cast %52 : vector<2x16x128xf32> to vector<32x128xf32>
    %54 = tpu.concatenate %49, %51, %53 in 1 : vector<32x128xf32>, vector<32x128xf32>, vector<32x128xf32> -> vector<32x384xf32>
    %c0_42 = arith.constant 0 : index
    %c0_43 = arith.constant 0 : index
    %55 = vector.load %arg6[%c0_42, %c0_43] : memref<384x128xf32, #tpu.memory_space<vmem>>, vector<384x128xf32>
    %cst_44 = arith.constant dense<0.000000e+00> : vector<32x128xf32>
    %56 = tpu.matmul %54, %55, %cst_44 {dimension_numbers = #tpu.dot_dimension_numbers<[1], [0], [0], [1], [0, 0, 1, 1], [], []>, precision = #tpu.contract_precision<fp32>} : vector<32x384xf32>, vector<384x128xf32>, vector<32x128xf32> -> vector<32x128xf32>
    %cst_45 = arith.constant dense<0.000000e+00> : vector<128xf32>
    %57 = vector.multi_reduction <add>, %56, %cst_45 [0] : vector<32x128xf32> to vector<128xf32>
    %58 = vector.shape_cast %57 : vector<128xf32> to vector<1x128xf32>
    %59 = arith.mulf %56, %56 : vector<32x128xf32>
    %cst_46 = arith.constant dense<0.000000e+00> : vector<128xf32>
    %60 = vector.multi_reduction <add>, %59, %cst_46 [0] : vector<32x128xf32> to vector<128xf32>
    %61 = vector.shape_cast %60 : vector<128xf32> to vector<1x128xf32>
    %62 = tpu.concatenate %58, %61 in 0 : vector<1x128xf32>, vector<1x128xf32> -> vector<2x128xf32>
    %c0_47 = arith.constant 0 : index
    %c0_48 = arith.constant 0 : index
    %63 = vector.load %arg9[%c0_47, %c0_48] : memref<128x8xf32, #tpu.memory_space<vmem>>, vector<128x8xf32>
    %cst_49 = arith.constant dense<0.000000e+00> : vector<2x8xf32>
    %64 = tpu.matmul %62, %63, %cst_49 {dimension_numbers = #tpu.dot_dimension_numbers<[1], [0], [0], [1], [0, 0, 1, 1], [], []>, precision = #tpu.contract_precision<fp32>} : vector<2x128xf32>, vector<128x8xf32>, vector<2x8xf32> -> vector<2x8xf32>
    %cst_50 = arith.constant 0.001953125 : f32
    %65 = vector.broadcast %cst_50 : f32 to vector<2x8xf32>
    %66 = arith.mulf %64, %65 : vector<2x8xf32>
    %67 = vector.extract_strided_slice %66 {offsets = [0, 0], sizes = [1, 8], strides = [1, 1]} : vector<2x8xf32> to vector<1x8xf32>
    %68 = vector.extract_strided_slice %66 {offsets = [1, 0], sizes = [1, 8], strides = [1, 1]} : vector<2x8xf32> to vector<1x8xf32>
    %69 = arith.mulf %67, %67 : vector<1x8xf32>
    %70 = arith.subf %68, %69 : vector<1x8xf32>
    %c0_51 = arith.constant 0 : index
    %c0_52 = arith.constant 0 : index
    %71 = vector.load %arg7[%c0_51, %c0_52] : memref<1x8xf32, #tpu.memory_space<vmem>>, vector<1x8xf32>
    %cst_53 = arith.constant 9.99999974E-6 : f32
    %72 = vector.broadcast %cst_53 : f32 to vector<1x8xf32>
    %73 = arith.addf %70, %72 : vector<1x8xf32>
    %74 = math.rsqrt %73 : vector<1x8xf32>
    %75 = arith.mulf %71, %74 : vector<1x8xf32>
    %c0_54 = arith.constant 0 : index
    %c0_55 = arith.constant 0 : index
    %76 = vector.load %arg8[%c0_54, %c0_55] : memref<1x8xf32, #tpu.memory_space<vmem>>, vector<1x8xf32>
    %77 = arith.mulf %67, %75 : vector<1x8xf32>
    %78 = arith.subf %76, %77 : vector<1x8xf32>
    %79 = tpu.concatenate %75, %78 in 0 : vector<1x8xf32>, vector<1x8xf32> -> vector<2x8xf32>
    %c0_56 = arith.constant 0 : index
    %c0_57 = arith.constant 0 : index
    %80 = vector.load %arg10[%c0_56, %c0_57] : memref<8x128xf32, #tpu.memory_space<vmem>>, vector<8x128xf32>
    %cst_58 = arith.constant dense<0.000000e+00> : vector<2x128xf32>
    %81 = tpu.matmul %79, %80, %cst_58 {dimension_numbers = #tpu.dot_dimension_numbers<[1], [0], [0], [1], [0, 0, 1, 1], [], []>, precision = #tpu.contract_precision<fp32>} : vector<2x8xf32>, vector<8x128xf32>, vector<2x128xf32> -> vector<2x128xf32>
    %82 = vector.extract_strided_slice %81 {offsets = [0, 0], sizes = [1, 128], strides = [1, 1]} : vector<2x128xf32> to vector<1x128xf32>
    %83 = vector.broadcast %82 : vector<1x128xf32> to vector<32x128xf32>
    %84 = arith.mulf %56, %83 : vector<32x128xf32>
    %85 = vector.extract_strided_slice %81 {offsets = [1, 0], sizes = [1, 128], strides = [1, 1]} : vector<2x128xf32> to vector<1x128xf32>
    %86 = vector.broadcast %85 : vector<1x128xf32> to vector<32x128xf32>
    %87 = arith.addf %84, %86 : vector<32x128xf32>
    %cst_59 = arith.constant 0.000000e+00 : f32
    %88 = vector.broadcast %cst_59 : f32 to vector<32x128xf32>
    %89 = arith.maximumf %87, %88 : vector<32x128xf32>
    %c0_60 = arith.constant 0 : index
    %c0_61 = arith.constant 0 : index
    %90 = vector.load %arg11[%c0_60, %c0_61] : memref<32x128xf32, #tpu.memory_space<vmem>>, vector<32x128xf32>
    tpu.vector_store %arg11[%c0_60, %c0_61], %89 {strides = array<i32>} : memref<32x128xf32, #tpu.memory_space<vmem>>, vector<32x128xf32>,
    return
  }
}

</mosaic_0001>

<bundles_post_ra>
// kernel: double_conv.1
= control target key start
LH: loop header
LB: loop body
LE: loop exit
PB: predicated region body
PF: predicated region fallthrough
CT: control target
= control target key end

     0   :  { %v9631_v3 = vmov 0.0   ;;  %s6614_s23 = smov 64   ;;  %vm66_vm0 = vcmask 523264   ;;  %vm6615_vm1 = vmmov 0   ;;  %vm1055_vm2 = vcmask 1040384   ;;  %s9566_s0 = inlined_call_operand.vmem [shape: f32[2,18,64], index: 0, kind: input, shape index: {}]   ;;  %s9567_s1 = inlined_call_operand.vmem [shape: f32[192,128], index: 1, kind: input, shape index: {}]   ;;  %s9568_s4 = inlined_call_operand.vmem [shape: f32[128,8], index: 4, kind: input, shape index: {}, may-alias: {4,9}]   ;;  %s9569_s5 = inlined_call_operand.vmem [shape: f32[8,128], index: 5, kind: input, shape index: {}, may-alias: {5,10}]   ;;  %s9570_s2 = inlined_call_operand.vmem [shape: f32[1,8], index: 2, kind: input, shape index: {}]   ;;  %s9571_s3 = inlined_call_operand.vmem [shape: f32[1,8], index: 3, kind: input, shape index: {}]   ;;  %s9572_s6 = inlined_call_operand.vmem [shape: f32[384,128], index: 6, kind: input, shape index: {}]   ;;  %s9573_s9 = inlined_call_operand.vmem [shape: f32[128,8], index: 9, kind: input, shape index: {}, may-alias: {4,9}]   ;;  %s9574_s10 = inlined_call_operand.vmem [shape: f32[8,128], index: 10, kind: input, shape index: {}, may-alias: {5,10}]   ;;  %s9575_s7 = inlined_call_operand.vmem [shape: f32[1,8], index: 7, kind: input, shape index: {}]   ;;  %s9576_s8 = inlined_call_operand.vmem [shape: f32[1,8], index: 8, kind: input, shape index: {}]   ;;  %s9577_s11 = inlined_call_operand.vmem [shape: f32[32,128], index: 11, kind: output, shape index: {}]  }
   0x1   :  { %v42_v0 = vld [vmem:[%s9566_s0 + $0x1] sm:$0xff]  ;;  %v43_v1 = vld [vmem:[%s9566_s0 + $0x9] sm:$0xff]  ;;  %v44_v2 = vld [vmem:[%s9566_s0 + $0x19] sm:$0xff]  ;;  %256 = vmatprep.subr.mxu1 %v9631_v3  ;;  %2222 = vst [vmem:[#allocation2] sm:$0x1] %v9631_v3  ;;  %107 = vmatprep.subr.mxu0 %v9631_v3  ;;  %vm1752_vm3 = vcmask 64512  }
   0x2   :  { %2223 = vst [vmem:[#allocation2 + $0x18] sm:$0x1] %v9631_v3  ;;  %2224 = vst [vmem:[#allocation2 + $0x11] sm:$0x1] %v9631_v3  ;;  %54 = vrot.lane.b32.xlu0 %v42_v0, %s6614_s23  ;;  %58 = vrot.lane.b32.xlu1 %v44_v2, %s6614_s23  ;;  %v45_v4 = vld [vmem:[%s9566_s0 + $0x21] sm:$0xff]  ;;  %v86_v5 = vld [vmem:[%s9567_s1 + $0x78] sm:$0xff] }
   0x3   :  { %2225 = vst [vmem:[#allocation2 + $0x29] sm:$0x1] %v9631_v3  ;;  %v6698_v6 = vand.u32 4294901760, %v86_v5  ;;  %v85_v7 = vld [vmem:[%s9567_s1 + $0x70] sm:$0xff]  ;;  %v84_v8 = vld [vmem:[%s9567_s1 + $0x68] sm:$0xff]  ;;  %v83_v9 = vld [vmem:[%s9567_s1 + $0x60] sm:$0xff] }
   0x4   :  { %v6709_v10 = vand.u32 4294901760, %v85_v7  ;;  %v6711_v11 = vand.u32 4294901760, %v84_v8  ;;  %v6713_v12 = vand.u32 4294901760, %v83_v9  ;;  %v82_v13 = vld [vmem:[%s9567_s1 + $0x58] sm:$0xff]  ;;  %v81_v14 = vld [vmem:[%s9567_s1 + $0x50] sm:$0xff]  ;;  %v80_v15 = vld [vmem:[%s9567_s1 + $0x48] sm:$0xff] }
   0x5   :  { %v6725_v16 = vsub.f32 %v86_v5, %v6698_v6  ;;  %109 = vmatpush1.msra.mxu0 %v6698_v6  ;;  %v6728_v17 = vand.u32 4294901760, %v82_v13  ;;  %v6730_v18 = vand.u32 4294901760, %v81_v14  ;;  %v6732_v19 = vand.u32 4294901760, %v80_v15  ;;  %v79_v20 = vld [vmem:[%s9567_s1 + $0x40] sm:$0xff]  ;;  %v78_v37 = vld [vmem:[%s9567_s1 + $0x38] sm:$0xff]  ;;  %v77_v41 = vld [vmem:[%s9567_s1 + $0x30] sm:$0xff] }
   0x6   :  { %56 = vrot.lane.b32.xlu0 %v43_v1, %s6614_s23  ;;  %60 = vrot.lane.b32.xlu1 %v45_v4, %s6614_s23  ;;  %v6738_v21 = vsub.f32 %v85_v7, %v6709_v10  ;;  %v6741_v22 = vsub.f32 %v84_v8, %v6711_v11  ;;  %v6744_v23 = vsub.f32 %v83_v9, %v6713_v12  ;;  %v6746_v24 = vand.u32 4294901760, %v79_v20  ;;  %v76_v42 = vld [vmem:[%s9567_s1 + $0x28] sm:$0xff]  ;;  %v75_v44 = vld [vmem:[%s9567_s1 + $0x20] sm:$0xff] }
   0x7   :  { %v9598_v25 = vand.u32 4294901760, %v6725_v16  ;;  %v6750_v26 = vsub.f32 %v82_v13, %v6728_v17  ;;  %110 = vmatprep.subr.mxu0 %v9631_v3  ;;  %v6754_v27 = vsub.f32 %v81_v14, %v6730_v18  ;;  %v6766_v33 = vsub.f32 %v80_v15, %v6732_v19  ;;  %v74_v49 = vld [vmem:[%s9567_s1 + $0x18] sm:$0xff]  ;;  %v73_v59 = vld [vmem:[%s9567_s1 + $0x10] sm:$0xff]  ;;  %v72_v0 = vld [vmem:[%s9567_s1 + $0x8] sm:$0xff] }
   0x8   :  { %v9595_v28 = vand.u32 4294901760, %v6738_v21  ;;  %v9592_v29 = vand.u32 4294901760, %v6741_v22  ;;  %v9591_v30 = vand.u32 4294901760, %v6744_v23  ;;  %112 = vmatpush1.msra.mxu0 %v6709_v10  ;;  %v6776_v36 = vsub.f32 %v79_v20, %v6746_v24  ;;  %v71_v8 = vld [vmem:[%s9567_s1] sm:$0xff] }
   0x9   :  { %v260_v31 = vsub.f32 %v6725_v16, %v9598_v25  ;;  %v9589_v32 = vand.u32 4294901760, %v6750_v26  ;;  %113 = vmatprep.subr.mxu0 %v9631_v3  ;;  %v9588_v40 = vand.u32 4294901760, %v6754_v27  ;;  %v9586_v47 = vand.u32 4294901760, %v6766_v33 }
   0xa   :  { %v267_v34 = vsub.f32 %v6738_v21, %v9595_v28  ;;  %v274_v35 = vsub.f32 %v6741_v22, %v9592_v29  ;;  %115 = vmatpush1.msra.mxu0 %v6711_v11  ;;  %v281_v39 = vsub.f32 %v6744_v23, %v9591_v30  ;;  %v6801_v48 = vand.u32 4294901760, %v78_v37 }
   0xb   :  { %v261_v38 = vand.u32 4294901760, %v260_v31  ;;  %116 = vmatprep.subr.mxu0 %v9631_v3  ;;  %v288_v46 = vsub.f32 %v6750_v26, %v9589_v32  ;;  %v9585_v50 = vand.u32 4294901760, %v6776_v36  ;;  %v6809_v51 = vand.u32 4294901760, %v77_v41 }
   0xc   :  { %v268_v43 = vand.u32 4294901760, %v267_v34  ;;  %118 = vmatpush1.msra.mxu0 %v6713_v12  ;;  %v275_v45 = vand.u32 4294901760, %v274_v35  ;;  %v6811_v52 = vand.u32 4294901760, %v76_v42  ;;  %v282_v53 = vand.u32 4294901760, %v281_v39  ;;  %v94_v34 = vld [vmem:[%s9567_s1 + $0xb8] sm:$0xff] }
   0xd   :  { %262 = vmatpush1.msra.mxu1 %v261_v38  ;;  %119 = vmatprep.subr.mxu0 %v9631_v3  ;;  %v295_v54 = vsub.f32 %v6754_v27, %v9588_v40  ;;  %v6817_v55 = vsub.f32 %v78_v37, %v6801_v48  ;;  %v6820_v56 = vand.u32 4294901760, %v75_v44  ;;  %v6825_v57 = vsub.f32 %v77_v41, %v6809_v51  ;;  %v87_v40 = vld [vmem:[%s9567_s1 + $0x80] sm:$0xff] }
   0xe   :  { %263 = vmatprep.subr.mxu1 %v9631_v3  ;;  %121 = vmatpush1.msra.mxu0 %v6728_v17  ;;  %v6827_v58 = vand.u32 4294901760, %v74_v49  ;;  %v289_v60 = vand.u32 4294901760, %v288_v46  ;;  %v302_v61 = vsub.f32 %v6766_v33, %v9586_v47  ;;  %v6838_v63 = vsub.f32 %v76_v42, %v6811_v52 }
   0xf   :  { %269 = vmatpush1.msra.mxu1 %v268_v43  ;;  %122 = vmatprep.subr.mxu0 %v9631_v3  ;;  %9821 = vst [vmem:[#allocation3_spill] sm:$0xff] %v6820_v56  ;;  %v9584_v62 = vand.u32 4294901760, %v6817_v55  ;;  %v309_v1 = vsub.f32 %v6776_v36, %v9585_v50  ;;  %v296_v2 = vand.u32 4294901760, %v295_v54  ;;  %v9581_v4 = vand.u32 4294901760, %v6825_v57  ;;  %v93_v43 = vld [vmem:[%s9567_s1 + $0xb0] sm:$0xff] }
  0x10   :  { %270 = vmatprep.subr.mxu1 %v9631_v3  ;;  %124 = vmatpush1.msra.mxu0 %v6730_v18  ;;  %v6851_v5 = vsub.f32 %v75_v44, %v6820_v56  ;;  %v6853_v7 = vand.u32 4294901760, %v73_v59  ;;  %v6861_v9 = vsub.f32 %v74_v49, %v6827_v58  ;;  %v6863_v13 = vand.u32 4294901760, %v72_v0 }
  0x11   :  { %276 = vmatpush1.msra.mxu1 %v275_v45  ;;  %125 = vmatprep.subr.mxu0 %v9631_v3  ;;  %v303_v14 = vand.u32 4294901760, %v302_v61  ;;  %v316_v15 = vsub.f32 %v6817_v55, %v9584_v62  ;;  %v9580_v20 = vand.u32 4294901760, %v6838_v63  ;;  %v6872_v31 = vand.u32 4294901760, %v71_v8 }
  0x12   :  { %277 = vmatprep.subr.mxu1 %v9631_v3  ;;  %127 = vmatpush1.msra.mxu0 %v6732_v19  ;;  %9822 = vst [vmem:[#allocation4_spill] sm:$0xff] %v6851_v5  ;;  %9823 = vst [vmem:[#allocation5_spill] sm:$0xff] %v6863_v13  ;;  %v310_v35 = vand.u32 4294901760, %v309_v1  ;;  %v323_v37 = vsub.f32 %v6825_v57, %v9581_v4  ;;  %v9579_v38 = vand.u32 4294901760, %v6851_v5  ;;  %v9578_v41 = vand.u32 4294901760, %v6861_v9 }
  0x13   :  { %283 = vmatpush1.msra.mxu1 %v282_v53  ;;  %128 = vmatprep.subr.mxu0 %v9631_v3  ;;  %9824 = vst [vmem:[#allocation6_spill] sm:$0xff] %v6872_v31  ;;  %v6883_v39 = vsub.f32 %v73_v59, %v6853_v7  ;;  %v6889_v42 = vsub.f32 %v72_v0, %v6863_v13  ;;  %v317_v44 = vand.u32 4294901760, %v316_v15  ;;  %v6898_v46 = vand.u32 4294901760, %v94_v34  ;;  %v92_v53 = vld [vmem:[%s9567_s1 + $0xa8] sm:$0xff] }
  0x14   :  { %284 = vmatprep.subr.mxu1 %v9631_v3  ;;  %130 = vmatpush1.msra.mxu0 %v6746_v24  ;;  %v330_v45 = vsub.f32 %v6838_v63, %v9580_v20  ;;  %v6903_v49 = vsub.f32 %v71_v8, %v6872_v31  ;;  %v324_v54 = vand.u32 4294901760, %v323_v37  ;;  %v337_v59 = vsub.f32 %v6851_v5, %v9579_v38  ;;  %v90_v37 = vld [vmem:[%s9567_s1 + $0x98] sm:$0xff] }
  0x15   :  { %290 = vmatpush1.msra.mxu1 %v289_v60  ;;  %131 = vmatprep.subr.mxu0 %v9631_v3  ;;  %v9582_v60 = vand.u32 4294901760, %v6883_v39  ;;  %v6913_v61 = vand.u32 4294901760, %v93_v43  ;;  %v344_v0 = vsub.f32 %v6861_v9, %v9578_v41  ;;  %v9583_v1 = vand.u32 4294901760, %v6889_v42 }
  0x16   :  { %291 = vmatprep.subr.mxu1 %v9631_v3  ;;  %133 = vmatpush1.msra.mxu0 %v6801_v48  ;;  %v331_v8 = vand.u32 4294901760, %v330_v45  ;;  %v6928_v15 = vand.u32 4294901760, %v92_v53  ;;  %v7009_v29 = vand.u32 4294901760, %v87_v40 }
  0x17   :  { %297 = vmatpush1.msra.mxu1 %v296_v2  ;;  %134 = vmatprep.subr.mxu0 %v9631_v3  ;;  %v91_v2 = vld [vmem:[%s9567_s1 + $0xa0] sm:$0xff]  ;;  %v351_v45 = vsub.f32 %v6883_v39, %v9582_v60  ;;  %v6944_v41 = vsub.f32 %v93_v43, %v6913_v61  ;;  %v345_v20 = vand.u32 4294901760, %v344_v0  ;;  %v358_v4 = vsub.f32 %v6889_v42, %v9583_v1 }
  0x18   :  { %298 = vmatprep.subr.mxu1 %v9631_v3  ;;  %136 = vmatpush1.msra.mxu0 %v6809_v51  ;;  %v6946_v38 = vand.u32 4294901760, %v91_v2  ;;  %v6959_v43 = vsub.f32 %v92_v53, %v6928_v15  ;;  %v6961_v60 = vand.u32 4294901760, %v90_v37  ;;  %v7030_v28 = vsub.f32 %v87_v40, %v7009_v29 }
  0x19   :  { %304 = vmatpush1.msra.mxu1 %v303_v14  ;;  %137 = vmatprep.subr.mxu0 %v9631_v3  ;;  %v6926_v14 = vsub.f32 %v94_v34, %v6898_v46  ;;  %v338_v34 = vand.u32 4294901760, %v337_v59  ;;  %v352_v53 = vand.u32 4294901760, %v351_v45  ;;  %v9593_v50 = vand.u32 4294901760, %v6944_v41 }
  0x1a   :  { %305 = vmatprep.subr.mxu1 %v9631_v3  ;;  %139 = vmatpush1.msra.mxu0 %v6811_v52  ;;  %v9594_v45 = vand.u32 4294901760, %v6959_v43 }
  0x1b   :  { %311 = vmatpush1.msra.mxu1 %v310_v35  ;;  %140 = vmatprep.subr.mxu0 %v9631_v3  ;;  %v9587_v35 = vand.u32 4294901760, %v6903_v49  ;;  %v9590_v59 = vand.u32 4294901760, %v6926_v14 }
  0x1c   :  { %312 = vmatprep.subr.mxu1 %v9631_v3  ;;  %142 = vmatpush1.msra.mxu0 %v6820_v56 }
  0x1d   :  { %318 = vmatpush1.msra.mxu1 %v317_v44  ;;  %143 = vmatprep.subr.mxu0 %v9631_v3  ;;  %v46_v44 = vld [vmem:[%s9566_s0 + $0x2] sm:$0xff]  ;;  %v365_v1 = vsub.f32 %v6903_v49, %v9587_v35  ;;  %v359_v35 = vand.u32 4294901760, %v358_v4 }
  0x1e   :  { %319 = vmatprep.subr.mxu1 %v9631_v3  ;;  %145 = vmatpush1.msra.mxu0 %v6827_v58  ;;  %v96_v0 = vsel %vm66_vm0, %v46_v44, 0  ;;  %v6977_v44 = vsub.f32 %v91_v2, %v6946_v38  ;;  %v6992_v2 = vsub.f32 %v90_v37, %v6961_v60 }
  0x1f   :  { %325 = vmatpush1.msra.mxu1 %v324_v54  ;;  %146 = vmatprep.subr.mxu0 %v9631_v3  ;;  %v89_v54 = vld [vmem:[%s9567_s1 + $0x90] sm:$0xff]  ;;  %v6972_v62 = vand.u32 4294901760, %v96_v0  ;;  %v366_v4 = vand.u32 4294901760, %v365_v1 }
  0x20   :  { %326 = vmatprep.subr.mxu1 %v9631_v3  ;;  %148 = vmatpush1.msra.mxu0 %v6853_v7  ;;  %v6979_v47 = vand.u32 4294901760, %v89_v54  ;;  %v9596_v30 = vand.u32 4294901760, %v6977_v44 }
  0x21   :  { %332 = vmatpush1.msra.mxu1 %v331_v8  ;;  %149 = vmatprep.subr.mxu0 %v9631_v3  ;;  %v88_v8 = vld [vmem:[%s9567_s1 + $0x88] sm:$0xff]  ;;  %9825 = vst [vmem:[#allocation7_spill] sm:$0xff] %v6972_v62 }
  0x22   :  { %333 = vmatprep.subr.mxu1 %v9631_v3  ;;  %151 = vmatpush1.msra.mxu0 %v6863_v13  ;;  %v6994_v32 = vand.u32 4294901760, %v88_v8  ;;  %v7007_v37 = vsub.f32 %v89_v54, %v6979_v47 }
  0x23   :  { %339 = vmatpush1.msra.mxu1 %v338_v34  ;;  %152 = vmatprep.subr.mxu0 %v9631_v3  ;;  %v388_v34 = vsub.f32 %v6926_v14, %v9590_v59  ;;  %v395_v59 = vsub.f32 %v6944_v41, %v9593_v50 }
  0x24   :  { %340 = vmatprep.subr.mxu1 %v9631_v3  ;;  %154 = vmatpush1.msra.mxu0 %v6872_v31  ;;  %v7019_v50 = vsub.f32 %v88_v8, %v6994_v32 }
  0x25   :  { %346 = vmatpush1.msra.mxu1 %v345_v20  ;;  %171 = vmatprep.subr.mxu0 %v9631_v3  ;;  %v6999_v20 = vsub.f32 %v96_v0, %v6972_v62  ;;  %v389_v1 = vand.u32 4294901760, %v388_v34  ;;  %v402_v0 = vsub.f32 %v6959_v43, %v9594_v45  ;;  %v409_v34 = vsub.f32 %v6977_v44, %v9596_v30 }
  0x26   :  { %347 = vmatprep.subr.mxu1 %v9631_v3  ;;  %173 = vmatpush2.msra.mxu0 %v6898_v46  ;;  %v9599_v45 = vand.u32 4294901760, %v7007_v37 }
  0x27   :  { %353 = vmatpush1.msra.mxu1 %v352_v53  ;;  %174 = vmatprep.subr.mxu0 %v9631_v3  ;;  %v9597_v53 = vand.u32 4294901760, %v6992_v2  ;;  %v9603_v54 = vand.u32 4294901760, %v6999_v20  ;;  %v403_v8 = vand.u32 4294901760, %v402_v0  ;;  %v410_v30 = vand.u32 4294901760, %v409_v34 }
  0x28   :  { %354 = vmatprep.subr.mxu1 %v9631_v3  ;;  %176 = vmatpush2.msra.mxu0 %v6913_v61  ;;  %v9600_v0 = vand.u32 4294901760, %v7030_v28 }
  0x29   :  { %360 = vmatpush1.msra.mxu1 %v359_v35  ;;  %177 = vmatprep.subr.mxu0 %v9631_v3  ;;  %v396_v35 = vand.u32 4294901760, %v395_v59  ;;  %v416_v59 = vsub.f32 %v6992_v2, %v9597_v53  ;;  %v198_v40 = vsub.f32 %v6999_v20, %v9603_v54 }
  0x2a   :  { %361 = vmatprep.subr.mxu1 %v9631_v3  ;;  %179 = vmatpush2.msra.mxu0 %v6928_v15 }
  0x2b   :  { %367 = vmatpush1.msra.mxu1 %v366_v4  ;;  %180 = vmatprep.subr.mxu0 %v9631_v3  ;;  %v9601_v4 = vand.u32 4294901760, %v7019_v50  ;;  %v417_v53 = vand.u32 4294901760, %v416_v59 }
  0x2c   :  { %384 = vmatprep.subr.mxu1 %v9631_v3  ;;  %182 = vmatpush2.msra.mxu0 %v6946_v38 }
  0x2d   :  { %390 = vmatpush2.msra.mxu1 %v389_v1  ;;  %183 = vmatprep.subr.mxu0 %v9631_v3  ;;  %v423_v1 = vsub.f32 %v7007_v37, %v9599_v45  ;;  %v430_v25 = vsub.f32 %v7019_v50, %v9601_v4  ;;  %v437_v45 = vsub.f32 %v7030_v28, %v9600_v0 }
  0x2e   :  { %391 = vmatprep.subr.mxu1 %v9631_v3  ;;  %441 = vmatprep.mubr.f32.mxu1 %v6972_v62 }
  0x2f   :  { %397 = vmatpush2.msra.mxu1 %v396_v35  ;;  %185 = vmatpush2.msra.mxu0 %v6961_v60  ;;  %v199_v35 = vand.u32 4294901760, %v198_v40  ;;  %v424_v34 = vand.u32 4294901760, %v423_v1  ;;  %v48_v1 = vld [vmem:[%s9566_s0 + $0x1a] sm:$0xff] }
  0x30   :  { %398 = vmatprep.subr.mxu1 %v9631_v3  ;;  %186 = vmatprep.subr.mxu0 %v9631_v3 }
  0x31   :  { %404 = vmatpush2.msra.mxu1 %v403_v8  ;;  %188 = vmatpush2.msra.mxu0 %v6979_v47  ;;  %v431_v8 = vand.u32 4294901760, %v430_v25  ;;  %v47_v25 = vld [vmem:[%s9566_s0 + $0xa] sm:$0xff] }
  0x32   :  { %405 = vmatprep.subr.mxu1 %v9631_v3  ;;  %189 = vmatprep.subr.mxu0 %v9631_v3 }
  0x33   :  { %411 = vmatpush2.msra.mxu1 %v410_v30  ;;  %191 = vmatpush2.msra.mxu0 %v6994_v32  ;;  %v438_v30 = vand.u32 4294901760, %v437_v45  ;;  %v99_v45 = vsel %vm66_vm0, %v47_v25, 0 }
  0x34   :  { %412 = vmatprep.subr.mxu1 %v9631_v3  ;;  %192 = vmatprep.subr.mxu0 %v9631_v3 }
  0x35   :  { %418 = vmatpush2.msra.mxu1 %v417_v53  ;;  %194 = vmatpush2.msra.mxu0 %v7009_v29  ;;  %v38_v53 = vld [vmem:[%s9566_s0] sm:$0xff] }
  0x36   :  { %419 = vmatprep.subr.mxu1 %v9631_v3  ;;  %200 = vmatprep.mubr.f32.mxu0 %v199_v35 }
  0x37   :  { %425 = vmatpush2.msra.mxu1 %v424_v34  ;;  %469 = vmatprep.subr.mxu0 %v9631_v3  ;;  %v39_v34 = vld [vmem:[%s9566_s0 + $0x8] sm:$0xff] }
  0x38   :  { %426 = vmatprep.subr.mxu1 %v9631_v3 }
  0x39   :  { %432 = vmatpush2.msra.mxu1 %v431_v8  ;;  %v7085_v8 = vand.u32 4294901760, %v99_v45 }
  0x3a   :  { %433 = vmatprep.subr.mxu1 %v9631_v3 }
  0x3b   :  { %439 = vmatpush2.msra.mxu1 %v438_v30  ;;  %9827 = vst [vmem:[#allocation9_spill] sm:$0xff] %v7085_v8 }
  0x3c   :  { %618 = vmatprep.subr.mxu1 %v9631_v3 }
  0x74   :  { %v55_v59 = vpop.permute.xlu0 %54 }
  0x75   :  { %v67_v40 = vsel %vm66_vm0, %v38_v53, %v55_v59  ;;  %v7092_v53 = vsel %vm66_vm0, %v48_v1, 0 }
  0x76   :  { %v7080_v35 = vand.u32 4294901760, %v67_v40 }
  0x78   :  { %9826 = vst [vmem:[#allocation8_spill] sm:$0xff] %v7080_v35  ;;  %v7088_v30 = vsub.f32 %v67_v40, %v7080_v35  ;;  %443 = vmatmul.mubr.f32.vlgmr.msra.gmra.mxu1 %v7080_v35  ;;  %v57_v25 = vpop.permute.xlu0 %56  ;;  %v7103_v40 = vand.u32 4294901760, %v7092_v53  ;;  %v49_v35 = vld [vmem:[%s9566_s0 + $0x22] sm:$0xff] }
  0x79   :  { %620 = vmatpush1.msra.mxu1 %v6698_v6  ;;  %v68_v59 = vsel %vm66_vm0, %v39_v34, %v57_v25  ;;  %448 = vmatprep.mubr.f32.mxu1 %v7085_v8  ;;  %v59_v25 = vpop.permute.xlu1 %58 }
  0x7a   :  { %621 = vmatprep.subr.mxu1 %v9631_v3  ;;  %v9602_v0 = vand.u32 4294901760, %v7088_v30  ;;  %v7099_v4 = vand.u32 4294901760, %v68_v59  ;;  %9829 = vst [vmem:[#allocation11_spill] sm:$0xff] %v7103_v40  ;;  %v7172_v62 = vsub.f32 %v7092_v53, %v7103_v40 }
  0x7b   :  { %623 = vmatpush1.msra.mxu1 %v6709_v10 }
  0x7c   :  { %9828 = vst [vmem:[#allocation10_spill] sm:$0xff] %v7099_v4  ;;  %624 = vmatprep.subr.mxu1 %v9631_v3  ;;  %v204_v1 = vsub.f32 %v7088_v30, %v9602_v0  ;;  %450 = vmatmul.mubr.f32.gmra.mxu1 %v7099_v4  ;;  %v7144_v0 = vsub.f32 %v99_v45, %v7085_v8 }
  0x7d   :  { %626 = vmatpush1.msra.mxu1 %v6711_v11  ;;  %455 = vmatprep.mubr.f32.mxu1 %v7103_v40  ;;  %v7149_v54 = vsub.f32 %v68_v59, %v7099_v4  ;;  %v41_v59 = vld [vmem:[%s9566_s0 + $0x20] sm:$0xff]  ;;  %v105_v4 = vsel %vm66_vm0, %v49_v35, 0 }
  0x7e   :  { %627 = vmatprep.subr.mxu1 %v9631_v3  ;;  %v205_v34 = vand.u32 4294901760, %v204_v1  ;;  %v40_v1 = vld [vmem:[%s9566_s0 + $0x18] sm:$0xff]  ;;  %v9830_v53 = vand.u32 4294901760, %v7144_v0 }
  0x7f   :  { %629 = vmatpush1.msra.mxu1 %v6713_v12 }
  0x80   :  { %630 = vmatprep.subr.mxu1 %v9631_v3  ;;  %206 = vmatmul.mubr.f32.vlgmr.msra.gmra.mxu0 %v205_v34  ;;  %v69_v34 = vsel %vm66_vm0, %v40_v1, %v59_v25  ;;  %v61_v25 = vpop.permute.xlu1 %60  ;;  %v7182_v1 = vand.u32 4294901760, %v105_v4  ;;  %v213_v8 = vsub.f32 %v7144_v0, %v9830_v53 }
  0x81   :  { %472 = vmatpush1.msra.mxu0 %v6725_v16  ;;  %632 = vmatpush1.msra.mxu1 %v6728_v17  ;;  %v7158_v45 = vand.u32 4294901760, %v69_v34 }
  0x82   :  { %473 = vmatprep.subr.mxu0 %v9631_v3  ;;  %633 = vmatprep.subr.mxu1 %v9631_v3 }
  0x83   :  { %476 = vmatpush1.msra.mxu0 %v6738_v21  ;;  %635 = vmatpush1.msra.mxu1 %v6730_v18  ;;  %v7180_v35 = vsub.f32 %v69_v34, %v7158_v45 }
  0x84   :  { %477 = vmatprep.subr.mxu0 %v9631_v3  ;;  %636 = vmatprep.subr.mxu1 %v9631_v3 }
  0x85   :  { %480 = vmatpush1.msra.mxu0 %v6741_v22  ;;  %638 = vmatpush1.msra.mxu1 %v6732_v19 }
  0x86   :  { %481 = vmatprep.subr.mxu0 %v9631_v3  ;;  %639 = vmatprep.subr.mxu1 %v9631_v3 }
  0x87   :  { %484 = vmatpush1.msra.mxu0 %v6744_v23  ;;  %641 = vmatpush1.msra.mxu1 %v6746_v24 }
  0x88   :  { %485 = vmatprep.subr.mxu0 %v9631_v3  ;;  %642 = vmatprep.subr.mxu1 %v9631_v3 }
  0x89   :  { %488 = vmatpush1.msra.mxu0 %v6750_v26  ;;  %644 = vmatpush1.msra.mxu1 %v6801_v48 }
  0x8a   :  { %489 = vmatprep.subr.mxu0 %v9631_v3  ;;  %645 = vmatprep.subr.mxu1 %v9631_v3 }
  0x8b   :  { %492 = vmatpush1.msra.mxu0 %v6754_v27  ;;  %647 = vmatpush1.msra.mxu1 %v6809_v51 }
  0x8c   :  { %493 = vmatprep.subr.mxu0 %v9631_v3  ;;  %648 = vmatprep.subr.mxu1 %v9631_v3 }
  0x8d   :  { %496 = vmatpush1.msra.mxu0 %v6766_v33  ;;  %650 = vmatpush1.msra.mxu1 %v6811_v52 }
  0x8e   :  { %497 = vmatprep.subr.mxu0 %v9631_v3  ;;  %651 = vmatprep.subr.mxu1 %v9631_v3 }
  0x8f   :  { %500 = vmatpush1.msra.mxu0 %v6776_v36  ;;  %653 = vmatpush1.msra.mxu1 %v6820_v56  ;;  %v70_v56 = vsel %vm66_vm0, %v41_v59, %v61_v25  ;;  %v9831_v59 = vand.u32 4294901760, %v7149_v54 }
  0x90   :  { %501 = vmatprep.subr.mxu0 %v9631_v3  ;;  %654 = vmatprep.subr.mxu1 %v9631_v3  ;;  %v7191_v25 = vand.u32 4294901760, %v70_v56 }
  0x91   :  { %504 = vmatpush1.msra.mxu0 %v6817_v55  ;;  %656 = vmatpush1.msra.mxu1 %v6827_v58  ;;  %v219_v34 = vsub.f32 %v7149_v54, %v9831_v59  ;;  %v214_v59 = vand.u32 4294901760, %v213_v8 }
  0x92   :  { %505 = vmatprep.subr.mxu0 %v9631_v3  ;;  %657 = vmatprep.subr.mxu1 %v9631_v3  ;;  %v7208_v40 = vsub.f32 %v70_v56, %v7191_v25  ;;  %v9833_v56 = vand.u32 4294901760, %v7180_v35 }
  0x93   :  { %508 = vmatpush1.msra.mxu0 %v6825_v57  ;;  %659 = vmatpush1.msra.mxu1 %v6853_v7 }
  0x94   :  { %509 = vmatprep.subr.mxu0 %v9631_v3  ;;  %660 = vmatprep.subr.mxu1 %v9631_v3 }
  0x95   :  { %512 = vmatpush1.msra.mxu0 %v6838_v63  ;;  %662 = vmatpush1.msra.mxu1 %v6863_v13  ;;  %v7203_v13 = vsub.f32 %v105_v4, %v7182_v1  ;;  %v234_v4 = vsub.f32 %v7180_v35, %v9833_v56 }
  0x96   :  { %513 = vmatprep.subr.mxu0 %v9631_v3  ;;  %663 = vmatprep.subr.mxu1 %v9631_v3 }
  0x97   :  { %516 = vmatpush1.msra.mxu0 %v6851_v5  ;;  %665 = vmatpush1.msra.mxu1 %v6872_v31  ;;  %v220_v5 = vand.u32 4294901760, %v219_v34  ;;  %v9832_v31 = vand.u32 4294901760, %v7172_v62  ;;  %v242_v8 = vand.u32 4294901760, %v7203_v13  ;;  %v248_v34 = vand.u32 4294901760, %v7208_v40 }
  0x98   :  { %517 = vmatprep.subr.mxu0 %v9631_v3  ;;  %682 = vmatprep.subr.mxu1 %v9631_v3  ;;  %v235_v56 = vand.u32 4294901760, %v234_v4 }
  0x99   :  { %520 = vmatpush1.msra.mxu0 %v6861_v9  ;;  %684 = vmatpush2.msra.mxu1 %v6898_v46  ;;  %v228_v53 = vsub.f32 %v7172_v62, %v9832_v31 }
  0x9a   :  { %521 = vmatprep.subr.mxu0 %v9631_v3  ;;  %685 = vmatprep.subr.mxu1 %v9631_v3 }
  0x9b   :  { %524 = vmatpush1.msra.mxu0 %v6883_v39  ;;  %687 = vmatpush2.msra.mxu1 %v6913_v61  ;;  %v229_v31 = vand.u32 4294901760, %v228_v53 }
  0x9c   :  { %215 = vmatprep.mubr.f32.mxu0 %v214_v59  ;;  %525 = vmatprep.subr.mxu0 %v9631_v3  ;;  %v243_v59 = vsub.f32 %v7203_v13, %v242_v8 }
  0x9d   :  { %688 = vmatprep.subr.mxu1 %v9631_v3  ;;  %221 = vmatmul.mubr.f32.gmra.mxu0 %v220_v5  ;;  %v249_v5 = vsub.f32 %v7208_v40, %v248_v34 }
  0x9e   :  { %528 = vmatpush1.msra.mxu0 %v6889_v42  ;;  %690 = vmatpush2.msra.mxu1 %v6928_v15  ;;  %v244_v53 = vand.u32 4294901760, %v243_v59  ;;  %v9836_v59 = vand.u32 4294901760, %v7144_v0 }
  0x9f   :  { %529 = vmatprep.subr.mxu0 %v9631_v3  ;;  %691 = vmatprep.subr.mxu1 %v9631_v3  ;;  %v250_v4 = vand.u32 4294901760, %v249_v5  ;;  %v9837_v5 = vand.u32 4294901760, %v7149_v54 }
  0xa0   :  { %457 = vmatmul.mubr.f32.gmra.mxu1 %v7158_v45  ;;  %532 = vmatpush1.msra.mxu0 %v6903_v49 }
  0xa1   :  { %693 = vmatpush2.msra.mxu1 %v6946_v38  ;;  %230 = vmatprep.mubr.f32.mxu0 %v229_v31  ;;  %v9834_v31 = vand.u32 4294901760, %v6999_v20 }
  0xa2   :  { %549 = vmatprep.subr.mxu0 %v9631_v3  ;;  %694 = vmatprep.subr.mxu1 %v9631_v3 }
  0xa3   :  { %236 = vmatmul.mubr.f32.gmra.mxu0 %v235_v56  ;;  %696 = vmatpush2.msra.mxu1 %v6961_v60  ;;  %v9835_v56 = vand.u32 4294901760, %v7088_v30 }
  0xa4   :  { %552 = vmatpush2.msra.mxu0 %v6926_v14  ;;  %462 = vmatprep.mubr.f32.mxu1 %v7182_v1 }
  0xa5   :  { %553 = vmatprep.subr.mxu0 %v9631_v3  ;;  %697 = vmatprep.subr.mxu1 %v9631_v3 }
  0xa6   :  { %464 = vmatmul.mubr.f32.gmra.mxu1 %v7191_v25  ;;  %556 = vmatpush2.msra.mxu0 %v6944_v41 }
  0xa7   :  { %699 = vmatpush2.msra.mxu1 %v6979_v47  ;;  %245 = vmatprep.mubr.f32.mxu0 %v244_v53 }
  0xa8   :  { %557 = vmatprep.subr.mxu0 %v9631_v3  ;;  %700 = vmatprep.subr.mxu1 %v9631_v3 }
  0xa9   :  { %251 = vmatmul.mubr.f32.gmra.mxu0 %v250_v4  ;;  %702 = vmatpush2.msra.mxu1 %v6994_v32 }
  0xaa   :  { %560 = vmatpush2.msra.mxu0 %v6959_v43  ;;  %703 = vmatprep.subr.mxu1 %v9631_v3 }
  0xab   :  { %561 = vmatprep.subr.mxu0 %v9631_v3  ;;  %705 = vmatpush2.msra.mxu1 %v7009_v29 }
  0xac   :  { %564 = vmatpush2.msra.mxu0 %v6977_v44  ;;  %709 = vmatprep.mubr.f32.mxu1 %v9834_v31 }
  0xad   :  { %565 = vmatprep.subr.mxu0 %v9631_v3  ;;  %713 = vmatmul.mubr.f32.vlgmr.msra.gmra.mxu1 %v9835_v56 }
  0xae   :  { %916 = vmatprep.subr.mxu1 %v9631_v3  ;;  %568 = vmatpush2.msra.mxu0 %v6992_v2 }
  0xaf   :  { %918 = vmatpush1.msra.mxu1 %v6698_v6  ;;  %569 = vmatprep.subr.mxu0 %v9631_v3  ;;  %v9838_v6 = vand.u32 4294901760, %v7172_v62 }
  0xb0   :  { %919 = vmatprep.subr.mxu1 %v9631_v3  ;;  %572 = vmatpush2.msra.mxu0 %v7007_v37 }
  0xb1   :  { %720 = vmatprep.mubr.f32.mxu1 %v9836_v59  ;;  %921 = vmatpush1.msra.mxu1 %v6709_v10  ;;  %v9839_v10 = vand.u32 4294901760, %v7180_v35  ;;  %v1066_v59 = vld [vmem:[%s9568_s4 + $0x48] sm:$0xff] }
  0xb2   :  { %573 = vmatprep.subr.mxu0 %v9631_v3  ;;  %724 = vmatmul.mubr.f32.gmra.mxu1 %v9837_v5 }
  0xb3   :  { %922 = vmatprep.subr.mxu1 %v9631_v3  ;;  %576 = vmatpush2.msra.mxu0 %v7019_v50 }
  0xb4   :  { %924 = vmatpush1.msra.mxu1 %v6711_v11  ;;  %577 = vmatprep.subr.mxu0 %v9631_v3  ;;  %v9840_v11 = vand.u32 4294901760, %v6725_v16  ;;  %v9842_v16 = vand.u32 4294901760, %v6741_v22  ;;  %v9847_v22 = vand.u32 4294901760, %v6776_v36  ;;  %v9853_v36 = vld [vmem:[#allocation4_spill] sm:$0xff] }
  0xb5   :  { %925 = vmatprep.subr.mxu1 %v9631_v3  ;;  %580 = vmatpush2.msra.mxu0 %v7030_v28 }
  0xb6   :  { %583 = vmatprep.mubr.f32.mxu0 %v6999_v20  ;;  %731 = vmatprep.mubr.f32.mxu1 %v9838_v6 }
  0xb7   :  { %927 = vmatpush1.msra.mxu1 %v6713_v12  ;;  %586 = vmatmul.mubr.f32.vlgmr.msra.gmra.mxu0 %v7088_v30  ;;  %v9841_v12 = vand.u32 4294901760, %v6738_v21  ;;  %v9846_v21 = vand.u32 4294901760, %v6766_v33  ;;  %v9852_v33 = vld [vmem:[#allocation5_spill] sm:$0xff]  ;;  %v1068_v30 = vld [vmem:[%s9568_s4 + $0x58] sm:$0xff] }
  0xb8   :  { %735 = vmatmul.mubr.f32.gmra.mxu1 %v9839_v10  ;;  %751 = vmatprep.subr.mxu0 %v9631_v3 }
  0xb9   :  { %928 = vmatprep.subr.mxu1 %v9631_v3  ;;  %755 = vmatpush1.msra.mxu0 %v9840_v11  ;;  %v7504_v11 = vand.u32 4294901760, %v1066_v59 }
  0xba   :  { %930 = vmatpush1.msra.mxu1 %v6728_v17  ;;  %756 = vmatprep.subr.mxu0 %v9631_v3  ;;  %v9843_v17 = vand.u32 4294901760, %v6744_v23  ;;  %v9848_v23 = vld [vmem:[#allocation3_spill] sm:$0xff] }
  0xbb   :  { %931 = vmatprep.subr.mxu1 %v9631_v3  ;;  %592 = vmatprep.mubr.f32.mxu0 %v7144_v0 }
  0xbc   :  { %742 = vmatprep.mubr.f32.mxu1 %v242_v8  ;;  %760 = vmatpush1.msra.mxu0 %v9841_v12  ;;  %v1067_v8 = vld [vmem:[%s9568_s4 + $0x50] sm:$0xff] }
  0xbd   :  { %933 = vmatpush1.msra.mxu1 %v6730_v18  ;;  %595 = vmatmul.mubr.f32.gmra.mxu0 %v7149_v54  ;;  %v9844_v18 = vand.u32 4294901760, %v6750_v26  ;;  %v9850_v26 = vand.u32 4294901760, %v6825_v57  ;;  %v9858_v57 = vand.u32 4294901760, %v6889_v42  ;;  %v9871_v42 = vld [vmem:[#allocation11_spill] sm:$0xff]  ;;  %v7488_v31 = vand.u32 4294901760, %v1067_v8 }
  0xbe   :  { %746 = vmatmul.mubr.f32.gmra.mxu1 %v248_v34  ;;  %761 = vmatprep.subr.mxu0 %v9631_v3 }
  0xbf   :  { %934 = vmatprep.subr.mxu1 %v9631_v3  ;;  %765 = vmatpush1.msra.mxu0 %v9842_v16  ;;  %v7502_v10 = vsub.f32 %v1067_v8, %v7488_v31  ;;  %v1065_v16 = vld [vmem:[%s9568_s4 + $0x40] sm:$0xff] }
  0xc0   :  { %936 = vmatpush1.msra.mxu1 %v6732_v19  ;;  %766 = vmatprep.subr.mxu0 %v9631_v3  ;;  %v9845_v19 = vand.u32 4294901760, %v6754_v27  ;;  %v9851_v27 = vand.u32 4294901760, %v6838_v63  ;;  %v9861_v63 = vand.u32 4294901760, %v6944_v41  ;;  %v9870_v41 = vand.u32 4294901760, %v7019_v50 }
  0xc1   :  { %937 = vmatprep.subr.mxu1 %v9631_v3  ;;  %601 = vmatprep.mubr.f32.mxu0 %v7172_v62  ;;  %v9860_v62 = vand.u32 4294901760, %v6926_v14  ;;  %v1070_v14 = vld [vmem:[%s9568_s4 + $0x68] sm:$0xff] }
  0xc2   :  { %770 = vmatpush1.msra.mxu0 %v9843_v17  ;;  %939 = vmatpush1.msra.mxu1 %v6746_v24  ;;  %v9849_v24 = vand.u32 4294901760, %v6817_v55  ;;  %v9857_v55 = vand.u32 4294901760, %v6883_v39  ;;  %v9867_v39 = vld [vmem:[#allocation9_spill] sm:$0xff] }
  0xc3   :  { %604 = vmatmul.mubr.f32.gmra.mxu0 %v7180_v35  ;;  %771 = vmatprep.subr.mxu0 %v9631_v3 }
  0xc4   :  { %940 = vmatprep.subr.mxu1 %v9631_v3  ;;  %775 = vmatpush1.msra.mxu0 %v9844_v18  ;;  %v9628_v18 = vand.u32 4294901760, %v7502_v10 }
  0xc5   :  { %942 = vmatpush1.msra.mxu1 %v6801_v48  ;;  %776 = vmatprep.subr.mxu0 %v9631_v3  ;;  %v9854_v48 = vand.u32 4294901760, %v9853_v36 }
  0xc6   :  { %943 = vmatprep.subr.mxu1 %v9631_v3  ;;  %610 = vmatprep.mubr.f32.mxu0 %v7203_v13  ;;  %v9864_v13 = vld [vmem:[#allocation7_spill] sm:$0xff] }
  0xc7   :  { %780 = vmatpush1.msra.mxu0 %v9845_v19  ;;  %945 = vmatpush1.msra.mxu1 %v6809_v51  ;;  %v9855_v51 = vld [vmem:[#allocation6_spill] sm:$0xff]  ;;  %v7515_v19 = vsub.f32 %v1066_v59, %v7504_v11 }
  0xc8   :  { %613 = vmatmul.mubr.f32.gmra.mxu0 %v7208_v40  ;;  %781 = vmatprep.subr.mxu0 %v9631_v3 }
  0xc9   :  { %946 = vmatprep.subr.mxu1 %v9631_v3  ;;  %785 = vmatpush1.msra.mxu0 %v9846_v21  ;;  %v7517_v21 = vand.u32 4294901760, %v1065_v16 }
  0xca   :  { %948 = vmatpush1.msra.mxu1 %v6811_v52  ;;  %786 = vmatprep.subr.mxu0 %v9631_v3  ;;  %v9856_v52 = vand.u32 4294901760, %v6861_v9  ;;  %v9863_v9 = vand.u32 4294901760, %v6977_v44  ;;  %v7449_v44 = vand.u32 4294901760, %v1070_v14 }
  0xcb   :  { %949 = vmatprep.subr.mxu1 %v9631_v3  ;;  %790 = vmatpush1.msra.mxu0 %v9847_v22 }
  0xcc   :  { %951 = vmatpush1.msra.mxu1 %v9848_v23  ;;  %791 = vmatprep.subr.mxu0 %v9631_v3  ;;  %v7461_v54 = vsub.f32 %v1070_v14, %v7449_v44  ;;  %v1064_v23 = vld [vmem:[%s9568_s4 + $0x38] sm:$0xff] }
  0xcd   :  { %952 = vmatprep.subr.mxu1 %v9631_v3  ;;  %795 = vmatpush1.msra.mxu0 %v9849_v24  ;;  %v1203_v24 = vsub.f32 %v7502_v10, %v9628_v18 }
  0xce   :  { %954 = vmatpush1.msra.mxu1 %v6827_v58  ;;  %796 = vmatprep.subr.mxu0 %v9631_v3  ;;  %v9859_v58 = vand.u32 4294901760, %v6903_v49  ;;  %v1071_v49 = vld [vmem:[%s9568_s4 + $0x70] sm:$0xff] }
  0xcf   :  { %955 = vmatprep.subr.mxu1 %v9631_v3  ;;  %800 = vmatpush1.msra.mxu0 %v9850_v26  ;;  %v9627_v26 = vand.u32 4294901760, %v7515_v19 }
  0xd0   :  { %957 = vmatpush1.msra.mxu1 %v6853_v7  ;;  %801 = vmatprep.subr.mxu0 %v9631_v3  ;;  %v9862_v7 = vand.u32 4294901760, %v6959_v43 }
  0xd1   :  { %958 = vmatprep.subr.mxu1 %v9631_v3  ;;  %805 = vmatpush1.msra.mxu0 %v9851_v27  ;;  %v7533_v27 = vsub.f32 %v1065_v16, %v7517_v21 }
  0xd2   :  { %960 = vmatpush1.msra.mxu1 %v9852_v33  ;;  %806 = vmatprep.subr.mxu0 %v9631_v3  ;;  %v7535_v33 = vand.u32 4294901760, %v1064_v23 }
  0xd3   :  { %961 = vmatprep.subr.mxu1 %v9631_v3  ;;  %810 = vmatpush1.msra.mxu0 %v9854_v48 }
  0xd4   :  { %963 = vmatpush1.msra.mxu1 %v9855_v51  ;;  %811 = vmatprep.subr.mxu0 %v9631_v3  ;;  %v1063_v51 = vld [vmem:[%s9568_s4 + $0x30] sm:$0xff] }
  0xd5   :  { %980 = vmatprep.subr.mxu1 %v9631_v3  ;;  %815 = vmatpush1.msra.mxu0 %v9856_v52  ;;  %v1204_v52 = vand.u32 4294901760, %v1203_v24  ;;  %v1058_v24 = vld [vmem:[%s9568_s4 + $0x8] sm:$0xff] }
  0xd6   :  { %982 = vmatpush2.msra.mxu1 %v6898_v46  ;;  %816 = vmatprep.subr.mxu0 %v9631_v3  ;;  %v9872_v46 = vand.u32 4294901760, %v7030_v28  ;;  %v1072_v28 = vld [vmem:[%s9568_s4 + $0x78] sm:$0xff] }
  0xd7   :  { %983 = vmatprep.subr.mxu1 %v9631_v3  ;;  %820 = vmatpush1.msra.mxu0 %v9857_v55  ;;  %v7430_v50 = vand.u32 4294901760, %v1072_v28  ;;  %v1210_v55 = vsub.f32 %v7515_v19, %v9627_v26 }
  0xd8   :  { %985 = vmatpush2.msra.mxu1 %v6913_v61  ;;  %821 = vmatprep.subr.mxu0 %v9631_v3  ;;  %v7438_v61 = vand.u32 4294901760, %v1071_v49 }
  0xd9   :  { %986 = vmatprep.subr.mxu1 %v9631_v3  ;;  %825 = vmatpush1.msra.mxu0 %v9858_v57  ;;  %v9626_v57 = vand.u32 4294901760, %v7533_v27 }
  0xda   :  { %988 = vmatpush2.msra.mxu1 %v6928_v15  ;;  %826 = vmatprep.subr.mxu0 %v9631_v3  ;;  %v7447_v43 = vsub.f32 %v1071_v49, %v7438_v61 }
  0xdb   :  { %989 = vmatprep.subr.mxu1 %v9631_v3  ;;  %830 = vmatpush1.msra.mxu0 %v9859_v58  ;;  %v7548_v58 = vsub.f32 %v1064_v23, %v7535_v33 }
  0xdc   :  { %991 = vmatpush2.msra.mxu1 %v6946_v38  ;;  %847 = vmatprep.subr.mxu0 %v9631_v3  ;;  %v9866_v38 = vand.u32 4294901760, %v6992_v2  ;;  %v1069_v2 = vld [vmem:[%s9568_s4 + $0x60] sm:$0xff] }
  0xdd   :  { %992 = vmatprep.subr.mxu1 %v9631_v3  ;;  %851 = vmatpush2.msra.mxu0 %v9860_v62  ;;  %v7463_v0 = vand.u32 4294901760, %v1069_v2 }
  0xde   :  { %994 = vmatpush2.msra.mxu1 %v6961_v60  ;;  %852 = vmatprep.subr.mxu0 %v9631_v3  ;;  %v7436_v60 = vsub.f32 %v1072_v28, %v7430_v50 }
  0xdf   :  { %995 = vmatprep.subr.mxu1 %v9631_v3  ;;  %856 = vmatpush2.msra.mxu0 %v9861_v63  ;;  %v7475_v35 = vsub.f32 %v1069_v2, %v7463_v0  ;;  %v7551_v63 = vand.u32 4294901760, %v1063_v51  ;;  %v1060_v2 = vld [vmem:[%s9568_s4 + $0x18] sm:$0xff] }
  0xe0   :  { %997 = vmatpush2.msra.mxu1 %v6979_v47  ;;  %857 = vmatprep.subr.mxu0 %v9631_v3  ;;  %v9865_v47 = vld [vmem:[#allocation8_spill] sm:$0xff]  ;;  %v1167_v15 = vand.u32 4294901760, %v7436_v60 }
  0xe1   :  { %998 = vmatprep.subr.mxu1 %v9631_v3  ;;  %861 = vmatpush2.msra.mxu0 %v9862_v7  ;;  %v9630_v4 = vand.u32 4294901760, %v7475_v35  ;;  %v1062_v7 = vld [vmem:[%s9568_s4 + $0x28] sm:$0xff] }
  0xe2   :  { %1000 = vmatpush2.msra.mxu1 %v6994_v32  ;;  %862 = vmatprep.subr.mxu0 %v9631_v3  ;;  %v9868_v32 = vand.u32 4294901760, %v7007_v37  ;;  %v1168_v20 = vsub.f32 %v7436_v60, %v1167_v15  ;;  %v1174_v37 = vand.u32 4294901760, %v7447_v43 }
  0xe3   :  { %1001 = vmatprep.subr.mxu1 %v9631_v3  ;;  %866 = vmatpush2.msra.mxu0 %v9863_v9  ;;  %v1189_v6 = vsub.f32 %v7475_v35, %v9630_v4  ;;  %v1211_v9 = vand.u32 4294901760, %v1210_v55 }
  0xe4   :  { %1003 = vmatpush2.msra.mxu1 %v7009_v29  ;;  %1005 = vmatprep.mubr.f32.mxu1 %v9864_v13  ;;  %v9869_v29 = vld [vmem:[#allocation10_spill] sm:$0xff]  ;;  %v1169_v40 = vand.u32 4294901760, %v1168_v20 }
  0xe5   :  { %867 = vmatprep.subr.mxu0 %v9631_v3  ;;  %1007 = vmatmul.mubr.f32.vlgmr.msra.gmra.mxu1 %v9865_v47  ;;  %v1190_v17 = vand.u32 4294901760, %v1189_v6 }
  0xe6   :  { %871 = vmatpush2.msra.mxu0 %v9866_v38  ;;  %1012 = vmatprep.mubr.f32.mxu1 %v9867_v39  ;;  %v7562_v38 = vand.u32 4294901760, %v1062_v7 }
  0xe7   :  { %872 = vmatprep.subr.mxu0 %v9631_v3  ;;  %888 = vmatprep.mubr.f32.mxu0 %v9864_v13  ;;  %v1217_v13 = vsub.f32 %v7533_v27, %v9626_v57 }
  0xe8   :  { %876 = vmatpush2.msra.mxu0 %v9868_v32  ;;  %5932 = vmatprep.subr.mxu1 %v9631_v3  ;;  %v7568_v32 = vsub.f32 %v1063_v51, %v7551_v63 }
  0xe9   :  { %877 = vmatprep.subr.mxu0 %v9631_v3  ;;  %1014 = vmatmul.mubr.f32.gmra.mxu1 %v9869_v29 }
  0xea   :  { %881 = vmatpush2.msra.mxu0 %v9870_v41  ;;  %1019 = vmatprep.mubr.f32.mxu1 %v9871_v42  ;;  %v1218_v41 = vand.u32 4294901760, %v1217_v13  ;;  %v9624_v14 = vand.u32 4294901760, %v7568_v32 }
  0xeb   :  { %882 = vmatprep.subr.mxu0 %v9631_v3  ;;  %5933 = vmatpush3.msra.mxu1 %v1169_v40 }
  0xec   :  { %886 = vmatpush2.msra.mxu0 %v9872_v46  ;;  %5934 = vmatprep.subr.mxu1 %v9631_v3  ;;  %v7579_v46 = vsub.f32 %v1062_v7, %v7562_v38 }
  0xed   :  { %890 = vmatmul.mubr.f32.vlgmr.msra.gmra.mxu0 %v9865_v47  ;;  %1021 = vmatmul.mubr.f32.gmra.mxu1 %v7158_v45  ;;  %v9625_v47 = vand.u32 4294901760, %v7548_v58 }
  0xee   :  { %895 = vmatprep.mubr.f32.mxu0 %v9867_v39  ;;  %1026 = vmatprep.mubr.f32.mxu1 %v7182_v1 }
  0xef   :  { %5897 = vmatprep.subr.mxu0 %v9631_v3 }
  0xf0   :  { %5898 = vmatpush3.msra.mxu0 %v7430_v50 }
  0xf1   :  { %897 = vmatmul.mubr.f32.gmra.mxu0 %v9869_v29  ;;  %1028 = vmatmul.mubr.f32.gmra.mxu1 %v7191_v25  ;;  %v1061_v29 = vld [vmem:[%s9568_s4 + $0x20] sm:$0xff] }
  0xf2   :  { %902 = vmatprep.mubr.f32.mxu0 %v9871_v42  ;;  %5899 = vmatprep.subr.mxu0 %v9631_v3  ;;  %v1224_v42 = vsub.f32 %v7548_v58, %v9625_v47  ;;  %v7581_v28 = vand.u32 4294901760, %v1061_v29 }
  0xf3   :  { %5900 = vmatpush3.msra.mxu0 %v7438_v61  ;;  %5964 = vmatprep.mubr.msk.f32.mxu1 %vm6615_vm1, %v9631_v3 }
  0xf4   :  { %5901 = vmatprep.subr.mxu0 %v9631_v3  ;;  %v1225_v20 = vand.u32 4294901760, %v1224_v42  ;;  %v7592_v40 = vsub.f32 %v1061_v29, %v7581_v28 }
  0xf5   :  { %904 = vmatmul.mubr.f32.gmra.mxu0 %v7158_v45  ;;  %v1175_v45 = vsub.f32 %v7447_v43, %v1174_v37 }
  0xf6   :  { %909 = vmatprep.mubr.f32.mxu0 %v7182_v1  ;;  %5902 = vmatpush3.msra.mxu0 %v7449_v44  ;;  %v1181_v1 = vand.u32 4294901760, %v7461_v54  ;;  %v9622_v6 = vand.u32 4294901760, %v7592_v40 }
  0xf7   :  { %5903 = vmatprep.subr.mxu0 %v9631_v3  ;;  %v1176_v34 = vand.u32 4294901760, %v1175_v45  ;;  %v7594_v45 = vand.u32 4294901760, %v1060_v2 }
  0xf8   :  { %5904 = vmatpush3.msra.mxu0 %v7463_v0  ;;  %v1182_v53 = vsub.f32 %v7461_v54, %v1181_v1 }
  0xf9   :  { %911 = vmatmul.mubr.f32.gmra.mxu0 %v7191_v25  ;;  %v7478_v25 = vand.u32 4294901760, %v1068_v30  ;;  %5905 = vmatprep.subr.mxu0 %v9631_v3  ;;  %v7612_v16 = vsub.f32 %v1060_v2, %v7594_v45 }
  0xfa   :  { %5935 = vmatpush3.msra.mxu1 %v1176_v34  ;;  %v1183_v5 = vand.u32 4294901760, %v1182_v53  ;;  %v1231_v34 = vsub.f32 %v7568_v32, %v9624_v14  ;;  %v1059_v53 = vld [vmem:[%s9568_s4 + $0x10] sm:$0xff]  ;;  %5929 = vmatprep.mubr.msk.f32.mxu0 %vm6615_vm1, %v9631_v3 }
  0xfb   :  { %v7492_v56 = vsub.f32 %v1068_v30, %v7478_v25  ;;  %5906 = vmatpush3.msra.mxu0 %v7478_v25  ;;  %5936 = vmatprep.subr.mxu1 %v9631_v3  ;;  %v9623_v30 = vand.u32 4294901760, %v7579_v46  ;;  %v7615_v23 = vand.u32 4294901760, %v1059_v53  ;;  %v9621_v51 = vand.u32 4294901760, %v7612_v16 }
  0xfc   :  { %5907 = vmatprep.subr.mxu0 %v9631_v3  ;;  %5937 = vmatpush3.msra.mxu1 %v1183_v5 }
  0xfd   :  { %v9629_v12 = vand.u32 4294901760, %v7492_v56  ;;  %5908 = vmatpush3.msra.mxu0 %v7488_v31  ;;  %5938 = vmatprep.subr.mxu1 %v9631_v3  ;;  %v1238_v5 = vsub.f32 %v7579_v46, %v9623_v30  ;;  %v7630_v55 = vsub.f32 %v1059_v53, %v7615_v23 }
  0xfe   :  { %5909 = vmatprep.subr.mxu0 %v9631_v3  ;;  %5939 = vmatpush3.msra.mxu1 %v1190_v17 }
  0xff   :  { %v1196_v22 = vsub.f32 %v7492_v56, %v9629_v12  ;;  %5910 = vmatpush3.msra.mxu0 %v7504_v11  ;;  %5940 = vmatprep.subr.mxu1 %v9631_v3 }
 0x100   :  { %5911 = vmatprep.subr.mxu0 %v9631_v3 }
 0x101   :  { %v1197_v48 = vand.u32 4294901760, %v1196_v22  ;;  %5912 = vmatpush3.msra.mxu0 %v7517_v21  ;;  %v1232_v22 = vand.u32 4294901760, %v1231_v34 }
 0x102   :  { %5913 = vmatprep.subr.mxu0 %v9631_v3 }
 0x103   :  { %5941 = vmatpush3.msra.mxu1 %v1197_v48  ;;  %5914 = vmatpush3.msra.mxu0 %v7535_v33  ;;  %v1245_v48 = vsub.f32 %v7592_v40, %v9622_v6 }
 0x104   :  { %5942 = vmatprep.subr.mxu1 %v9631_v3  ;;  %5915 = vmatprep.subr.mxu0 %v9631_v3 }
 0x105   :  { %5943 = vmatpush3.msra.mxu1 %v1204_v52  ;;  %5916 = vmatpush3.msra.mxu0 %v7551_v63  ;;  %v7626_v52 = vand.u32 4294901760, %v1058_v24  ;;  %v1246_v7 = vand.u32 4294901760, %v1245_v48 }
 0x106   :  { %5944 = vmatprep.subr.mxu1 %v9631_v3  ;;  %5917 = vmatprep.subr.mxu0 %v9631_v3 }
 0x107   :  { %5945 = vmatpush3.msra.mxu1 %v1211_v9  ;;  %5918 = vmatpush3.msra.mxu0 %v7562_v38  ;;  %v1252_v9 = vsub.f32 %v7612_v16, %v9621_v51  ;;  %v7641_v13 = vsub.f32 %v1058_v24, %v7626_v52 }
 0x108   :  { %5946 = vmatprep.subr.mxu1 %v9631_v3  ;;  %5919 = vmatprep.subr.mxu0 %v9631_v3 }
 0x109   :  { %5947 = vmatpush3.msra.mxu1 %v1218_v41  ;;  %5920 = vmatpush3.msra.mxu0 %v7581_v28  ;;  %v9620_v41 = vand.u32 4294901760, %v7630_v55  ;;  %v1253_v42 = vand.u32 4294901760, %v1252_v9 }
 0x10a   :  { %5948 = vmatprep.subr.mxu1 %v9631_v3  ;;  %5921 = vmatprep.subr.mxu0 %v9631_v3 }
 0x10b   :  { %5949 = vmatpush3.msra.mxu1 %v1225_v20  ;;  %5922 = vmatpush3.msra.mxu0 %v7594_v45  ;;  %v1259_v20 = vsub.f32 %v7630_v55, %v9620_v41 }
 0x10c   :  { %5950 = vmatprep.subr.mxu1 %v9631_v3  ;;  %5923 = vmatprep.subr.mxu0 %v9631_v3 }
 0x10d   :  { %5951 = vmatpush3.msra.mxu1 %v1232_v22  ;;  %5924 = vmatpush3.msra.mxu0 %v7615_v23  ;;  %v1260_v53 = vand.u32 4294901760, %v1259_v20 }
 0x10e   :  { %5952 = vmatprep.subr.mxu1 %v9631_v3  ;;  %5925 = vmatprep.subr.mxu0 %v9631_v3 }
 0x10f   :  { %5926 = vmatpush3.msra.mxu0 %v7626_v52 }
 0x110   :  { %5927 = vmatprep.subr.mxu0 %v9631_v3 }
 0x138   :  { %v444_v36 = vpop.f32.mrf.mxu1 }
 0x13a   :  { %v446_v62 = vpop.f32.mrf.mxu1 }
 0x13b   :  { %v1057_v62 = vld [vmem:[%s9568_s4] sm:$0xff] }
 0x13c   :  { %v7565_v39 = vpop.f32.mrf.mxu1  ;;  %v7643_v29 = vand.u32 4294901760, %v1057_v62 }
 0x13e   :  { %v453_v49 = vpop.f32.mrf.mxu1  ;;  %v7651_v2 = vsub.f32 %v1057_v62, %v7643_v29  ;;  %5928 = vmatpush3.msra.mxu0 %v7643_v29 }
 0x13f   :  { %v9619_v49 = vand.u32 4294901760, %v7641_v13  ;;  %5967 = vmatprep.subr.mxu0 %v9631_v3 }
 0x140   :  { %v207_v8 = vpop.f32.mrf.mxu0  ;;  %v9618_v34 = vand.u32 4294901760, %v7651_v2 }
 0x141   :  { %v7604_v59 = vadd.f32 %v444_v36, %v207_v8  ;;  %v1239_v36 = vand.u32 4294901760, %v1238_v5  ;;  %v1266_v8 = vsub.f32 %v7641_v13, %v9619_v49 }
 0x142   :  { %v209_v17 = vpop.f32.mrf.mxu0 }
 0x143   :  { %5953 = vmatpush3.msra.mxu1 %v1239_v36  ;;  %v1267_v5 = vand.u32 4294901760, %v1266_v8  ;;  %v1273_v17 = vsub.f32 %v7651_v2, %v9618_v34 }
 0x144   :  { %5954 = vmatprep.subr.mxu1 %v9631_v3 }
 0x145   :  { %5955 = vmatpush3.msra.mxu1 %v1246_v7  ;;  %v1274_v22 = vand.u32 4294901760, %v1273_v17 }
 0x146   :  { %5956 = vmatprep.subr.mxu1 %v9631_v3 }
 0x147   :  { %5957 = vmatpush3.msra.mxu1 %v1253_v42 }
 0x148   :  { %5958 = vmatprep.subr.mxu1 %v9631_v3 }
 0x149   :  { %5959 = vmatpush3.msra.mxu1 %v1260_v53 }
 0x14a   :  { %5960 = vmatprep.subr.mxu1 %v9631_v3 }
 0x14b   :  { %5961 = vmatpush3.msra.mxu1 %v1267_v5 }
 0x14c   :  { %5962 = vmatprep.subr.mxu1 %v9631_v3 }
 0x14d   :  { %5963 = vmatpush3.msra.mxu1 %v1274_v22 }
 0x14e   :  { %6002 = vmatprep.subr.mxu1 %v9631_v3 }
 0x15d   :  { %v222_v24 = vpop.f32.mrf.mxu0 }
 0x15e   :  { %v452_v36 = vadd.f32 %v7565_v39, %v222_v24 }
 0x15f   :  { %v224_v48 = vpop.f32.mrf.mxu0 }
 0x160   :  { %v458_v62 = vpop.f32.mrf.mxu1 }
 0x162   :  { %v460_v7 = vpop.f32.mrf.mxu1 }
 0x163   :  { %v237_v9 = vpop.f32.mrf.mxu0 }
 0x164   :  { %v459_v42 = vadd.f32 %v458_v62, %v237_v9 }
 0x165   :  { %v239_v20 = vpop.f32.mrf.mxu0 }
 0x166   :  { %v465_v8 = vpop.f32.mrf.mxu1 }
 0x168   :  { %v467_v53 = vpop.f32.mrf.mxu1 }
 0x169   :  { %v252_v5 = vpop.f32.mrf.mxu0 }
 0x16a   :  { %v466_v17 = vadd.f32 %v465_v8, %v252_v5 }
 0x16b   :  { %v254_v34 = vpop.f32.mrf.mxu0 }
 0x16d   :  { %v714_v49 = vpop.f32.mrf.mxu1 }
 0x16f   :  { %v716_v41 = vpop.f32.mrf.mxu1 }
 0x172   :  { %v725_v51 = vpop.f32.mrf.mxu1 }
 0x174   :  { %v727_v22 = vpop.f32.mrf.mxu1 }
 0x177   :  { %v587_v6 = vpop.f32.mrf.mxu0 }
 0x178   :  { %v588_v30 = vadd.f32 %v587_v6, %v7604_v59  ;;  %v736_v14 = vpop.f32.mrf.mxu1 }
 0x179   :  { %v589_v39 = vpop.f32.mrf.mxu0 }
 0x17a   :  { %v738_v24 = vpop.f32.mrf.mxu1  ;;  %v715_v48 = vadd.f32 %v714_v49, %v588_v30 }
 0x17d   :  { %v596_v7 = vpop.f32.mrf.mxu0 }
 0x17e   :  { %v597_v47 = vadd.f32 %v596_v7, %v452_v36  ;;  %v747_v62 = vpop.f32.mrf.mxu1 }
 0x17f   :  { %v598_v9 = vpop.f32.mrf.mxu0 }
 0x180   :  { %v749_v20 = vpop.f32.mrf.mxu1  ;;  %v726_v53 = vadd.f32 %v725_v51, %v597_v47 }
 0x183   :  { %v605_v57 = vpop.f32.mrf.mxu0 }
 0x184   :  { %v606_v24 = vadd.f32 %v605_v57, %v459_v42 }
 0x185   :  { %v607_v8 = vpop.f32.mrf.mxu0 }
 0x186   :  { %v737_v8 = vadd.f32 %v736_v14, %v606_v24 }
 0x188   :  { %v614_v34 = vpop.f32.mrf.mxu0 }
 0x189   :  { %v615_v47 = vadd.f32 %v614_v34, %v466_v17 }
 0x18a   :  { %v616_v5 = vpop.f32.mrf.mxu0 }
 0x18b   :  { %v748_v57 = vadd.f32 %v747_v62, %v615_v47 }
 0x1a5   :  { %v1008_v41 = vpop.f32.mrf.mxu1 }
 0x1a7   :  { %v1010_v26 = vpop.f32.mrf.mxu1 }
 0x1a9   :  { %v1015_v22 = vpop.f32.mrf.mxu1 }
 0x1ab   :  { %v1017_v18 = vpop.f32.mrf.mxu1 }
 0x1ad   :  { %v891_v12 = vpop.f32.mrf.mxu0  ;;  %v1022_v59 = vpop.f32.mrf.mxu1 }
 0x1ae   :  { %v892_v36 = vadd.f32 %v891_v12, %v715_v48 }
 0x1af   :  { %v893_v6 = vpop.f32.mrf.mxu0  ;;  %v1024_v39 = vpop.f32.mrf.mxu1 }
 0x1b0   :  { %v7679_v4 = vadd.f32 %v1008_v41, %v892_v36 }
 0x1b1   :  { %v898_v30 = vpop.f32.mrf.mxu0  ;;  %v1029_v49 = vpop.f32.mrf.mxu1 }
 0x1b2   :  { %v899_v7 = vadd.f32 %v898_v30, %v726_v53  ;;  %v1042_v12 = vmul.f32 %v7679_v4, %v7679_v4 }
 0x1b3   :  { %v900_v9 = vpop.f32.mrf.mxu0  ;;  %v1031_v20 = vpop.f32.mrf.mxu1 }
 0x1b4   :  { %v7677_v51 = vadd.f32 %v1015_v22, %v899_v7 }
 0x1b5   :  { %v905_v5 = vpop.f32.mrf.mxu0 }
 0x1b6   :  { %v906_v26 = vadd.f32 %v905_v5, %v737_v8  ;;  %v1043_v6 = vmul.f32 %v7677_v51, %v7677_v51  ;;  %v1033_v17 = vadd.f32 %v7677_v51, %v7679_v4 }
 0x1b7   :  { %v907_v18 = vpop.f32.mrf.mxu0 }
 0x1b8   :  { %v7683_v39 = vadd.f32 %v1022_v59, %v906_v26  ;;  %v1046_v34 = vadd.f32 %v1043_v6, %v1042_v12 }
 0x1b9   :  { %v912_v42 = vpop.f32.mrf.mxu0 }
 0x1ba   :  { %v1044_v14 = vmul.f32 %v7683_v39, %v7683_v39  ;;  %v913_v48 = vadd.f32 %v912_v42, %v748_v57  ;;  %v1034_v41 = vadd.f32 %v1033_v17, %v7683_v39 }
 0x1bb   :  { %v914_v53 = vpop.f32.mrf.mxu0 }
 0x1bc   :  { %v7692_v22 = vadd.f32 %v1029_v49, %v913_v48  ;;  %v1047_v59 = vadd.f32 %v1046_v34, %v1044_v14 }
 0x1be   :  { %v1035_v62 = vadd.f32 %v1034_v41, %v7692_v22  ;;  %v1045_v24 = vmul.f32 %v7692_v22, %v7692_v22 }
 0x1c0   :  { %v1036_v30 = vrot.slane %v1035_v62, 4  ;;  %v1048_v36 = vadd.f32 %v1047_v59, %v1045_v24 }
 0x1c2   :  { %v1037_v7 = vadd.f32 %v1036_v30, %v1035_v62  ;;  %v1049_v9 = vrot.slane %v1048_v36, 4 }
 0x1c4   :  { %v1038_v20 = vrot.slane %v1037_v7, 2  ;;  %v1050_v47 = vadd.f32 %v1049_v9, %v1048_v36  ;;  %v6616_v36 = vmov 1966171168   ;;  %v1727_v9 = vlaneseq }
 0x1c6   :  { %v1039_v8 = vadd.f32 %v1038_v20, %v1037_v7  ;;  %v1051_v5 = vrot.slane %v1050_v47, 2  ;;  %v1725_v7 = vunpack.c.l.s4 %v6616_v36 }
 0x1c8   :  { %v1040_v26 = vrot.slane %v1039_v8, 1  ;;  %v1052_v18 = vadd.f32 %v1051_v5, %v1050_v47  ;;  %v1726_v20 = vunpack.c.0.s8 %v1725_v7  ;;  %v7880_v47 = vshrl.u32 %v1727_v9, 7 }
 0x1ca   :  { %v1053_v6 = vrot.slane %v1052_v18, 1  ;;  %v1041_v49 = vadd.f32 %v1040_v26, %v1039_v8  ;;  %9886 = vst [vmem:[#allocation3_spill] sm:$0xff] %v7880_v47  ;;  %v7883_v8 = vsub.s32 %v1726_v20, %v7880_v47  ;;  %v2268_v20 = vld [vmem:[%s9572_s6 + $0xd0] sm:$0xff] }
 0x1cc   :  { %v1054_v57 = vadd.f32 %v1053_v6, %v1052_v18  ;;  %9887 = vst [vmem:[#allocation5_spill] sm:$0xff] %v7883_v8  ;;  %v1720_v6 = vld [vmem:[%s9570_s2] sm:$0x1] }
 0x1ce   :  { %v1056_v42 = vsel %vm1055_vm2, %v1041_v49, %v1054_v57 }
 0x1cf   :  { %v7698_v12 = vand.u32 4294901760, %v1056_v42 }
 0x1d1   :  { %v7701_v17 = vsub.f32 %v1056_v42, %v7698_v12  ;;  %5965 = vmatmul.mubr.f32.vlgmr.msra.gmra.mxu1 %v7698_v12  ;;  %v1741_v42 = vld [vmem:[%s9571_s3] sm:$0x1] }
 0x1d2   :  { %6003 = vmatpush3.msra.mxu1 %v7430_v50  ;;  %6034 = vmatprep.mubr.msk.f32.mxu1 %vm6615_vm1, %v9631_v3 }
 0x1d3   :  { %6004 = vmatprep.subr.mxu1 %v9631_v3  ;;  %v1156_v14 = vand.u32 4294901760, %v7701_v17 }
 0x1d4   :  { %6005 = vmatpush3.msra.mxu1 %v7438_v61 }
 0x1d5   :  { %6006 = vmatprep.subr.mxu1 %v9631_v3  ;;  %v1157_v48 = vsub.f32 %v7701_v17, %v1156_v14 }
 0x1d6   :  { %6007 = vmatpush3.msra.mxu1 %v7449_v44 }
 0x1d7   :  { %6008 = vmatprep.subr.mxu1 %v9631_v3  ;;  %v1158_v53 = vand.u32 4294901760, %v1157_v48 }
 0x1d8   :  { %6009 = vmatpush3.msra.mxu1 %v7463_v0 }
 0x1d9   :  { %6010 = vmatprep.subr.mxu1 %v9631_v3  ;;  %5930 = vmatmul.mubr.f32.vlgmr.msra.gmra.mxu0 %v1158_v53 }
 0x1da   :  { %5968 = vmatpush3.msra.mxu0 %v7436_v60  ;;  %6011 = vmatpush3.msra.mxu1 %v7478_v25  ;;  %v9874_v60 = vand.u32 4294901760, %v7492_v56 }
 0x1db   :  { %5969 = vmatprep.subr.mxu0 %v9631_v3  ;;  %6012 = vmatprep.subr.mxu1 %v9631_v3 }
 0x1dc   :  { %5970 = vmatpush3.msra.mxu0 %v7447_v43  ;;  %6013 = vmatpush3.msra.mxu1 %v7488_v31  ;;  %v9877_v43 = vand.u32 4294901760, %v7533_v27 }
 0x1dd   :  { %5971 = vmatprep.subr.mxu0 %v9631_v3  ;;  %6014 = vmatprep.subr.mxu1 %v9631_v3 }
 0x1de   :  { %5972 = vmatpush3.msra.mxu0 %v7461_v54  ;;  %6015 = vmatpush3.msra.mxu1 %v7504_v11  ;;  %v9880_v54 = vand.u32 4294901760, %v7579_v46 }
 0x1df   :  { %5973 = vmatprep.subr.mxu0 %v9631_v3  ;;  %6016 = vmatprep.subr.mxu1 %v9631_v3 }
 0x1e0   :  { %5974 = vmatpush3.msra.mxu0 %v7475_v35  ;;  %6017 = vmatpush3.msra.mxu1 %v7517_v21 }
 0x1e1   :  { %5975 = vmatprep.subr.mxu0 %v9631_v3  ;;  %6018 = vmatprep.subr.mxu1 %v9631_v3 }
 0x1e2   :  { %5976 = vmatpush3.msra.mxu0 %v7492_v56  ;;  %6019 = vmatpush3.msra.mxu1 %v7535_v33  ;;  %v1751_v56 = vld [vmem:[%s9569_s5] sm:$0xff] }
 0x1e3   :  { %5977 = vmatprep.subr.mxu0 %v9631_v3  ;;  %6020 = vmatprep.subr.mxu1 %v9631_v3 }
 0x1e4   :  { %5978 = vmatpush3.msra.mxu0 %v7502_v10  ;;  %6021 = vmatpush3.msra.mxu1 %v7551_v63 }
 0x1e5   :  { %5979 = vmatprep.subr.mxu0 %v9631_v3  ;;  %6022 = vmatprep.subr.mxu1 %v9631_v3 }
 0x1e6   :  { %5980 = vmatpush3.msra.mxu0 %v7515_v19  ;;  %6023 = vmatpush3.msra.mxu1 %v7562_v38 }
 0x1e7   :  { %5981 = vmatprep.subr.mxu0 %v9631_v3  ;;  %6024 = vmatprep.subr.mxu1 %v9631_v3 }
 0x1e8   :  { %5982 = vmatpush3.msra.mxu0 %v7533_v27  ;;  %6025 = vmatpush3.msra.mxu1 %v7581_v28 }
 0x1e9   :  { %5983 = vmatprep.subr.mxu0 %v9631_v3  ;;  %6026 = vmatprep.subr.mxu1 %v9631_v3 }
 0x1ea   :  { %5984 = vmatpush3.msra.mxu0 %v7548_v58  ;;  %6027 = vmatpush3.msra.mxu1 %v7594_v45 }
 0x1eb   :  { %5985 = vmatprep.subr.mxu0 %v9631_v3  ;;  %6028 = vmatprep.subr.mxu1 %v9631_v3 }
 0x1ec   :  { %5986 = vmatpush3.msra.mxu0 %v7568_v32  ;;  %6029 = vmatpush3.msra.mxu1 %v7615_v23 }
 0x1ed   :  { %5987 = vmatprep.subr.mxu0 %v9631_v3  ;;  %6030 = vmatprep.subr.mxu1 %v9631_v3 }
 0x1ee   :  { %5988 = vmatpush3.msra.mxu0 %v7579_v46  ;;  %6031 = vmatpush3.msra.mxu1 %v7626_v52 }
 0x1ef   :  { %5989 = vmatprep.subr.mxu0 %v9631_v3  ;;  %6032 = vmatprep.subr.mxu1 %v9631_v3 }
 0x1f0   :  { %5990 = vmatpush3.msra.mxu0 %v7592_v40  ;;  %6033 = vmatpush3.msra.mxu1 %v7643_v29 }
 0x1f1   :  { %5991 = vmatprep.subr.mxu0 %v9631_v3  ;;  %6035 = vmatmul.mubr.f32.vlgmr.msra.gmra.mxu1 %v1156_v14 }
 0x1f2   :  { %6072 = vmatprep.subr.mxu1 %v9631_v3  ;;  %5992 = vmatpush3.msra.mxu0 %v7612_v16 }
 0x1f3   :  { %6073 = vmatpush3.msra.mxu1 %v7430_v50  ;;  %5993 = vmatprep.subr.mxu0 %v9631_v3  ;;  %v9873_v50 = vand.u32 4294901760, %v7475_v35  ;;  %v9883_v35 = vand.u32 4294901760, %v7630_v55 }
 0x1f4   :  { %6074 = vmatprep.subr.mxu1 %v9631_v3  ;;  %5994 = vmatpush3.msra.mxu0 %v7630_v55 }
 0x1f5   :  { %6075 = vmatpush3.msra.mxu1 %v7438_v61  ;;  %5995 = vmatprep.subr.mxu0 %v9631_v3  ;;  %v9875_v61 = vand.u32 4294901760, %v7502_v10  ;;  %v7868_v10 = vand.u32 4294901760, %v1751_v56 }
 0x1f6   :  { %6076 = vmatprep.subr.mxu1 %v9631_v3  ;;  %5996 = vmatpush3.msra.mxu0 %v7641_v13 }
 0x1f7   :  { %6077 = vmatpush3.msra.mxu1 %v7449_v44  ;;  %5997 = vmatprep.subr.mxu0 %v9631_v3  ;;  %v9878_v44 = vand.u32 4294901760, %v7548_v58 }
 0x1f8   :  { %6078 = vmatprep.subr.mxu1 %v9631_v3  ;;  %5998 = vmatpush3.msra.mxu0 %v7651_v2 }
 0x1f9   :  { %5999 = vmatprep.mubr.msk.f32.mxu0 %vm6615_vm1, %v9631_v3  ;;  %6079 = vmatpush3.msra.mxu1 %v7463_v0  ;;  %v9881_v0 = vand.u32 4294901760, %v7592_v40 }
 0x1fa   :  { %6000 = vmatmul.mubr.f32.vlgmr.msra.gmra.mxu0 %v7701_v17  ;;  %6037 = vmatprep.subr.mxu0 %v9631_v3  ;;  %v7894_v17 = vsub.s32 0, %v7880_v47 }
 0x1fb   :  { %6080 = vmatprep.subr.mxu1 %v9631_v3  ;;  %6038 = vmatpush3.msra.mxu0 %v1167_v15  ;;  %v9876_v15 = vand.u32 4294901760, %v7515_v19 }
 0x1fc   :  { %6081 = vmatpush3.msra.mxu1 %v7478_v25  ;;  %6039 = vmatprep.subr.mxu0 %v9631_v3  ;;  %v9884_v25 = vand.u32 4294901760, %v7641_v13  ;;  %9888 = vst [vmem:[#allocation4_spill] sm:$0xff] %v7894_v17 }
 0x1fd   :  { %6082 = vmatprep.subr.mxu1 %v9631_v3  ;;  %6040 = vmatpush3.msra.mxu0 %v1174_v37  ;;  %v9879_v37 = vand.u32 4294901760, %v7568_v32 }
 0x1fe   :  { %6083 = vmatpush3.msra.mxu1 %v7488_v31  ;;  %6041 = vmatprep.subr.mxu0 %v9631_v3  ;;  %v9885_v31 = vand.u32 4294901760, %v7651_v2 }
 0x1ff   :  { %6084 = vmatprep.subr.mxu1 %v9631_v3  ;;  %6042 = vmatpush3.msra.mxu0 %v1181_v1  ;;  %v9882_v1 = vand.u32 4294901760, %v7612_v16 }
 0x200   :  { %6085 = vmatpush3.msra.mxu1 %v7504_v11  ;;  %6043 = vmatprep.subr.mxu0 %v9631_v3  ;;  %v7871_v11 = vsub.f32 %v1751_v56, %v7868_v10  ;;  %v2256_v56 = vld [vmem:[%s9572_s6 + $0x70] sm:$0xff] }
 0x201   :  { %6086 = vmatprep.subr.mxu1 %v9631_v3  ;;  %6044 = vmatpush3.msra.mxu0 %v9873_v50 }
 0x202   :  { %6087 = vmatpush3.msra.mxu1 %v7517_v21  ;;  %6045 = vmatprep.subr.mxu0 %v9631_v3  ;;  %v1865_v19 = vand.u32 4294901760, %v7871_v11 }
 0x203   :  { %6088 = vmatprep.subr.mxu1 %v9631_v3  ;;  %6046 = vmatpush3.msra.mxu0 %v9874_v60 }
 0x204   :  { %6089 = vmatpush3.msra.mxu1 %v7535_v33  ;;  %6047 = vmatprep.subr.mxu0 %v9631_v3  ;;  %v1866_v21 = vsub.f32 %v7871_v11, %v1865_v19 }
 0x205   :  { %6090 = vmatprep.subr.mxu1 %v9631_v3  ;;  %6048 = vmatpush3.msra.mxu0 %v9875_v61 }
 0x206   :  { %6091 = vmatpush3.msra.mxu1 %v7551_v63  ;;  %6049 = vmatprep.subr.mxu0 %v9631_v3  ;;  %v1867_v27 = vand.u32 4294901760, %v1866_v21 }
 0x207   :  { %6092 = vmatprep.subr.mxu1 %v9631_v3  ;;  %6050 = vmatpush3.msra.mxu0 %v9876_v15 }
 0x208   :  { %6093 = vmatpush3.msra.mxu1 %v7562_v38  ;;  %6051 = vmatprep.subr.mxu0 %v9631_v3 }
 0x209   :  { %6094 = vmatprep.subr.mxu1 %v9631_v3  ;;  %6052 = vmatpush3.msra.mxu0 %v9877_v43 }
 0x20a   :  { %6095 = vmatpush3.msra.mxu1 %v7581_v28  ;;  %6053 = vmatprep.subr.mxu0 %v9631_v3 }
 0x20b   :  { %6096 = vmatprep.subr.mxu1 %v9631_v3  ;;  %6054 = vmatpush3.msra.mxu0 %v9878_v44 }
 0x20c   :  { %6097 = vmatpush3.msra.mxu1 %v7594_v45  ;;  %6055 = vmatprep.subr.mxu0 %v9631_v3 }
 0x20d   :  { %6098 = vmatprep.subr.mxu1 %v9631_v3  ;;  %6056 = vmatpush3.msra.mxu0 %v9879_v37  ;;  %v2273_v37 = vld [vmem:[%s9572_s6 + $0xf8] sm:$0xff] }
 0x20e   :  { %6099 = vmatpush3.msra.mxu1 %v7615_v23  ;;  %6057 = vmatprep.subr.mxu0 %v9631_v3 }
 0x20f   :  { %6100 = vmatprep.subr.mxu1 %v9631_v3  ;;  %6058 = vmatpush3.msra.mxu0 %v9880_v54  ;;  %v7917_v54 = vand.u32 4294901760, %v2273_v37 }
 0x210   :  { %6101 = vmatpush3.msra.mxu1 %v7626_v52  ;;  %6059 = vmatprep.subr.mxu0 %v9631_v3 }
 0x211   :  { %6102 = vmatprep.subr.mxu1 %v9631_v3  ;;  %6060 = vmatpush3.msra.mxu0 %v9881_v0  ;;  %v2257_v0 = vld [vmem:[%s9572_s6 + $0x78] sm:$0xff] }
 0x212   :  { %6103 = vmatpush3.msra.mxu1 %v7643_v29  ;;  %6104 = vmatprep.mubr.msk.f32.mxu1 %vm6615_vm1, %v9631_v3 }
 0x213   :  { %6061 = vmatprep.subr.mxu0 %v9631_v3  ;;  %6105 = vmatmul.mubr.f32.vlgmr.msra.gmra.mxu1 %v7698_v12 }
 0x214   :  { %6062 = vmatpush3.msra.mxu0 %v9882_v1  ;;  %6069 = vmatprep.mubr.msk.f32.mxu0 %vm6615_vm1, %v9631_v3  ;;  %v7922_v1 = vand.u32 4294901760, %v2257_v0 }
 0x215   :  { %6063 = vmatprep.subr.mxu0 %v9631_v3  ;;  %6112 = vmatprep.subr.mxu1 %v9631_v3 }
 0x216   :  { %6064 = vmatpush3.msra.mxu0 %v9883_v35  ;;  %6114 = vmatprep.mubr.msk.f32.mxu1 %vm6615_vm1, %v9631_v3  ;;  %v2272_v35 = vld [vmem:[%s9572_s6 + $0xf0] sm:$0xff] }
 0x217   :  { %6065 = vmatprep.subr.mxu0 %v9631_v3  ;;  %6113 = vmatpush3.msra.mxu1 %v1867_v27 }
 0x218   :  { %6066 = vmatpush3.msra.mxu0 %v9884_v25  ;;  %6122 = vmatprep.subr.mxu1 %v9631_v3  ;;  %v7928_v25 = vsub.f32 %v2273_v37, %v7917_v54 }
 0x219   :  { %6067 = vmatprep.subr.mxu0 %v9631_v3 }
 0x21a   :  { %6068 = vmatpush3.msra.mxu0 %v9885_v31  ;;  %9889 = vst [vmem:[#allocation6_spill] sm:$0xff] %v7928_v25  ;;  %v7930_v31 = vand.u32 4294901760, %v2272_v35  ;;  %v9649_v21 = vand.u32 4294901760, %v7928_v25 }
 0x21b   :  { %6070 = vmatmul.mubr.f32.vlgmr.msra.gmra.mxu0 %v7698_v12  ;;  %6107 = vmatprep.subr.mxu0 %v9631_v3 }
 0x21c   :  { %6109 = vmatprep.mubr.msk.f32.mxu0 %vm6615_vm1, %v9631_v3  ;;  %6108 = vmatpush3.msra.mxu0 %v7868_v10  ;;  %v7947_v27 = vsub.f32 %v2272_v35, %v7930_v31  ;;  %v2266_v35 = vld [vmem:[%s9572_s6 + $0xc0] sm:$0xff] }
 0x21d   :  { %6117 = vmatprep.subr.mxu0 %v9631_v3 }
 0x291   :  { %v1311_v33 = vpop.f32.mrf.mxu1 }
 0x293   :  { %v5966_v58 = vpop.f32.mrf.mxu1 }
 0x294   :  { %v2255_v58 = vld [vmem:[%s9572_s6 + $0x68] sm:$0xff] }
 0x299   :  { %v1160_v63 = vpop.f32.mrf.mxu0 }
 0x29a   :  { %v1312_v16 = vadd.f32 %v1311_v33, %v1160_v63 }
 0x29b   :  { %v5931_v38 = vpop.f32.mrf.mxu0 }
 0x2b1   :  { %v1504_v32 = vpop.f32.mrf.mxu1 }
 0x2b3   :  { %v6036_v46 = vpop.f32.mrf.mxu1 }
 0x2b4   :  { %v2270_v46 = vld [vmem:[%s9572_s6 + $0xe0] sm:$0xff] }
 0x2ba   :  { %v1415_v28 = vpop.f32.mrf.mxu0 }
 0x2bb   :  { %v1416_v52 = vadd.f32 %v1415_v28, %v1312_v16  ;;  %v2563_v28 = vsub.f32 %v7928_v25, %v9649_v21  ;;  %v7972_v16 = vand.u32 4294901760, %v2270_v46 }
 0x2bc   :  { %v6001_v40 = vpop.f32.mrf.mxu0 }
 0x2bd   :  { %v1505_v55 = vadd.f32 %v1504_v32, %v1416_v52  ;;  %v7959_v32 = vand.u32 4294901760, %v2255_v58  ;;  %v9646_v40 = vand.u32 4294901760, %v7947_v27 }
 0x2d3   :  { %v1710_v45 = vpop.f32.mrf.mxu1 }
 0x2d5   :  { %v6106_v23 = vpop.f32.mrf.mxu1 }
 0x2d6   :  { %v2254_v23 = vld [vmem:[%s9572_s6 + $0x60] sm:$0xff] }
 0x2db   :  { %v1623_v13 = vpop.f32.mrf.mxu0 }
 0x2dc   :  { %v1624_v29 = vadd.f32 %v1623_v13, %v1505_v55  ;;  %v7983_v13 = vsub.f32 %v2255_v58, %v7959_v32 }
 0x2dd   :  { %v6071_v2 = vpop.f32.mrf.mxu0 }
 0x2de   :  { %v1711_v34 = vadd.f32 %v1710_v45, %v1624_v29  ;;  %v7985_v29 = vand.u32 4294901760, %v2254_v23  ;;  %v2269_v2 = vld [vmem:[%s9572_s6 + $0xd8] sm:$0xff]  ;;  %v9642_v7 = vand.u32 4294901760, %v7983_v13 }
 0x2e0   :  { %v1714_v41 = vmul.f32 0.001953125, %v1711_v34  ;;  %v2564_v34 = vand.u32 4294901760, %v2563_v28  ;;  %v8007_v9 = vsub.f32 %v2254_v23, %v7985_v29  ;;  %v2250_v28 = vld [vmem:[%s9572_s6 + $0x40] sm:$0xff] }
 0x2e2   :  { %v1715_v59 = vmul.f32 %v1714_v41, %v1714_v41 }
 0x2e4   :  { %v1717_v62 = vrot.slane %v1715_v59, 7 }
 0x2e6   :  { %v1719_v24 = vsub.f32 %v1714_v41, %v1717_v62  ;;  %v7996_v62 = vsub.f32 %v2270_v46, %v7972_v16 }
 0x2e8   :  { %v1721_v30 = vadd.f32 1e-05, %v1719_v24  ;;  %v2253_v24 = vld [vmem:[%s9572_s6 + $0x58] sm:$0xff] }
 0x2ea   :  { %6609 = vrsqrt.f32 %v1721_v30 }
 0x2f7   :  { %v6610_v5 = vpop.eup %6609 }
 0x2f8   :  { %v1730_v26 = vrot.slane %v6610_v5, %v7883_v8 }
 0x2fa   :  { %v1731_v18 = vcombine.high %v1730_v26, %v1730_v26 }
 0x2fc   :  { %v1738_v49 = vrot.slane %v1731_v18, %v7883_v8  ;;  %v9641_v18 = vand.u32 4294901760, %v7996_v62 }
 0x2fe   :  { %v1740_v57 = vmul.f32 %v1738_v49, %v1720_v6  ;;  %v8017_v6 = vand.u32 4294901760, %v2269_v2  ;;  %v2252_v49 = vld [vmem:[%s9572_s6 + $0x50] sm:$0xff] }
 0x300   :  { %v1742_v12 = vmul.f32 %v1740_v57, %v1714_v41  ;;  %v2570_v41 = vsub.f32 %v7947_v27, %v9646_v40 }
 0x302   :  { %v1743_v14 = vsub.f32 %v1741_v42, %v1742_v12  ;;  %v2571_v5 = vand.u32 4294901760, %v2570_v41  ;;  %v2465_v42 = vsub.f32 %v7983_v13, %v9642_v7  ;;  %v9639_v12 = vand.u32 4294901760, %v8007_v9 }
 0x304   :  { %v1748_v48 = vrot.slane %v1743_v14, %v7894_v17  ;;  %v8026_v14 = vand.u32 4294901760, %v2253_v24 }
 0x306   :  { %v1750_v53 = vsel %vm1055_vm2, %v1740_v57, %v1748_v48  ;;  %v2267_v48 = vld [vmem:[%s9572_s6 + $0xc8] sm:$0xff]  ;;  %v8047_v37 = vsub.f32 %v2253_v24, %v8026_v14 }
 0x307   :  { %v1754_v50 = vsel %vm1752_vm3, %v1750_v53, 0  ;;  %v8059_v46 = vand.u32 4294901760, %v2267_v48 }
 0x308   :  { %v1822_v60 = vand.u32 4294901760, %v1754_v50 }
 0x30a   :  { %v1823_v61 = vsub.f32 %v1754_v50, %v1822_v60  ;;  %6115 = vmatmul.mubr.f32.vlgmr.msra.gmra.mxu1 %v1822_v60  ;;  %v2584_v50 = vsub.f32 %v7996_v62, %v9641_v18 }
 0x30b   :  { %6123 = vmatpush3.msra.mxu1 %v7868_v10  ;;  %6124 = vmatprep.mubr.msk.f32.mxu1 %vm6615_vm1, %v9631_v3 }
 0x30c   :  { %v1824_v15 = vand.u32 4294901760, %v1823_v61  ;;  %6132 = vmatprep.subr.mxu1 %v9631_v3 }
 0x30e   :  { %6125 = vmatmul.mubr.f32.vlgmr.msra.gmra.mxu1 %v1824_v15  ;;  %v1825_v43 = vsub.f32 %v1823_v61, %v1824_v15  ;;  %v2251_v15 = vld [vmem:[%s9572_s6 + $0x48] sm:$0xff] }
 0x30f   :  { %6133 = vmatpush3.msra.mxu1 %v7868_v10  ;;  %6134 = vmatprep.mubr.msk.f32.mxu1 %vm6615_vm1, %v9631_v3  ;;  %v7937_v10 = vsub.f32 %v2257_v0, %v7922_v1  ;;  %v8049_v0 = vand.u32 4294901760, %v2252_v49 }
 0x310   :  { %v1826_v44 = vand.u32 4294901760, %v1825_v43  ;;  %5443 = vmatprep.subr.mxu1 %v2564_v34  ;;  %v2466_v43 = vand.u32 4294901760, %v2465_v42  ;;  %v8069_v34 = vand.u32 4294901760, %v2251_v15 }
 0x311   :  { %v9647_v63 = vand.u32 4294901760, %v7937_v10 }
 0x312   :  { %6110 = vmatmul.mubr.f32.vlgmr.msra.gmra.mxu0 %v1826_v44  ;;  %6135 = vmatmul.mubr.f32.vlgmr.msra.gmra.mxu1 %v1822_v60  ;;  %v2472_v44 = vsub.f32 %v8007_v9, %v9639_v12  ;;  %v2247_v12 = vld [vmem:[%s9572_s6 + $0x28] sm:$0xff] }
 0x313   :  { %6118 = vmatpush3.msra.mxu0 %v7871_v11  ;;  %6119 = vmatprep.mubr.msk.f32.mxu0 %vm6615_vm1, %v9631_v3  ;;  %v7939_v11 = vand.u32 4294901760, %v2256_v56  ;;  %v2451_v52 = vsub.f32 %v7937_v10, %v9647_v63 }
 0x314   :  { %6127 = vmatprep.subr.mxu0 %v9631_v3  ;;  %v2473_v23 = vand.u32 4294901760, %v2472_v44 }
 0x315   :  { %v7957_v38 = vsub.f32 %v2256_v56, %v7939_v11  ;;  %v2452_v30 = vand.u32 4294901760, %v2451_v52  ;;  %v2585_v56 = vand.u32 4294901760, %v2584_v50  ;;  %v9635_v52 = vand.u32 4294901760, %v8047_v37 }
 0x316   :  { %6120 = vmatmul.mubr.f32.vlgmr.msra.gmra.mxu0 %v1823_v61  ;;  %v8037_v61 = vand.u32 4294901760, %v2268_v20 }
 0x317   :  { %6128 = vmatpush3.msra.mxu0 %v1865_v19  ;;  %6129 = vmatprep.mubr.msk.f32.mxu0 %vm6615_vm1, %v9631_v3  ;;  %v2271_v19 = vld [vmem:[%s9572_s6 + $0xe8] sm:$0xff]  ;;  %v9645_v55 = vand.u32 4294901760, %v7957_v38 }
 0x318   :  { %5399 = vmatprep.subr.mxu0 %v7917_v54  ;;  %v7949_v33 = vand.u32 4294901760, %v2271_v19  ;;  %5444 = vmatpush3.msra.mxu1 %v2452_v30  ;;  %v8057_v58 = vsub.f32 %v2268_v20, %v8037_v61  ;;  %v8077_v30 = vsub.f32 %v2267_v48, %v8059_v46  ;;  %v2479_v20 = vsub.f32 %v8047_v37, %v9635_v52 }
 0x319   :  { %v2458_v36 = vsub.f32 %v7957_v38, %v9645_v55  ;;  %5445 = vmatprep.subr.mxu1 %v2571_v5 }
 0x31a   :  { %6130 = vmatmul.mubr.f32.vlgmr.msra.gmra.mxu0 %v1822_v60  ;;  %v7970_v45 = vsub.f32 %v2271_v19, %v7949_v33  ;;  %v8035_v60 = vsub.f32 %v2269_v2, %v8017_v6  ;;  %v8067_v2 = vsub.f32 %v2252_v49, %v8049_v0  ;;  %v9634_v24 = vand.u32 4294901760, %v8057_v58 }
 0x31b   :  { %5400 = vmatpush3.msra.mxu0 %v7922_v1  ;;  %v2459_v57 = vand.u32 4294901760, %v2458_v36  ;;  %v8079_v36 = vand.u32 4294901760, %v2266_v35  ;;  %v8089_v49 = vand.u32 4294901760, %v2250_v28 }
 0x31c   :  { %5401 = vmatprep.subr.mxu0 %v7930_v31  ;;  %v9644_v59 = vand.u32 4294901760, %v7970_v45  ;;  %v9636_v19 = vand.u32 4294901760, %v8035_v60  ;;  %v9633_v5 = vand.u32 4294901760, %v8067_v2  ;;  %v2598_v48 = vsub.f32 %v8057_v58, %v9634_v24 }
 0x31d   :  { %5402 = vmatpush3.msra.mxu0 %v7939_v11  ;;  %5446 = vmatpush3.msra.mxu1 %v2459_v57  ;;  %v2265_v57 = vld [vmem:[%s9572_s6 + $0xb8] sm:$0xff]  ;;  %v8100_v50 = vsub.f32 %v2266_v35, %v8079_v36  ;;  %v2264_v35 = vld [vmem:[%s9572_s6 + $0xb0] sm:$0xff] }
 0x31e   :  { %5403 = vmatprep.subr.mxu0 %v7949_v33  ;;  %v2577_v26 = vsub.f32 %v7970_v45, %v9644_v59  ;;  %v2591_v41 = vsub.f32 %v8035_v60, %v9636_v19  ;;  %v2486_v44 = vsub.f32 %v8067_v2, %v9633_v5  ;;  %v8121_v5 = vand.u32 4294901760, %v2265_v57 }
 0x31f   :  { %5404 = vmatpush3.msra.mxu0 %v7959_v32  ;;  %9890 = vst [vmem:[#allocation7_spill] sm:$0xff] %v8100_v50  ;;  %v9640_v3 = vand.u32 4294901760, %v8100_v50 }
 0x320   :  { %5405 = vmatprep.subr.mxu0 %v7972_v16  ;;  %v2578_v53 = vand.u32 4294901760, %v2577_v26  ;;  %v8087_v26 = vsub.f32 %v2251_v15, %v8069_v34  ;;  %v2592_v42 = vand.u32 4294901760, %v2591_v41  ;;  %v2249_v15 = vld [vmem:[%s9572_s6 + $0x38] sm:$0xff]  ;;  %v2599_v41 = vand.u32 4294901760, %v2598_v48 }
 0x321   :  { %5406 = vmatpush3.msra.mxu0 %v7985_v29  ;;  %v2487_v24 = vand.u32 4294901760, %v2486_v44  ;;  %v8127_v19 = vand.u32 4294901760, %v2249_v15  ;;  %v8138_v44 = vand.u32 4294901760, %v2264_v35 }
 0x322   :  { %5407 = vmatprep.subr.mxu0 %v8017_v6  ;;  %5447 = vmatprep.subr.mxu1 %v2578_v53  ;;  %v9637_v53 = vand.u32 4294901760, %v8077_v30 }
 0x323   :  { %5408 = vmatpush3.msra.mxu0 %v8026_v14  ;;  %5448 = vmatpush3.msra.mxu1 %v2466_v43  ;;  %v2480_v43 = vand.u32 4294901760, %v2479_v20 }
 0x324   :  { %5409 = vmatprep.subr.mxu0 %v8037_v61  ;;  %5449 = vmatprep.subr.mxu1 %v2585_v56  ;;  %v9638_v56 = vand.u32 4294901760, %v8087_v26  ;;  %v2605_v20 = vsub.f32 %v8077_v30, %v9637_v53  ;;  %v2612_v53 = vsub.f32 %v8100_v50, %v9640_v3  ;;  %v2262_v3 = vld [vmem:[%s9572_s6 + $0xa0] sm:$0xff] }
 0x325   :  { %5410 = vmatpush3.msra.mxu0 %v8049_v0  ;;  %5450 = vmatpush3.msra.mxu1 %v2473_v23  ;;  %v8111_v23 = vsub.f32 %v2250_v28, %v8089_v49  ;;  %v8179_v63 = vand.u32 4294901760, %v2262_v3 }
 0x326   :  { %5411 = vmatprep.subr.mxu0 %v8059_v46  ;;  %5451 = vmatprep.subr.mxu1 %v2592_v42  ;;  %v2493_v28 = vsub.f32 %v8087_v26, %v9638_v56  ;;  %v2248_v42 = vld [vmem:[%s9572_s6 + $0x30] sm:$0xff]  ;;  %v2606_v48 = vand.u32 4294901760, %v2605_v20  ;;  %v2263_v56 = vld [vmem:[%s9572_s6 + $0xa8] sm:$0xff]  ;;  %v2613_v18 = vand.u32 4294901760, %v2612_v53  ;;  %v8170_v53 = vand.u32 4294901760, %v2247_v12 }
 0x327   :  { %5412 = vmatpush3.msra.mxu0 %v8069_v34  ;;  %9891 = vst [vmem:[#allocation8_spill] sm:$0xff] %v8111_v23  ;;  %5452 = vmatpush3.msra.mxu1 %v2480_v43  ;;  %v9643_v52 = vand.u32 4294901760, %v8111_v23  ;;  %v8136_v43 = vsub.f32 %v2265_v57, %v8121_v5  ;;  %v8151_v57 = vsub.f32 %v2249_v15, %v8127_v19  ;;  %v2246_v15 = vld [vmem:[%s9572_s6 + $0x20] sm:$0xff]  ;;  %v8168_v55 = vand.u32 4294901760, %v2263_v56 }
 0x328   :  { %5413 = vmatprep.subr.mxu0 %v8079_v36  ;;  %5453 = vmatprep.subr.mxu1 %v2599_v41  ;;  %v2494_v41 = vand.u32 4294901760, %v2493_v28  ;;  %v8161_v28 = vand.u32 4294901760, %v2248_v42  ;;  %9895 = vst [vmem:[#allocation12_spill] sm:$0xff] %v8170_v53  ;;  %9897 = vst [vmem:[#allocation14_spill] sm:$0xff] %v8179_v63 }
 0x329   :  { %5414 = vmatpush3.msra.mxu0 %v8089_v49  ;;  %9892 = vst [vmem:[#allocation9_spill] sm:$0xff] %v8136_v43  ;;  %5454 = vmatpush3.msra.mxu1 %v2487_v24  ;;  %v2500_v20 = vsub.f32 %v8111_v23, %v9643_v52  ;;  %9893 = vst [vmem:[#allocation10_spill] sm:$0xff] %v8151_v57  ;;  %v9648_v7 = vand.u32 4294901760, %v8136_v43  ;;  %v8159_v24 = vsub.f32 %v2264_v35, %v8138_v44 }
 0x32a   :  { %5415 = vmatprep.subr.mxu0 %v8121_v5  ;;  %5455 = vmatprep.subr.mxu1 %v2606_v48  ;;  %v9650_v59 = vand.u32 4294901760, %v8151_v57  ;;  %v8177_v40 = vsub.f32 %v2248_v42, %v8161_v28  ;;  %v2261_v42 = vld [vmem:[%s9572_s6 + $0x98] sm:$0xff] }
 0x32b   :  { %5416 = vmatpush3.msra.mxu0 %v8127_v19  ;;  %9894 = vst [vmem:[#allocation11_spill] sm:$0xff] %v8159_v24  ;;  %5456 = vmatpush3.msra.mxu1 %v2494_v41  ;;  %v2501_v52 = vand.u32 4294901760, %v2500_v20  ;;  %v2619_v35 = vsub.f32 %v8136_v43, %v9648_v7  ;;  %v9657_v48 = vand.u32 4294901760, %v8159_v24  ;;  %v8189_v20 = vsub.f32 %v2247_v12, %v8170_v53  ;;  %v2245_v12 = vld [vmem:[%s9572_s6 + $0x18] sm:$0xff] }
 0x32c   :  { %5417 = vmatprep.subr.mxu0 %v8138_v44  ;;  %5457 = vmatprep.subr.mxu1 %v2613_v18  ;;  %9896 = vst [vmem:[#allocation13_spill] sm:$0xff] %v8177_v40  ;;  %v2507_v41 = vsub.f32 %v8151_v57, %v9650_v59  ;;  %v8186_v18 = vsub.f32 %v2263_v56, %v8168_v55  ;;  %v8191_v7 = vand.u32 4294901760, %v2246_v15  ;;  %v9664_v59 = vand.u32 4294901760, %v8177_v40 }
 0x32d   :  { %5418 = vmatpush3.msra.mxu0 %v8161_v28  ;;  %5458 = vmatpush3.msra.mxu1 %v2501_v52  ;;  %9899 = vst [vmem:[#allocation16_spill] sm:$0xff] %v8189_v20  ;;  %v2620_v21 = vand.u32 4294901760, %v2619_v35  ;;  %v2626_v52 = vsub.f32 %v8159_v24, %v9657_v48  ;;  %v8202_v56 = vsub.f32 %v2262_v3, %v8179_v63  ;;  %v2260_v48 = vld [vmem:[%s9572_s6 + $0x90] sm:$0xff]  ;;  %v8221_v57 = vand.u32 4294901760, %v2261_v42 }
 0x32e   :  { %9898 = vst [vmem:[#allocation15_spill] sm:$0xff] %v8186_v18  ;;  %9900 = vst [vmem:[#allocation17_spill] sm:$0xff] %v8191_v7  ;;  %5419 = vmatprep.subr.mxu0 %v8168_v55  ;;  %v2508_v8 = vand.u32 4294901760, %v2507_v41  ;;  %v8211_v43 = vsub.f32 %v2246_v15, %v8191_v7  ;;  %v2514_v24 = vsub.f32 %v8177_v40, %v9664_v59  ;;  %v9904_v15 = vand.u32 4294901760, %v8186_v18  ;;  %v2244_v59 = vld [vmem:[%s9572_s6 + $0x10] sm:$0xff] }
 0x32f   :  { %9901 = vst [vmem:[#allocation18_spill] sm:$0xff] %v8202_v56  ;;  %5420 = vmatpush3.msra.mxu0 %v8170_v53  ;;  %5459 = vmatprep.subr.mxu1 %v2620_v21  ;;  %v2627_v3 = vand.u32 4294901760, %v2626_v52  ;;  %9903 = vst [vmem:[#allocation20_spill] sm:$0xff] %v8221_v57  ;;  %v9905_v23 = vand.u32 4294901760, %v8189_v20  ;;  %v2243_v52 = vld [vmem:[%s9572_s6 + $0x8] sm:$0xff] }
 0x330   :  { %9902 = vst [vmem:[#allocation19_spill] sm:$0xff] %v8211_v43  ;;  %5421 = vmatprep.subr.mxu0 %v8179_v63  ;;  %5460 = vmatpush3.msra.mxu1 %v2508_v8  ;;  %v2633_v35 = vsub.f32 %v8186_v18, %v9904_v15  ;;  %v8231_v63 = vand.u32 4294901760, %v2245_v12  ;;  %v2515_v41 = vand.u32 4294901760, %v2514_v24  ;;  %v9907_v8 = vand.u32 4294901760, %v8202_v56 }
 0x331   :  { %5422 = vmatpush3.msra.mxu0 %v8191_v7  ;;  %v2521_v21 = vsub.f32 %v8189_v20, %v9905_v23  ;;  %5461 = vmatprep.subr.mxu1 %v2627_v3  ;;  %v8240_v15 = vsub.f32 %v2261_v42, %v8221_v57  ;;  %v8242_v18 = vand.u32 4294901760, %v2260_v48  ;;  %v2259_v23 = vld [vmem:[%s9572_s6 + $0x88] sm:$0xff]  ;;  %v9909_v20 = vand.u32 4294901760, %v8211_v43 }
 0x332   :  { %9906 = vst [vmem:[#allocation21_spill] sm:$0xff] %v8231_v63  ;;  %v2640_v40 = vsub.f32 %v8202_v56, %v9907_v8  ;;  %5423 = vmatprep.subr.mxu0 %v8221_v57  ;;  %v2634_v24 = vand.u32 4294901760, %v2633_v35  ;;  %v8255_v42 = vsub.f32 %v2245_v12, %v8231_v63  ;;  %v2258_v56 = vld [vmem:[%s9572_s6 + $0x80] sm:$0xff]  ;;  %5462 = vmatpush3.msra.mxu1 %v2515_v41 }
 0x333   :  { %9908 = vst [vmem:[#allocation22_spill] sm:$0xff] %v8240_v15  ;;  %v2522_v3 = vand.u32 4294901760, %v2521_v21  ;;  %v2528_v8 = vsub.f32 %v8211_v43, %v9909_v20  ;;  %5424 = vmatpush3.msra.mxu0 %v8231_v63  ;;  %v9685_v50 = vand.u32 4294901760, %v8240_v15  ;;  %v8263_v35 = vsub.f32 %v2260_v48, %v8242_v18  ;;  %v2242_v20 = vld [vmem:[%s9572_s6] sm:$0xff] }
 0x334   :  { %9910 = vst [vmem:[#allocation23_spill] sm:$0xff] %v8255_v42  ;;  %v2641_v7 = vand.u32 4294901760, %v2640_v40  ;;  %v8265_v21 = vand.u32 4294901760, %v2244_v59  ;;  %5425 = vmatprep.subr.mxu0 %v8242_v18  ;;  %5463 = vmatprep.subr.mxu1 %v2634_v24  ;;  %v9688_v43 = vand.u32 4294901760, %v8255_v42  ;;  %v8272_v63 = vand.u32 4294901760, %v2259_v23 }
 0x335   :  { %9911 = vst [vmem:[#allocation24_spill] sm:$0xff] %v8263_v35  ;;  %v2529_v12 = vand.u32 4294901760, %v2528_v8  ;;  %v8274_v40 = vand.u32 4294901760, %v2243_v52  ;;  %5464 = vmatpush3.msra.mxu1 %v2522_v3  ;;  %v2647_v48 = vsub.f32 %v8240_v15, %v9685_v50  ;;  %v9694_v41 = vand.u32 4294901760, %v8263_v35 }
 0x336   :  { %9912 = vst [vmem:[#allocation25_spill] sm:$0xff] %v8265_v21  ;;  %9913 = vst [vmem:[#allocation26_spill] sm:$0xff] %v8272_v63  ;;  %v8281_v57 = vsub.f32 %v2244_v59, %v8265_v21  ;;  %v8283_v53 = vand.u32 4294901760, %v2258_v56  ;;  %5426 = vmatpush3.msra.mxu0 %v8265_v21  ;;  %5465 = vmatprep.subr.mxu1 %v2641_v7  ;;  %v2535_v24 = vsub.f32 %v8255_v42, %v9688_v43 }
 0x337   :  { %v8290_v3 = vsub.f32 %v2259_v23, %v8272_v63  ;;  %v8293_v8 = vsub.f32 %v2243_v52, %v8274_v40  ;;  %v8295_v50 = vand.u32 4294901760, %v2242_v20  ;;  %5427 = vmatprep.subr.mxu0 %v8272_v63  ;;  %5466 = vmatpush3.msra.mxu1 %v2529_v12  ;;  %v2648_v59 = vand.u32 4294901760, %v2647_v48 }
 0x338   :  { %9914 = vst [vmem:[#allocation27_spill] sm:$0xff] %v8281_v57  ;;  %v2654_v7 = vsub.f32 %v8263_v35, %v9694_v41  ;;  %v9693_v15 = vand.u32 4294901760, %v8281_v57  ;;  %v8303_v43 = vsub.f32 %v2258_v56, %v8283_v53  ;;  %5428 = vmatpush3.msra.mxu0 %v8274_v40  ;;  %v2536_v23 = vand.u32 4294901760, %v2535_v24 }
 0x339   :  { %9915 = vst [vmem:[#allocation28_spill] sm:$0xff] %v8290_v3  ;;  %9916 = vst [vmem:[#allocation29_spill] sm:$0xff] %v8293_v8  ;;  %v9695_v52 = vand.u32 4294901760, %v8290_v3  ;;  %v9698_v42 = vand.u32 4294901760, %v8293_v8  ;;  %v8309_v63 = vsub.f32 %v2242_v20, %v8295_v50  ;;  %5429 = vmatprep.subr.mxu0 %v8283_v53  ;;  %5467 = vmatprep.subr.mxu1 %v2648_v59 }
 0x33a   :  { %9917 = vst [vmem:[#allocation30_spill] sm:$0xff] %v8303_v43  ;;  %v2655_v12 = vand.u32 4294901760, %v2654_v7  ;;  %v2542_v48 = vsub.f32 %v8281_v57, %v9693_v15  ;;  %v9702_v56 = vand.u32 4294901760, %v8303_v43  ;;  %5430 = vmatpush3.msra.mxu0 %v8295_v50  ;;  %5468 = vmatpush3.msra.mxu1 %v2536_v23 }
 0x33b   :  { %9918 = vst [vmem:[#allocation31_spill] sm:$0xff] %v8309_v63  ;;  %v2661_v24 = vsub.f32 %v8290_v3, %v9695_v52  ;;  %v2549_v20 = vsub.f32 %v8293_v8, %v9698_v42  ;;  %v9709_v59 = vand.u32 4294901760, %v8309_v63  ;;  %5487 = vmatprep.subr.mxu0 %v7928_v25 }
 0x33c   :  { %5469 = vmatprep.subr.mxu1 %v2655_v12  ;;  %v2543_v7 = vand.u32 4294901760, %v2542_v48  ;;  %v2668_v15 = vsub.f32 %v8303_v43, %v9702_v56 }
 0x33d   :  { %v2662_v41 = vand.u32 4294901760, %v2661_v24  ;;  %v2550_v23 = vand.u32 4294901760, %v2549_v20  ;;  %v2556_v52 = vsub.f32 %v8309_v63, %v9709_v59 }
 0x33e   :  { %5470 = vmatpush3.msra.mxu1 %v2543_v7  ;;  %v2669_v3 = vand.u32 4294901760, %v2668_v15 }
 0x33f   :  { %5471 = vmatprep.subr.mxu1 %v2662_v41  ;;  %v2557_v42 = vand.u32 4294901760, %v2556_v52 }
 0x340   :  { %5472 = vmatpush3.msra.mxu1 %v2550_v23 }
 0x341   :  { %5473 = vmatprep.subr.mxu1 %v2669_v3  ;;  %v9712_v3 = vsub.s32 1, %v7880_v47 }
 0x342   :  { %5474 = vmatpush3.msra.mxu1 %v2557_v42 }
 0x343   :  { %5531 = vmatprep.subr.mxu1 %v7917_v54 }
 0x3ca   :  { %v1904_v12 = vpop.f32.mrf.mxu1 }
 0x3cc   :  { %v6116_v48 = vpop.f32.mrf.mxu1 }
 0x3ce   :  { %v2052_v25 = vpop.f32.mrf.mxu1 }
 0x3d0   :  { %v6126_v8 = vpop.f32.mrf.mxu1 }
 0x3d2   :  { %v1828_v56 = vpop.f32.mrf.mxu0  ;;  %v2198_v24 = vpop.f32.mrf.mxu1 }
 0x3d3   :  { %v1905_v57 = vadd.f32 %v1904_v12, %v1828_v56 }
 0x3d4   :  { %v6111_v20 = vpop.f32.mrf.mxu0  ;;  %v6136_v43 = vpop.f32.mrf.mxu1 }
 0x3d6   :  { %v1978_v35 = vpop.f32.mrf.mxu0 }
 0x3d7   :  { %v1979_v59 = vadd.f32 %v1978_v35, %v1905_v57 }
 0x3d8   :  { %v6121_v7 = vpop.f32.mrf.mxu0 }
 0x3d9   :  { %v2053_v15 = vadd.f32 %v2052_v25, %v1979_v59 }
 0x3da   :  { %v2126_v41 = vpop.f32.mrf.mxu0 }
 0x3db   :  { %v2127_v52 = vadd.f32 %v2126_v41, %v2053_v15 }
 0x3dc   :  { %v6131_v42 = vpop.f32.mrf.mxu0 }
 0x3dd   :  { %v2199_v23 = vadd.f32 %v2198_v24, %v2127_v52 }
 0x3df   :  { %v2205_v63 = vrot.slane %v2199_v23, %v7894_v17  ;;  %v2213_v8 = vrot.slane %v2199_v23, %v9712_v3 }
 0x3e1   :  { %v2206_v48 = vmul.f32 %v2205_v63, %v7679_v4  ;;  %v2207_v43 = vmul.f32 %v2205_v63, %v7677_v51  ;;  %v2208_v56 = vmul.f32 %v2205_v63, %v7683_v39  ;;  %v2209_v57 = vmul.f32 %v2205_v63, %v7692_v22 }
 0x3e3   :  { %v2214_v25 = vadd.f32 %v2213_v8, %v2206_v48  ;;  %v2215_v35 = vadd.f32 %v2213_v8, %v2207_v43  ;;  %v2216_v59 = vadd.f32 %v2213_v8, %v2208_v56  ;;  %v2217_v12 = vadd.f32 %v2213_v8, %v2209_v57 }
 0x3e5   :  { %v2218_v20 = vmax.f32 %v2214_v25, 0.0  ;;  %v2219_v7 = vmax.f32 %v2215_v35, 0.0  ;;  %v2220_v24 = vmax.f32 %v2216_v59, 0.0  ;;  %v2221_v15 = vmax.f32 %v2217_v12, 0.0 }
 0x3e7   :  { %2226 = vst [vmem:[#allocation2 + $0x1] sm:$0xff] %v2218_v20  ;;  %2227 = vst [vmem:[#allocation2 + $0x9] sm:$0xff] %v2219_v7  ;;  %v8340_v41 = vand.u32 4294901760, %v2218_v20  ;;  %v8343_v4 = vand.u32 4294901760, %v2219_v7  ;;  %v8359_v48 = vand.u32 4294901760, %v2220_v24 }
 0x3e8   :  { %2228 = vst [vmem:[#allocation2 + $0x19] sm:$0xff] %v2220_v24  ;;  %2229 = vst [vmem:[#allocation2 + $0x21] sm:$0xff] %v2221_v15 }
 0x3e9   :  { %2672 = vmatprep.mubr.f32.mxu1 %v8340_v41  ;;  %9919 = vst [vmem:[#allocation32_spill] sm:$0xff] %v8343_v4  ;;  %v8346_v51 = vsub.f32 %v2218_v20, %v8340_v41  ;;  %v8353_v63 = vsub.f32 %v2219_v7, %v8343_v4  ;;  %9922 = vst [vmem:[#allocation35_spill] sm:$0xff] %v8359_v48  ;;  %v8376_v20 = vsub.f32 %v2220_v24, %v8359_v48 }
 0x3eb   :  { %v9715_v39 = vand.u32 4294901760, %v8346_v51  ;;  %v9714_v25 = vand.u32 4294901760, %v8353_v63  ;;  %v9719_v3 = vand.u32 4294901760, %v8376_v20 }
 0x3ed   :  { %v2389_v22 = vsub.f32 %v8346_v51, %v9715_v39 }
 0x3ee   :  { %v2230_v52 = vld [vmem:[#allocation2] sm:$0xff]  ;;  %v2231_v42 = vld [vmem:[#allocation2 + $0x8] sm:$0xff] }
 0x3ef   :  { %v8355_v23 = vand.u32 4294901760, %v2230_v52  ;;  %v8357_v8 = vand.u32 4294901760, %v2231_v42  ;;  %v2390_v43 = vand.u32 4294901760, %v2389_v22  ;;  %v2232_v56 = vld [vmem:[#allocation2 + $0x18] sm:$0xff]  ;;  %v2404_v22 = vsub.f32 %v8353_v63, %v9714_v25  ;;  %v2233_v24 = vld [vmem:[#allocation2 + $0x20] sm:$0xff] }
 0x3f0   :  { %v8373_v12 = vand.u32 4294901760, %v2232_v56  ;;  %v8398_v25 = vand.u32 4294901760, %v2233_v24 }
 0x3f1   :  { %9920 = vst [vmem:[#allocation33_spill] sm:$0xff] %v8355_v23  ;;  %9921 = vst [vmem:[#allocation34_spill] sm:$0xff] %v8357_v8  ;;  %v8362_v57 = vsub.f32 %v2230_v52, %v8355_v23  ;;  %2674 = vmatmul.mubr.f32.vlgmr.msra.gmra.mxu1 %v8355_v23  ;;  %2391 = vmatprep.mubr.f32.mxu0 %v2390_v43  ;;  %v8367_v35 = vsub.f32 %v2231_v42, %v8357_v8  ;;  %v8387_v52 = vand.u32 4294901760, %v2221_v15  ;;  %v9943_v23 = vld [vmem:[#allocation22_spill] sm:$0xff] }
 0x3f2   :  { %5532 = vmatpush3.msra.mxu1 %v7922_v1  ;;  %2679 = vmatprep.mubr.f32.mxu1 %v8343_v4  ;;  %9923 = vst [vmem:[#allocation36_spill] sm:$0xff] %v8373_v12  ;;  %9925 = vst [vmem:[#allocation38_spill] sm:$0xff] %v8398_v25  ;;  %v2405_v39 = vand.u32 4294901760, %v2404_v22  ;;  %v9942_v4 = vld [vmem:[#allocation19_spill] sm:$0xff] }
 0x3f3   :  { %5533 = vmatprep.subr.mxu1 %v7930_v31  ;;  %v9713_v59 = vand.u32 4294901760, %v8362_v57  ;;  %9924 = vst [vmem:[#allocation37_spill] sm:$0xff] %v8387_v52  ;;  %v9723_v42 = vand.u32 4294901760, %v8367_v35  ;;  %v8405_v17 = vsub.f32 %v2221_v15, %v8387_v52  ;;  %v8417_v15 = vsub.f32 %v2233_v24, %v8398_v25 }
 0x3f4   :  { %5534 = vmatpush3.msra.mxu1 %v7939_v11 }
 0x3f5   :  { %5535 = vmatprep.subr.mxu1 %v7949_v33  ;;  %2681 = vmatmul.mubr.f32.gmra.mxu1 %v8357_v8  ;;  %v2395_v7 = vsub.f32 %v8362_v57, %v9713_v59  ;;  %v8395_v59 = vsub.f32 %v2232_v56, %v8373_v12  ;;  %v2410_v47 = vsub.f32 %v8367_v35, %v9723_v42  ;;  %v9934_v42 = vld [vmem:[#allocation10_spill] sm:$0xff] }
 0x3f6   :  { %5536 = vmatpush3.msra.mxu1 %v7959_v32  ;;  %2686 = vmatprep.mubr.f32.mxu1 %v8359_v48  ;;  %v2419_v56 = vsub.f32 %v8376_v20, %v9719_v3  ;;  %v9940_v48 = vld [vmem:[#allocation16_spill] sm:$0xff]  ;;  %v9941_v8 = vld [vmem:[#allocation18_spill] sm:$0xff] }
 0x3f7   :  { %5537 = vmatprep.subr.mxu1 %v7972_v16  ;;  %v2396_v43 = vand.u32 4294901760, %v2395_v7  ;;  %v9722_v7 = vand.u32 4294901760, %v8395_v59  ;;  %v2411_v22 = vand.u32 4294901760, %v2410_v47  ;;  %v9721_v47 = vand.u32 4294901760, %v8417_v15 }
 0x3f8   :  { %5538 = vmatpush3.msra.mxu1 %v7985_v29 }
 0x3f9   :  { %5539 = vmatprep.subr.mxu1 %v8017_v6  ;;  %2397 = vmatmul.mubr.f32.vlgmr.msra.gmra.mxu0 %v2396_v43  ;;  %v2420_v43 = vand.u32 4294901760, %v2419_v56  ;;  %v2425_v24 = vsub.f32 %v8395_v59, %v9722_v7  ;;  %v9926_v56 = vand.u32 4294901760, %v8346_v51  ;;  %v9933_v7 = vld [vmem:[#allocation20_spill] sm:$0xff] }
 0x3fa   :  { %2688 = vmatmul.mubr.f32.gmra.mxu1 %v8373_v12  ;;  %5488 = vmatpush3.msra.mxu0 %v7937_v10  ;;  %v9939_v12 = vld [vmem:[#allocation26_spill] sm:$0xff] }
 0x3fb   :  { %5540 = vmatpush3.msra.mxu1 %v8026_v14  ;;  %2406 = vmatprep.mubr.f32.mxu0 %v2405_v39  ;;  %v9720_v39 = vand.u32 4294901760, %v8405_v17 }
 0x3fc   :  { %2693 = vmatprep.mubr.f32.mxu1 %v8387_v52  ;;  %5489 = vmatprep.subr.mxu0 %v7947_v27  ;;  %v9937_v52 = vld [vmem:[#allocation13_spill] sm:$0xff] }
 0x3fd   :  { %5541 = vmatprep.subr.mxu1 %v8037_v61  ;;  %5490 = vmatpush3.msra.mxu0 %v7957_v38  ;;  %v2434_v3 = vsub.f32 %v8405_v17, %v9720_v39 }
 0x3fe   :  { %5542 = vmatpush3.msra.mxu1 %v8049_v0  ;;  %5491 = vmatprep.subr.mxu0 %v7970_v45 }
 0x3ff   :  { %5543 = vmatprep.subr.mxu1 %v8059_v46  ;;  %2412 = vmatmul.mubr.f32.gmra.mxu0 %v2411_v22  ;;  %v2426_v22 = vand.u32 4294901760, %v2425_v24  ;;  %v2435_v39 = vand.u32 4294901760, %v2434_v3  ;;  %v9927_v3 = vld [vmem:[#allocation12_spill] sm:$0xff] }
 0x400   :  { %2695 = vmatmul.mubr.f32.gmra.mxu1 %v8398_v25  ;;  %5492 = vmatpush3.msra.mxu0 %v7983_v13  ;;  %v9936_v25 = vld [vmem:[#allocation11_spill] sm:$0xff] }
 0x401   :  { %5544 = vmatpush3.msra.mxu1 %v8069_v34  ;;  %2421 = vmatprep.mubr.f32.mxu0 %v2420_v43  ;;  %v2440_v43 = vsub.f32 %v8417_v15, %v9721_v47  ;;  %v9932_v47 = vld [vmem:[#allocation9_spill] sm:$0xff] }
 0x402   :  { %5493 = vmatprep.subr.mxu0 %v7996_v62  ;;  %5545 = vmatprep.subr.mxu1 %v8079_v36 }
 0x403   :  { %2964 = vmatprep.mubr.f32.mxu1 %v9926_v56  ;;  %5494 = vmatpush3.msra.mxu0 %v8007_v9  ;;  %v2441_v24 = vand.u32 4294901760, %v2440_v43  ;;  %v9928_v56 = vld [vmem:[#allocation7_spill] sm:$0xff]  ;;  %v9931_v43 = vld [vmem:[#allocation17_spill] sm:$0xff] }
 0x404   :  { %5546 = vmatpush3.msra.mxu1 %v8089_v49  ;;  %5495 = vmatprep.subr.mxu0 %v8035_v60 }
 0x405   :  { %5547 = vmatprep.subr.mxu1 %v8121_v5  ;;  %2427 = vmatmul.mubr.f32.gmra.mxu0 %v2426_v22  ;;  %v9930_v22 = vld [vmem:[#allocation8_spill] sm:$0xff] }
 0x406   :  { %5496 = vmatpush3.msra.mxu0 %v8047_v37  ;;  %5548 = vmatpush3.msra.mxu1 %v8127_v19 }
 0x407   :  { %2436 = vmatprep.mubr.f32.mxu0 %v2435_v39  ;;  %5497 = vmatprep.subr.mxu0 %v8057_v58  ;;  %v9929_v39 = vld [vmem:[#allocation14_spill] sm:$0xff] }
 0x408   :  { %5549 = vmatprep.subr.mxu1 %v8138_v44  ;;  %5498 = vmatpush3.msra.mxu0 %v8067_v2 }
 0x409   :  { %5550 = vmatpush3.msra.mxu1 %v8161_v28  ;;  %5499 = vmatprep.subr.mxu0 %v8077_v30 }
 0x40a   :  { %5551 = vmatprep.subr.mxu1 %v8168_v55  ;;  %2442 = vmatmul.mubr.f32.gmra.mxu0 %v2441_v24  ;;  %v9935_v24 = vld [vmem:[#allocation21_spill] sm:$0xff] }
 0x40b   :  { %5500 = vmatpush3.msra.mxu0 %v8087_v26  ;;  %5552 = vmatpush3.msra.mxu1 %v9927_v3 }
 0x40c   :  { %5501 = vmatprep.subr.mxu0 %v9928_v56  ;;  %2830 = vmatprep.mubr.f32.mxu0 %v8346_v51  ;;  %v9938_v51 = vld [vmem:[#allocation15_spill] sm:$0xff] }
 0x40d   :  { %5553 = vmatprep.subr.mxu1 %v9929_v39  ;;  %5502 = vmatpush3.msra.mxu0 %v9930_v22 }
 0x40e   :  { %5554 = vmatpush3.msra.mxu1 %v9931_v43  ;;  %5503 = vmatprep.subr.mxu0 %v9932_v47 }
 0x40f   :  { %5555 = vmatprep.subr.mxu1 %v9933_v7  ;;  %5504 = vmatpush3.msra.mxu0 %v9934_v42 }
 0x410   :  { %5556 = vmatpush3.msra.mxu1 %v9935_v24  ;;  %5505 = vmatprep.subr.mxu0 %v9936_v25 }
 0x411   :  { %5557 = vmatprep.subr.mxu1 %v8242_v18  ;;  %5506 = vmatpush3.msra.mxu0 %v9937_v52 }
 0x412   :  { %5558 = vmatpush3.msra.mxu1 %v8265_v21  ;;  %5507 = vmatprep.subr.mxu0 %v9938_v51  ;;  %v9944_v21 = vand.u32 4294901760, %v8362_v57 }
 0x413   :  { %5559 = vmatprep.subr.mxu1 %v9939_v12  ;;  %5508 = vmatpush3.msra.mxu0 %v9940_v48  ;;  %v9945_v12 = vld [vmem:[#allocation23_spill] sm:$0xff]  ;;  %v9946_v48 = vand.u32 4294901760, %v8353_v63 }
 0x414   :  { %5560 = vmatpush3.msra.mxu1 %v8274_v40  ;;  %5509 = vmatprep.subr.mxu0 %v9941_v8  ;;  %v9947_v8 = vld [vmem:[#allocation24_spill] sm:$0xff] }
 0x415   :  { %5561 = vmatprep.subr.mxu1 %v8283_v53  ;;  %5510 = vmatpush3.msra.mxu0 %v9942_v4  ;;  %v9948_v4 = vld [vmem:[#allocation27_spill] sm:$0xff] }
 0x416   :  { %5562 = vmatpush3.msra.mxu1 %v8295_v50  ;;  %5511 = vmatprep.subr.mxu0 %v9943_v23  ;;  %v9949_v23 = vld [vmem:[#allocation28_spill] sm:$0xff] }
 0x417   :  { %2968 = vmatmul.mubr.f32.vlgmr.msra.gmra.mxu1 %v9944_v21  ;;  %5619 = vmatprep.subr.mxu1 %v7917_v54  ;;  %v9950_v21 = vand.u32 4294901760, %v8367_v35  ;;  %v9951_v54 = vld [vmem:[#allocation29_spill] sm:$0xff] }
 0x418   :  { %5512 = vmatpush3.msra.mxu0 %v9945_v12  ;;  %2975 = vmatprep.mubr.f32.mxu1 %v9946_v48  ;;  %v9952_v48 = vand.u32 4294901760, %v8376_v20 }
 0x419   :  { %5620 = vmatpush3.msra.mxu1 %v7922_v1  ;;  %5513 = vmatprep.subr.mxu0 %v9947_v8  ;;  %v9953_v1 = vld [vmem:[#allocation30_spill] sm:$0xff] }
 0x41a   :  { %5621 = vmatprep.subr.mxu1 %v7930_v31  ;;  %5514 = vmatpush3.msra.mxu0 %v9948_v4  ;;  %v9954_v31 = vld [vmem:[#allocation31_spill] sm:$0xff] }
 0x41b   :  { %5622 = vmatpush3.msra.mxu1 %v7939_v11  ;;  %5515 = vmatprep.subr.mxu0 %v9949_v23  ;;  %v9955_v11 = vand.u32 4294901760, %v8395_v59 }
 0x41c   :  { %2979 = vmatmul.mubr.f32.gmra.mxu1 %v9950_v21  ;;  %5623 = vmatprep.subr.mxu1 %v7949_v33  ;;  %v9956_v33 = vld [vmem:[#allocation6_spill] sm:$0xff] }
 0x41d   :  { %5516 = vmatpush3.msra.mxu0 %v9951_v54  ;;  %2986 = vmatprep.mubr.f32.mxu1 %v9952_v48  ;;  %v9957_v21 = vand.u32 4294901760, %v9956_v33  ;;  %v9984_v33 = vld [vmem:[#allocation18_spill] sm:$0xff] }
 0x41e   :  { %5624 = vmatpush3.msra.mxu1 %v7959_v32  ;;  %5517 = vmatprep.subr.mxu0 %v9953_v1  ;;  %v9958_v32 = vand.u32 4294901760, %v8405_v17 }
 0x41f   :  { %5625 = vmatprep.subr.mxu1 %v7972_v16  ;;  %5518 = vmatpush3.msra.mxu0 %v9954_v31  ;;  %v9959_v16 = vand.u32 4294901760, %v7937_v10  ;;  %v9963_v10 = vand.u32 4294901760, %v7970_v45  ;;  %v9966_v45 = vand.u32 4294901760, %v8007_v9  ;;  %v9968_v9 = vand.u32 4294901760, %v8047_v37 }
 0x420   :  { %5626 = vmatpush3.msra.mxu1 %v7985_v29  ;;  %2833 = vmatmul.mubr.f32.vlgmr.msra.gmra.mxu0 %v8362_v57  ;;  %v9960_v29 = vand.u32 4294901760, %v7947_v27  ;;  %v9961_v57 = vand.u32 4294901760, %v7957_v38  ;;  %v2289_v27 = vld [vmem:[%s9572_s6 + $0x178] sm:$0xff]  ;;  %v9964_v38 = vand.u32 4294901760, %v7983_v13  ;;  %v9967_v13 = vand.u32 4294901760, %v8035_v60 }
 0x421   :  { %2990 = vmatmul.mubr.f32.gmra.mxu1 %v9955_v11  ;;  %5575 = vmatprep.subr.mxu0 %v9957_v21  ;;  %v9971_v37 = vand.u32 4294901760, %v8077_v30  ;;  %v2285_v30 = vld [vmem:[%s9572_s6 + $0x158] sm:$0xff] }
 0x422   :  { %5627 = vmatprep.subr.mxu1 %v8017_v6  ;;  %2839 = vmatprep.mubr.f32.mxu0 %v8353_v63  ;;  %v9962_v6 = vand.u32 4294901760, %v8417_v15  ;;  %v8604_v63 = vand.u32 4294901760, %v2285_v30 }
 0x423   :  { %2997 = vmatprep.mubr.f32.mxu1 %v9958_v32  ;;  %5576 = vmatpush3.msra.mxu0 %v9959_v16  ;;  %v2282_v16 = vld [vmem:[%s9572_s6 + $0x140] sm:$0xff] }
 0x424   :  { %5628 = vmatpush3.msra.mxu1 %v8026_v14  ;;  %5577 = vmatprep.subr.mxu0 %v9960_v29  ;;  %v9965_v14 = vand.u32 4294901760, %v7996_v62  ;;  %v2287_v62 = vld [vmem:[%s9572_s6 + $0x168] sm:$0xff]  ;;  %v9986_v29 = vld [vmem:[#allocation19_spill] sm:$0xff] }
 0x425   :  { %5629 = vmatprep.subr.mxu1 %v8037_v61  ;;  %5578 = vmatpush3.msra.mxu0 %v9961_v57  ;;  %v8538_v61 = vand.u32 4294901760, %v2289_v27  ;;  %v9987_v57 = vand.u32 4294901760, %v9986_v29  ;;  %v2276_v29 = vld [vmem:[%s9572_s6 + $0x110] sm:$0xff] }
 0x426   :  { %5630 = vmatpush3.msra.mxu1 %v8049_v0  ;;  %2842 = vmatmul.mubr.f32.gmra.mxu0 %v8367_v35  ;;  %v2288_v0 = vld [vmem:[%s9572_s6 + $0x170] sm:$0xff] }
 0x427   :  { %3001 = vmatmul.mubr.f32.gmra.mxu1 %v9962_v6  ;;  %5579 = vmatprep.subr.mxu0 %v9963_v10  ;;  %v8560_v60 = vsub.f32 %v2289_v27, %v8538_v61  ;;  %v2284_v35 = vld [vmem:[%s9572_s6 + $0x150] sm:$0xff]  ;;  %v9988_v10 = vld [vmem:[#allocation22_spill] sm:$0xff] }
 0x428   :  { %5631 = vmatprep.subr.mxu1 %v8059_v46  ;;  %2848 = vmatprep.mubr.f32.mxu0 %v8376_v20  ;;  %v8554_v46 = vand.u32 4294901760, %v2288_v0  ;;  %v9989_v27 = vand.u32 4294901760, %v9988_v10 }
 0x429   :  { %5580 = vmatpush3.msra.mxu0 %v9964_v38  ;;  %5632 = vmatpush3.msra.mxu1 %v8069_v34  ;;  %v9969_v34 = vand.u32 4294901760, %v8057_v58  ;;  %v9972_v58 = vand.u32 4294901760, %v8087_v26  ;;  %v9974_v26 = vand.u32 4294901760, %v9930_v22  ;;  %v9980_v22 = vand.u32 4294901760, %v9938_v51 }
 0x42a   :  { %3292 = vmatprep.mubr.f32.mxu1 %v8340_v41  ;;  %5581 = vmatprep.subr.mxu0 %v9965_v14  ;;  %v9985_v51 = vand.u32 4294901760, %v9984_v33 }
 0x42b   :  { %5633 = vmatprep.subr.mxu1 %v8079_v36  ;;  %5582 = vmatpush3.msra.mxu0 %v9966_v45  ;;  %v9970_v36 = vand.u32 4294901760, %v8067_v2  ;;  %v8582_v2 = vand.u32 4294901760, %v8560_v60 }
 0x42c   :  { %5634 = vmatpush3.msra.mxu1 %v8089_v49  ;;  %2851 = vmatmul.mubr.f32.gmra.mxu0 %v8395_v59  ;;  %v9976_v59 = vand.u32 4294901760, %v9934_v42  ;;  %v8626_v42 = vand.u32 4294901760, %v2284_v35 }
 0x42d   :  { %5583 = vmatprep.subr.mxu0 %v9967_v13  ;;  %5635 = vmatprep.subr.mxu1 %v8121_v5  ;;  %v8565_v5 = vand.u32 4294901760, %v2287_v62  ;;  %v3445_v20 = vsub.f32 %v8560_v60, %v8582_v2  ;;  %v9991_v13 = vand.u32 4294901760, %v9945_v12  ;;  %v2280_v12 = vld [vmem:[%s9572_s6 + $0x130] sm:$0xff] }
 0x42e   :  { %2857 = vmatprep.mubr.f32.mxu0 %v8405_v17  ;;  %5584 = vmatpush3.msra.mxu0 %v9968_v9  ;;  %v2286_v17 = vld [vmem:[%s9572_s6 + $0x160] sm:$0xff]  ;;  %v8659_v6 = vsub.f32 %v2284_v35, %v8626_v42 }
 0x42f   :  { %5636 = vmatpush3.msra.mxu1 %v8127_v19  ;;  %5585 = vmatprep.subr.mxu0 %v9969_v34  ;;  %v8576_v19 = vsub.f32 %v2288_v0, %v8554_v46  ;;  %v8584_v49 = vand.u32 4294901760, %v2286_v17  ;;  %v3446_v48 = vand.u32 4294901760, %v3445_v20  ;;  %v8673_v0 = vand.u32 4294901760, %v2282_v16  ;;  %v9998_v20 = vld [vmem:[#allocation35_spill] sm:$0xff] }
 0x430   :  { %5637 = vmatprep.subr.mxu1 %v8138_v44  ;;  %5586 = vmatpush3.msra.mxu0 %v9970_v36  ;;  %v8593_v44 = vsub.f32 %v2287_v62, %v8565_v5  ;;  %v9992_v62 = vld [vmem:[#allocation32_spill] sm:$0xff]  ;;  %v9993_v36 = vand.u32 4294901760, %v9947_v8 }
 0x431   :  { %5638 = vmatpush3.msra.mxu1 %v8161_v28  ;;  %2860 = vmatmul.mubr.f32.gmra.mxu0 %v8417_v15  ;;  %v9975_v28 = vand.u32 4294901760, %v9932_v47  ;;  %v8615_v15 = vsub.f32 %v2286_v17, %v8584_v49  ;;  %v9977_v47 = vand.u32 4294901760, %v9936_v25  ;;  %v8686_v17 = vand.u32 4294901760, %v8659_v6 }
 0x432   :  { %5587 = vmatprep.subr.mxu0 %v9971_v37  ;;  %5639 = vmatprep.subr.mxu1 %v8168_v55  ;;  %v9973_v55 = vand.u32 4294901760, %v9928_v56  ;;  %v2283_v56 = vld [vmem:[%s9572_s6 + $0x148] sm:$0xff]  ;;  %v9994_v37 = vand.u32 4294901760, %v9948_v4 }
 0x433   :  { %5588 = vmatpush3.msra.mxu0 %v9972_v58  ;;  %3167 = vmatprep.mubr.f32.mxu0 %v8340_v41  ;;  %v8602_v41 = vand.u32 4294901760, %v8576_v19  ;;  %v8643_v11 = vand.u32 4294901760, %v8615_v15  ;;  %v8650_v32 = vand.u32 4294901760, %v2283_v56 }
 0x434   :  { %5640 = vmatpush3.msra.mxu1 %v9927_v3  ;;  %5589 = vmatprep.subr.mxu0 %v9973_v55  ;;  %v8621_v3 = vand.u32 4294901760, %v8593_v44  ;;  %v8698_v55 = vsub.f32 %v2282_v16, %v8673_v0 }
 0x435   :  { %5641 = vmatprep.subr.mxu1 %v9929_v39  ;;  %5590 = vmatpush3.msra.mxu0 %v9974_v26  ;;  %v9979_v39 = vld [vmem:[#allocation25_spill] sm:$0xff]  ;;  %v3452_v25 = vsub.f32 %v8576_v19, %v8602_v41  ;;  %v3466_v45 = vsub.f32 %v8615_v15, %v8643_v11  ;;  %v8679_v9 = vsub.f32 %v2283_v56, %v8650_v32  ;;  %v2279_v26 = vld [vmem:[%s9572_s6 + $0x128] sm:$0xff] }
 0x436   :  { %5642 = vmatpush3.msra.mxu1 %v9931_v43  ;;  %5591 = vmatprep.subr.mxu0 %v9975_v28  ;;  %v8637_v43 = vsub.f32 %v2285_v30, %v8604_v63  ;;  %v3459_v21 = vsub.f32 %v8593_v44, %v8621_v3  ;;  %v9995_v30 = vand.u32 4294901760, %v9949_v23  ;;  %v9996_v28 = vld [vmem:[#allocation34_spill] sm:$0xff]  ;;  %v9997_v23 = vand.u32 4294901760, %v9951_v54 }
 0x437   :  { %5643 = vmatprep.subr.mxu1 %v9933_v7  ;;  %5592 = vmatpush3.msra.mxu0 %v9976_v59  ;;  %v9978_v7 = vand.u32 4294901760, %v9937_v52  ;;  %v9982_v52 = vld [vmem:[#allocation16_spill] sm:$0xff]  ;;  %v3453_v38 = vand.u32 4294901760, %v3452_v25  ;;  %v3467_v8 = vand.u32 4294901760, %v3466_v45  ;;  %v8705_v4 = vand.u32 4294901760, %v8679_v9  ;;  %v2278_v25 = vld [vmem:[%s9572_s6 + $0x120] sm:$0xff] }
 0x438   :  { %5644 = vmatpush3.msra.mxu1 %v9935_v24  ;;  %5593 = vmatprep.subr.mxu0 %v9977_v47  ;;  %v9983_v24 = vand.u32 4294901760, %v9982_v52  ;;  %v8668_v14 = vand.u32 4294901760, %v8637_v43  ;;  %v8710_v59 = vand.u32 4294901760, %v2280_v12  ;;  %v3480_v47 = vsub.f32 %v8659_v6, %v8686_v17  ;;  %v2275_v45 = vld [vmem:[%s9572_s6 + $0x108] sm:$0xff] }
 0x439   :  { %5645 = vmatprep.subr.mxu1 %v8242_v18  ;;  %5594 = vmatpush3.msra.mxu0 %v9978_v7  ;;  %v9981_v18 = vld [vmem:[#allocation26_spill] sm:$0xff]  ;;  %v9999_v7 = vand.u32 4294901760, %v9953_v1  ;;  %v10000_v54 = vand.u32 4294901760, %v9954_v31  ;;  %v3487_v1 = vsub.f32 %v8679_v9, %v8705_v4  ;;  %v2277_v31 = vld [vmem:[%s9572_s6 + $0x118] sm:$0xff] }
 0x43a   :  { %5646 = vmatpush3.msra.mxu1 %v9979_v39  ;;  %5595 = vmatprep.subr.mxu0 %v9980_v22  ;;  %v3473_v58 = vsub.f32 %v8637_v43, %v8668_v14  ;;  %v2238_v39 = vld [vmem:[#allocation2 + $0x2] sm:$0xff]  ;;  %v8719_v22 = vand.u32 4294901760, %v2279_v26  ;;  %v3481_v33 = vand.u32 4294901760, %v3480_v47  ;;  %v8758_v10 = vand.u32 4294901760, %v2277_v31 }
 0x43b   :  { %5647 = vmatprep.subr.mxu1 %v9981_v18  ;;  %5596 = vmatpush3.msra.mxu0 %v9983_v24  ;;  %v8727_v18 = vand.u32 4294901760, %v8698_v55  ;;  %v8736_v24 = vsub.f32 %v2280_v12, %v8710_v59  ;;  %v2274_v12 = vld [vmem:[%s9572_s6 + $0x100] sm:$0xff] }
 0x43c   :  { %5648 = vmatpush3.msra.mxu1 %v8274_v40  ;;  %5597 = vmatprep.subr.mxu0 %v9985_v51  ;;  %v2281_v40 = vld [vmem:[%s9572_s6 + $0x138] sm:$0xff]  ;;  %v3474_v56 = vand.u32 4294901760, %v3473_v58  ;;  %v8743_v51 = vand.u32 4294901760, %v2238_v39  ;;  %v8749_v16 = vsub.f32 %v2279_v26, %v8719_v22 }
 0x43d   :  { %5649 = vmatprep.subr.mxu1 %v8283_v53  ;;  %5598 = vmatpush3.msra.mxu0 %v9987_v57  ;;  %v9990_v53 = vld [vmem:[#allocation33_spill] sm:$0xff]  ;;  %v8681_v34 = vand.u32 4294901760, %v2281_v40 }
 0x43e   :  { %5650 = vmatpush3.msra.mxu1 %v8295_v50  ;;  %5599 = vmatprep.subr.mxu0 %v9989_v27  ;;  %v3460_v50 = vand.u32 4294901760, %v3459_v21  ;;  %v8745_v21 = vand.u32 4294901760, %v2278_v25  ;;  %v10002_v57 = vld [vmem:[#allocation37_spill] sm:$0xff]  ;;  %v3488_v27 = vand.u32 4294901760, %v3487_v1 }
 0x43f   :  { %3294 = vmatmul.mubr.f32.vlgmr.msra.gmra.mxu1 %v9990_v53  ;;  %6175 = vmatprep.subr.mxu1 %v3446_v48  ;;  %v8708_v35 = vsub.f32 %v2281_v40, %v8681_v34  ;;  %v3494_v40 = vsub.f32 %v8698_v55, %v8727_v18 }
 0x440   :  { %5600 = vmatpush3.msra.mxu0 %v9991_v13  ;;  %3299 = vmatprep.mubr.f32.mxu1 %v9992_v62  ;;  %v8771_v13 = vsub.f32 %v2238_v39, %v8743_v51 }
 0x441   :  { %6176 = vmatpush3.msra.mxu1 %v3446_v48  ;;  %5601 = vmatprep.subr.mxu0 %v9993_v36  ;;  %v8733_v52 = vand.u32 4294901760, %v8708_v35  ;;  %v10001_v48 = vld [vmem:[#allocation36_spill] sm:$0xff]  ;;  %v8780_v36 = vand.u32 4294901760, %v8749_v16  ;;  %v3495_v58 = vand.u32 4294901760, %v3494_v40 }
 0x442   :  { %6177 = vmatprep.subr.mxu1 %v3453_v38  ;;  %5602 = vmatpush3.msra.mxu0 %v9994_v37  ;;  %v10003_v37 = vld [vmem:[#allocation38_spill] sm:$0xff] }
 0x443   :  { %6178 = vmatpush3.msra.mxu1 %v3453_v38  ;;  %5603 = vmatprep.subr.mxu0 %v9995_v30  ;;  %v3501_v38 = vsub.f32 %v8708_v35, %v8733_v52  ;;  %v8788_v30 = vsub.f32 %v2277_v31, %v8758_v10 }
 0x444   :  { %3301 = vmatmul.mubr.f32.gmra.mxu1 %v9996_v28  ;;  %6179 = vmatprep.subr.mxu1 %v3460_v50 }
 0x445   :  { %5604 = vmatpush3.msra.mxu0 %v9997_v23  ;;  %3306 = vmatprep.mubr.f32.mxu1 %v9998_v20  ;;  %v3502_v26 = vand.u32 4294901760, %v3501_v38  ;;  %v3403_v23 = vand.u32 4294901760, %v8771_v13  ;;  %v8811_v39 = vand.u32 4294901760, %v8788_v30 }
 0x446   :  { %6180 = vmatpush3.msra.mxu1 %v3460_v50  ;;  %5605 = vmatprep.subr.mxu0 %v9999_v7  ;;  %v8776_v50 = vand.u32 4294901760, %v2276_v29 }
 0x447   :  { %6181 = vmatprep.subr.mxu1 %v3467_v8  ;;  %5606 = vmatpush3.msra.mxu0 %v10000_v54  ;;  %v3404_v1 = vsub.f32 %v8771_v13, %v3403_v23  ;;  %v3529_v40 = vsub.f32 %v8788_v30, %v8811_v39 }
 0x448   :  { %6182 = vmatpush3.msra.mxu1 %v3467_v8  ;;  %3169 = vmatmul.mubr.f32.vlgmr.msra.gmra.mxu0 %v9990_v53  ;;  %v8764_v53 = vand.u32 4294901760, %v8736_v24  ;;  %v8790_v8 = vand.u32 4294901760, %v2275_v45  ;;  %v8801_v7 = vsub.f32 %v2276_v29, %v8776_v50 }
 0x449   :  { %3308 = vmatmul.mubr.f32.gmra.mxu1 %v10001_v48  ;;  %6137 = vmatprep.subr.mxu0 %v8538_v61  ;;  %v3405_v38 = vand.u32 4294901760, %v3404_v1 }
 0x44a   :  { %6183 = vmatprep.subr.mxu1 %v3474_v56  ;;  %3174 = vmatprep.mubr.f32.mxu0 %v9992_v62  ;;  %v8774_v62 = vsub.f32 %v2278_v25, %v8745_v21  ;;  %v8814_v25 = vsub.f32 %v2275_v45, %v8790_v8 }
 0x44b   :  { %3313 = vmatprep.mubr.f32.mxu1 %v10002_v57  ;;  %6138 = vmatpush3.msra.mxu0 %v8538_v61 }
 0x44c   :  { %6184 = vmatpush3.msra.mxu1 %v3474_v56  ;;  %6139 = vmatprep.subr.mxu0 %v8554_v46  ;;  %v8798_v47 = vand.u32 4294901760, %v8774_v62  ;;  %v8803_v56 = vand.u32 4294901760, %v2274_v12 }
 0x44d   :  { %6185 = vmatprep.subr.mxu1 %v3481_v33  ;;  %6140 = vmatpush3.msra.mxu0 %v8554_v46 }
 0x44e   :  { %6186 = vmatpush3.msra.mxu1 %v3481_v33  ;;  %3176 = vmatmul.mubr.f32.gmra.mxu0 %v9996_v28  ;;  %v3508_v28 = vsub.f32 %v8736_v24, %v8764_v53  ;;  %v3522_v31 = vsub.f32 %v8774_v62, %v8798_v47  ;;  %v8824_v33 = vand.u32 4294901760, %v8801_v7  ;;  %v8827_v29 = vsub.f32 %v2274_v12, %v8803_v56 }
 0x44f   :  { %3315 = vmatmul.mubr.f32.gmra.mxu1 %v10003_v37  ;;  %6141 = vmatprep.subr.mxu0 %v8565_v5 }
 0x450   :  { %6187 = vmatprep.subr.mxu1 %v3488_v27  ;;  %3181 = vmatprep.mubr.f32.mxu0 %v9998_v20  ;;  %v3515_v20 = vsub.f32 %v8749_v16, %v8780_v36  ;;  %v3509_v54 = vand.u32 4294901760, %v3508_v28  ;;  %v3536_v45 = vsub.f32 %v8801_v7, %v8824_v33  ;;  %v8842_v12 = vand.u32 4294901760, %v8827_v29  ;;  %v2239_v28 = vld [vmem:[#allocation2 + $0xa] sm:$0xff] }
 0x451   :  { %6142 = vmatpush3.msra.mxu0 %v8565_v5  ;;  %6188 = vmatpush3.msra.mxu1 %v3488_v27  ;;  %v8835_v27 = vand.u32 4294901760, %v8814_v25  ;;  %v8853_v1 = vand.u32 4294901760, %v2239_v28 }
 0x452   :  { %6207 = vmatprep.mubr.f32.mxu1 %v8743_v51  ;;  %6143 = vmatprep.subr.mxu0 %v8584_v49 }
 0x453   :  { %6189 = vmatprep.subr.mxu1 %v3495_v58  ;;  %6144 = vmatpush3.msra.mxu0 %v8584_v49 }
 0x454   :  { %6190 = vmatpush3.msra.mxu1 %v3495_v58  ;;  %3183 = vmatmul.mubr.f32.gmra.mxu0 %v10001_v48  ;;  %v3516_v48 = vand.u32 4294901760, %v3515_v20  ;;  %v3530_v58 = vand.u32 4294901760, %v3529_v40  ;;  %v3550_v20 = vsub.f32 %v8827_v29, %v8842_v12  ;;  %v2241_v40 = vld [vmem:[#allocation2 + $0x22] sm:$0xff] }
 0x455   :  { %6145 = vmatprep.subr.mxu0 %v8604_v63  ;;  %6191 = vmatprep.subr.mxu1 %v3502_v26 }
 0x456   :  { %3188 = vmatprep.mubr.f32.mxu0 %v10002_v57  ;;  %6146 = vmatpush3.msra.mxu0 %v8604_v63  ;;  %v3523_v57 = vand.u32 4294901760, %v3522_v31 }
 0x457   :  { %6192 = vmatpush3.msra.mxu1 %v3502_v26  ;;  %6147 = vmatprep.subr.mxu0 %v8626_v42  ;;  %v3543_v26 = vsub.f32 %v8814_v25, %v8835_v27 }
 0x458   :  { %6193 = vmatprep.subr.mxu1 %v3509_v54  ;;  %6148 = vmatpush3.msra.mxu0 %v8626_v42 }
 0x459   :  { %6194 = vmatpush3.msra.mxu1 %v3509_v54  ;;  %3190 = vmatmul.mubr.f32.gmra.mxu0 %v10003_v37  ;;  %v3537_v37 = vand.u32 4294901760, %v3536_v45  ;;  %v2240_v54 = vld [vmem:[#allocation2 + $0x1a] sm:$0xff]  ;;  %v3544_v31 = vand.u32 4294901760, %v3543_v26  ;;  %v8865_v45 = vand.u32 4294901760, %v2241_v40 }
 0x45a   :  { %6149 = vmatprep.subr.mxu0 %v8650_v32  ;;  %6195 = vmatprep.subr.mxu1 %v3516_v48 }
 0x45b   :  { %6150 = vmatpush3.msra.mxu0 %v8650_v32  ;;  %6169 = vmatprep.mubr.f32.mxu0 %v3405_v38  ;;  %v3551_v38 = vand.u32 4294901760, %v3550_v20 }
 0x45c   :  { %6196 = vmatpush3.msra.mxu1 %v3516_v48  ;;  %6151 = vmatprep.subr.mxu0 %v8673_v0  ;;  %v8857_v48 = vand.u32 4294901760, %v2240_v54 }
 0x45d   :  { %6197 = vmatprep.subr.mxu1 %v3523_v57  ;;  %6152 = vmatpush3.msra.mxu0 %v8673_v0 }
 0x45e   :  { %6198 = vmatpush3.msra.mxu1 %v3523_v57  ;;  %6153 = vmatprep.subr.mxu0 %v8681_v34  ;;  %v8862_v57 = vsub.f32 %v2239_v28, %v8853_v1  ;;  %v8877_v28 = vsub.f32 %v2241_v40, %v8865_v45 }
 0x45f   :  { %6199 = vmatprep.subr.mxu1 %v3530_v58  ;;  %6154 = vmatpush3.msra.mxu0 %v8681_v34 }
 0x460   :  { %6200 = vmatpush3.msra.mxu1 %v3530_v58  ;;  %6155 = vmatprep.subr.mxu0 %v8710_v59  ;;  %v8869_v58 = vsub.f32 %v2240_v54, %v8857_v48  ;;  %v3413_v26 = vand.u32 4294901760, %v8862_v57  ;;  %v3433_v54 = vand.u32 4294901760, %v8877_v28 }
 0x461   :  { %6201 = vmatprep.subr.mxu1 %v3537_v37  ;;  %6156 = vmatpush3.msra.mxu0 %v8710_v59 }
 0x462   :  { %6202 = vmatpush3.msra.mxu1 %v3537_v37  ;;  %6157 = vmatprep.subr.mxu0 %v8719_v22  ;;  %v9739_v37 = vand.u32 4294901760, %v8869_v58  ;;  %v3414_v20 = vsub.f32 %v8862_v57, %v3413_v26 }
 0x463   :  { %6203 = vmatprep.subr.mxu1 %v3544_v31  ;;  %6158 = vmatpush3.msra.mxu0 %v8719_v22 }
 0x464   :  { %6204 = vmatpush3.msra.mxu1 %v3544_v31  ;;  %6159 = vmatprep.subr.mxu0 %v8745_v21  ;;  %v3424_v31 = vsub.f32 %v8869_v58, %v9739_v37  ;;  %v3415_v40 = vand.u32 4294901760, %v3414_v20 }
 0x465   :  { %6205 = vmatprep.subr.mxu1 %v3551_v38  ;;  %6160 = vmatpush3.msra.mxu0 %v8745_v21 }
 0x466   :  { %6206 = vmatpush3.msra.mxu1 %v3551_v38  ;;  %6161 = vmatprep.subr.mxu0 %v8758_v10  ;;  %v3434_v38 = vsub.f32 %v8877_v28, %v3433_v54  ;;  %v3425_v37 = vand.u32 4294901760, %v3424_v31 }
 0x467   :  { %6208 = vmatmul.mubr.f32.vlgmr.msra.gmra.mxu1 %v8853_v1  ;;  %6251 = vmatprep.subr.mxu1 %v8538_v61 }
 0x468   :  { %6162 = vmatpush3.msra.mxu0 %v8758_v10  ;;  %6210 = vmatprep.mubr.f32.mxu1 %v8857_v48 }
 0x469   :  { %6252 = vmatpush3.msra.mxu1 %v8538_v61  ;;  %6163 = vmatprep.subr.mxu0 %v8776_v50 }
 0x46a   :  { %6253 = vmatprep.subr.mxu1 %v8554_v46  ;;  %6164 = vmatpush3.msra.mxu0 %v8776_v50 }
 0x46b   :  { %6254 = vmatpush3.msra.mxu1 %v8554_v46  ;;  %6165 = vmatprep.subr.mxu0 %v8790_v8 }
 0x46c   :  { %6211 = vmatmul.mubr.f32.gmra.mxu1 %v8865_v45  ;;  %6255 = vmatprep.subr.mxu1 %v8565_v5 }
 0x46d   :  { %6166 = vmatpush3.msra.mxu0 %v8790_v8  ;;  %6256 = vmatpush3.msra.mxu1 %v8565_v5 }
 0x46e   :  { %6283 = vmatprep.mubr.f32.mxu1 %v3403_v23  ;;  %6167 = vmatprep.subr.mxu0 %v8803_v56  ;;  %v3435_v23 = vand.u32 4294901760, %v3434_v38 }
 0x46f   :  { %6257 = vmatprep.subr.mxu1 %v8584_v49  ;;  %6168 = vmatpush3.msra.mxu0 %v8803_v56 }
 0x470   :  { %6258 = vmatpush3.msra.mxu1 %v8584_v49  ;;  %6170 = vmatmul.mubr.f32.vlgmr.msra.gmra.mxu0 %v3415_v40  ;;  %v4117_v40 = vld [vmem:[%s9573_s9 + $0x20] sm:$0xff] }
 0x471   :  { %6213 = vmatprep.subr.mxu0 %v8560_v60  ;;  %6259 = vmatprep.subr.mxu1 %v8604_v63 }
 0x472   :  { %6172 = vmatprep.mubr.f32.mxu0 %v3425_v37  ;;  %6214 = vmatpush3.msra.mxu0 %v8560_v60  ;;  %v10004_v60 = vand.u32 4294901760, %v8869_v58 }
 0x473   :  { %6260 = vmatpush3.msra.mxu1 %v8604_v63  ;;  %6215 = vmatprep.subr.mxu0 %v8576_v19 }
 0x474   :  { %6261 = vmatprep.subr.mxu1 %v8626_v42  ;;  %6216 = vmatpush3.msra.mxu0 %v8576_v19  ;;  %v4127_v19 = vld [vmem:[%s9573_s9 + $0x70] sm:$0xff] }
 0x475   :  { %6262 = vmatpush3.msra.mxu1 %v8626_v42  ;;  %6173 = vmatmul.mubr.f32.gmra.mxu0 %v3435_v23 }
 0x476   :  { %6217 = vmatprep.subr.mxu0 %v8593_v44  ;;  %6263 = vmatprep.subr.mxu1 %v8650_v32 }
 0x477   :  { %6218 = vmatpush3.msra.mxu0 %v8593_v44  ;;  %6245 = vmatprep.mubr.f32.mxu0 %v8771_v13  ;;  %v4126_v44 = vld [vmem:[%s9573_s9 + $0x68] sm:$0xff] }
 0x478   :  { %6264 = vmatpush3.msra.mxu1 %v8650_v32  ;;  %6219 = vmatprep.subr.mxu0 %v8615_v15 }
 0x479   :  { %6265 = vmatprep.subr.mxu1 %v8673_v0  ;;  %6220 = vmatpush3.msra.mxu0 %v8615_v15  ;;  %v9074_v15 = vand.u32 4294901760, %v4126_v44 }
 0x47a   :  { %6266 = vmatpush3.msra.mxu1 %v8673_v0  ;;  %6221 = vmatprep.subr.mxu0 %v8637_v43 }
 0x47b   :  { %6267 = vmatprep.subr.mxu1 %v8681_v34  ;;  %6222 = vmatpush3.msra.mxu0 %v8637_v43  ;;  %10010 = vst [vmem:[#allocation17_spill] sm:$0xff] %v9074_v15 }
 0x47c   :  { %6268 = vmatpush3.msra.mxu1 %v8681_v34  ;;  %6223 = vmatprep.subr.mxu0 %v8659_v6 }
 0x47d   :  { %6269 = vmatprep.subr.mxu1 %v8710_v59  ;;  %6224 = vmatpush3.msra.mxu0 %v8659_v6  ;;  %v4124_v6 = vld [vmem:[%s9573_s9 + $0x58] sm:$0xff] }
 0x47e   :  { %6270 = vmatpush3.msra.mxu1 %v8710_v59  ;;  %6225 = vmatprep.subr.mxu0 %v8679_v9 }
 0x47f   :  { %6271 = vmatprep.subr.mxu1 %v8719_v22  ;;  %6226 = vmatpush3.msra.mxu0 %v8679_v9 }
 0x480   :  { %6272 = vmatpush3.msra.mxu1 %v8719_v22  ;;  %6227 = vmatprep.subr.mxu0 %v8698_v55 }
 0x481   :  { %6273 = vmatprep.subr.mxu1 %v8745_v21  ;;  %6228 = vmatpush3.msra.mxu0 %v8698_v55  ;;  %v4123_v55 = vld [vmem:[%s9573_s9 + $0x50] sm:$0xff] }
 0x482   :  { %6274 = vmatpush3.msra.mxu1 %v8745_v21  ;;  %6229 = vmatprep.subr.mxu0 %v8708_v35 }
 0x483   :  { %6275 = vmatprep.subr.mxu1 %v8758_v10  ;;  %6230 = vmatpush3.msra.mxu0 %v8708_v35 }
 0x484   :  { %6276 = vmatpush3.msra.mxu1 %v8758_v10  ;;  %6231 = vmatprep.subr.mxu0 %v8736_v24 }
 0x485   :  { %6277 = vmatprep.subr.mxu1 %v8776_v50  ;;  %6232 = vmatpush3.msra.mxu0 %v8736_v24 }
 0x486   :  { %6278 = vmatpush3.msra.mxu1 %v8776_v50  ;;  %6233 = vmatprep.subr.mxu0 %v8749_v16 }
 0x487   :  { %6279 = vmatprep.subr.mxu1 %v8790_v8  ;;  %6234 = vmatpush3.msra.mxu0 %v8749_v16 }
 0x488   :  { %6280 = vmatpush3.msra.mxu1 %v8790_v8  ;;  %6235 = vmatprep.subr.mxu0 %v8774_v62 }
 0x489   :  { %6281 = vmatprep.subr.mxu1 %v8803_v56  ;;  %6236 = vmatpush3.msra.mxu0 %v8774_v62 }
 0x48a   :  { %6282 = vmatpush3.msra.mxu1 %v8803_v56  ;;  %6237 = vmatprep.subr.mxu0 %v8788_v30 }
 0x48b   :  { %6284 = vmatmul.mubr.f32.vlgmr.msra.gmra.mxu1 %v3413_v26  ;;  %6327 = vmatprep.subr.mxu1 %v8538_v61  ;;  %v4118_v26 = vld [vmem:[%s9573_s9 + $0x28] sm:$0xff] }
 0x48c   :  { %6238 = vmatpush3.msra.mxu0 %v8788_v30  ;;  %6286 = vmatprep.mubr.f32.mxu1 %v10004_v60 }
 0x48d   :  { %6328 = vmatpush3.msra.mxu1 %v8538_v61  ;;  %6239 = vmatprep.subr.mxu0 %v8801_v7  ;;  %v10005_v61 = vmov 0.0  }
 0x48e   :  { %6329 = vmatprep.subr.mxu1 %v8554_v46  ;;  %6240 = vmatpush3.msra.mxu0 %v8801_v7 }
 0x48f   :  { %6330 = vmatpush3.msra.mxu1 %v8554_v46  ;;  %6241 = vmatprep.subr.mxu0 %v8814_v25  ;;  %v4128_v46 = vld [vmem:[%s9573_s9 + $0x78] sm:$0xff] }
 0x490   :  { %6287 = vmatmul.mubr.f32.gmra.mxu1 %v3433_v54  ;;  %6331 = vmatprep.subr.mxu1 %v8565_v5  ;;  %v9195_v54 = vand.u32 4294901760, %v4118_v26 }
 0x491   :  { %6242 = vmatpush3.msra.mxu0 %v8814_v25  ;;  %6332 = vmatpush3.msra.mxu1 %v8565_v5  ;;  %v9055_v5 = vand.u32 4294901760, %v4128_v46 }
 0x492   :  { %6359 = vmatprep.mubr.f32.mxu1 %v8743_v51  ;;  %6243 = vmatprep.subr.mxu0 %v8827_v29  ;;  %10026 = vst [vmem:[#allocation25_spill] sm:$0xff] %v9195_v54  ;;  %v9206_v60 = vsub.f32 %v4118_v26, %v9195_v54 }
 0x493   :  { %6333 = vmatprep.subr.mxu1 %v8584_v49  ;;  %6244 = vmatpush3.msra.mxu0 %v8827_v29  ;;  %10006 = vst [vmem:[#allocation12_spill] sm:$0xff] %v9055_v5  ;;  %v4119_v29 = vld [vmem:[%s9573_s9 + $0x30] sm:$0xff] }
 0x494   :  { %6334 = vmatpush3.msra.mxu1 %v8584_v49  ;;  %6246 = vmatmul.mubr.f32.vlgmr.msra.gmra.mxu0 %v8862_v57  ;;  %v9063_v49 = vand.u32 4294901760, %v4127_v19  ;;  %10027 = vst [vmem:[#allocation26_spill] sm:$0xff] %v9206_v60 }
 0x495   :  { %6289 = vmatprep.subr.mxu0 %v8582_v2  ;;  %6335 = vmatprep.subr.mxu1 %v8604_v63 }
 0x496   :  { %6248 = vmatprep.mubr.f32.mxu0 %v8869_v58  ;;  %6290 = vmatpush3.msra.mxu0 %v8582_v2  ;;  %v9061_v2 = vsub.f32 %v4128_v46, %v9055_v5  ;;  %10008 = vst [vmem:[#allocation14_spill] sm:$0xff] %v9063_v49  ;;  %v9208_v46 = vand.u32 4294901760, %v4117_v40 }
 0x497   :  { %6336 = vmatpush3.msra.mxu1 %v8604_v63  ;;  %6291 = vmatprep.subr.mxu0 %v8602_v41  ;;  %v9072_v63 = vsub.f32 %v4127_v19, %v9063_v49 }
 0x498   :  { %6337 = vmatprep.subr.mxu1 %v8626_v42  ;;  %6292 = vmatpush3.msra.mxu0 %v8602_v41  ;;  %10007 = vst [vmem:[#allocation7_spill] sm:$0xff] %v9061_v2  ;;  %v9755_v41 = vand.u32 4294901760, %v9061_v2  ;;  %10028 = vst [vmem:[#allocation16_spill] sm:$0xff] %v9208_v46 }
 0x499   :  { %6338 = vmatpush3.msra.mxu1 %v8626_v42  ;;  %6249 = vmatmul.mubr.f32.gmra.mxu0 %v8877_v28  ;;  %10009 = vst [vmem:[#allocation8_spill] sm:$0xff] %v9072_v63  ;;  %v9754_v43 = vand.u32 4294901760, %v9072_v63 }
 0x49a   :  { %6293 = vmatprep.subr.mxu0 %v8621_v3  ;;  %6339 = vmatprep.subr.mxu1 %v8650_v32  ;;  %v4224_v42 = vsub.f32 %v9061_v2, %v9755_v41 }
 0x49b   :  { %6294 = vmatpush3.msra.mxu0 %v8621_v3  ;;  %6321 = vmatprep.mubr.f32.mxu0 %v8743_v51  ;;  %v4125_v3 = vld [vmem:[%s9573_s9 + $0x60] sm:$0xff] }
 0x49c   :  { %6340 = vmatpush3.msra.mxu1 %v8650_v32  ;;  %6295 = vmatprep.subr.mxu0 %v8643_v11  ;;  %v9089_v32 = vand.u32 4294901760, %v4125_v3 }
 0x49d   :  { %6341 = vmatprep.subr.mxu1 %v8673_v0  ;;  %6296 = vmatpush3.msra.mxu0 %v8643_v11  ;;  %v9086_v11 = vsub.f32 %v4126_v44, %v9074_v15 }
 0x49e   :  { %6342 = vmatpush3.msra.mxu1 %v8673_v0  ;;  %6297 = vmatprep.subr.mxu0 %v8668_v14  ;;  %10012 = vst [vmem:[#allocation20_spill] sm:$0xff] %v9089_v32  ;;  %v4231_v0 = vsub.f32 %v9072_v63, %v9754_v43 }
 0x49f   :  { %6343 = vmatprep.subr.mxu1 %v8681_v34  ;;  %6298 = vmatpush3.msra.mxu0 %v8668_v14  ;;  %10011 = vst [vmem:[#allocation9_spill] sm:$0xff] %v9086_v11  ;;  %v4225_v14 = vand.u32 4294901760, %v4224_v42  ;;  %v9753_v9 = vand.u32 4294901760, %v9086_v11  ;;  %v4116_v42 = vld [vmem:[%s9573_s9 + $0x18] sm:$0xff] }
 0x4a0   :  { %6344 = vmatpush3.msra.mxu1 %v8681_v34  ;;  %6299 = vmatprep.subr.mxu0 %v8686_v17  ;;  %v9099_v34 = vand.u32 4294901760, %v4124_v6 }
 0x4a1   :  { %6345 = vmatprep.subr.mxu1 %v8710_v59  ;;  %6300 = vmatpush3.msra.mxu0 %v8686_v17  ;;  %v9102_v17 = vsub.f32 %v4125_v3, %v9089_v32  ;;  %v4238_v35 = vsub.f32 %v9086_v11, %v9753_v9 }
 0x4a2   :  { %6346 = vmatpush3.msra.mxu1 %v8710_v59  ;;  %6301 = vmatprep.subr.mxu0 %v8705_v4  ;;  %10013 = vst [vmem:[#allocation10_spill] sm:$0xff] %v9099_v34  ;;  %v9112_v59 = vsub.f32 %v4124_v6, %v9099_v34 }
 0x4a3   :  { %6347 = vmatprep.subr.mxu1 %v8719_v22  ;;  %6302 = vmatpush3.msra.mxu0 %v8705_v4  ;;  %10014 = vst [vmem:[#allocation21_spill] sm:$0xff] %v9102_v17  ;;  %v4232_v4 = vand.u32 4294901760, %v4231_v0  ;;  %v4239_v24 = vand.u32 4294901760, %v4238_v35  ;;  %v9228_v0 = vsub.f32 %v4117_v40, %v9208_v46  ;;  %v4115_v35 = vld [vmem:[%s9573_s9 + $0x10] sm:$0xff] }
 0x4a4   :  { %6348 = vmatpush3.msra.mxu1 %v8719_v22  ;;  %6303 = vmatprep.subr.mxu0 %v8727_v18  ;;  %10015 = vst [vmem:[#allocation11_spill] sm:$0xff] %v9112_v59  ;;  %v9114_v22 = vand.u32 4294901760, %v4123_v55  ;;  %v9751_v51 = vand.u32 4294901760, %v9112_v59 }
 0x4a5   :  { %6349 = vmatprep.subr.mxu1 %v8745_v21  ;;  %6304 = vmatpush3.msra.mxu0 %v8727_v18  ;;  %v9752_v18 = vand.u32 4294901760, %v9102_v17  ;;  %10029 = vst [vmem:[#allocation18_spill] sm:$0xff] %v9228_v0 }
 0x4a6   :  { %6350 = vmatpush3.msra.mxu1 %v8745_v21  ;;  %6305 = vmatprep.subr.mxu0 %v8733_v52  ;;  %10016 = vst [vmem:[#allocation13_spill] sm:$0xff] %v9114_v22  ;;  %v9125_v21 = vsub.f32 %v4123_v55, %v9114_v22  ;;  %v4252_v13 = vsub.f32 %v9112_v59, %v9751_v51  ;;  %v9230_v55 = vand.u32 4294901760, %v4116_v42 }
 0x4a7   :  { %6351 = vmatprep.subr.mxu1 %v8758_v10  ;;  %6306 = vmatpush3.msra.mxu0 %v8733_v52  ;;  %v4122_v52 = vld [vmem:[%s9573_s9 + $0x48] sm:$0xff] }
 0x4a8   :  { %6352 = vmatpush3.msra.mxu1 %v8758_v10  ;;  %6307 = vmatprep.subr.mxu0 %v8764_v53  ;;  %10017 = vst [vmem:[#allocation15_spill] sm:$0xff] %v9125_v21  ;;  %v9127_v16 = vand.u32 4294901760, %v4122_v52  ;;  %v4245_v10 = vsub.f32 %v9102_v17, %v9752_v18  ;;  %v9750_v62 = vand.u32 4294901760, %v9125_v21  ;;  %v4253_v7 = vand.u32 4294901760, %v4252_v13  ;;  %10030 = vst [vmem:[#allocation19_spill] sm:$0xff] %v9230_v55 }
 0x4a9   :  { %6353 = vmatprep.subr.mxu1 %v8776_v50  ;;  %6308 = vmatpush3.msra.mxu0 %v8764_v53  ;;  %v4121_v53 = vld [vmem:[%s9573_s9 + $0x40] sm:$0xff] }
 0x4aa   :  { %6354 = vmatpush3.msra.mxu1 %v8776_v50  ;;  %6309 = vmatprep.subr.mxu0 %v8780_v36  ;;  %10018 = vst [vmem:[#allocation23_spill] sm:$0xff] %v9127_v16  ;;  %v9143_v50 = vsub.f32 %v4122_v52, %v9127_v16 }
 0x4ab   :  { %6355 = vmatprep.subr.mxu1 %v8790_v8  ;;  %6310 = vmatpush3.msra.mxu0 %v8780_v36  ;;  %v9145_v36 = vand.u32 4294901760, %v4121_v53 }
 0x4ac   :  { %6356 = vmatpush3.msra.mxu1 %v8790_v8  ;;  %6311 = vmatprep.subr.mxu0 %v8798_v47  ;;  %10019 = vst [vmem:[#allocation24_spill] sm:$0xff] %v9143_v50  ;;  %v4246_v8 = vand.u32 4294901760, %v4245_v10  ;;  %v9743_v10 = vand.u32 4294901760, %v9228_v0 }
 0x4ad   :  { %6357 = vmatprep.subr.mxu1 %v8803_v56  ;;  %6312 = vmatpush3.msra.mxu0 %v8798_v47  ;;  %10020 = vst [vmem:[#allocation27_spill] sm:$0xff] %v9145_v36  ;;  %v4120_v47 = vld [vmem:[%s9573_s9 + $0x38] sm:$0xff]  ;;  %v9160_v25 = vsub.f32 %v4121_v53, %v9145_v36 }
 0x4ae   :  { %6358 = vmatpush3.msra.mxu1 %v8803_v56  ;;  %6313 = vmatprep.subr.mxu0 %v8811_v39  ;;  %v4259_v56 = vsub.f32 %v9125_v21, %v9750_v62 }
 0x4af   :  { %6360 = vmatmul.mubr.f32.vlgmr.msra.gmra.mxu1 %v8853_v1  ;;  %6314 = vmatpush3.msra.mxu0 %v8811_v39  ;;  %v9748_v39 = vand.u32 4294901760, %v9143_v50  ;;  %10021 = vst [vmem:[#allocation28_spill] sm:$0xff] %v9160_v25 }
 0x4b0   :  { %6362 = vmatprep.mubr.f32.mxu1 %v8857_v48  ;;  %6315 = vmatprep.subr.mxu0 %v8824_v33 }
 0x4b1   :  { %6316 = vmatpush3.msra.mxu0 %v8824_v33  ;;  %6400 = vmatprep.subr.mxu1 %v10005_v61  ;;  %v9148_v30 = vpop.f32.mrf.mxu1  ;;  %v9163_v33 = vand.u32 4294901760, %v4120_v47 }
 0x4b2   :  { %6317 = vmatprep.subr.mxu0 %v8835_v27  ;;  %6401 = vmatpush3.msra.mxu1 %v4225_v14  ;;  %v9744_v14 = vand.u32 4294901760, %v9206_v60 }
 0x4b3   :  { %6363 = vmatmul.mubr.f32.gmra.mxu1 %v8865_v45  ;;  %6318 = vmatpush3.msra.mxu0 %v8835_v27  ;;  %10022 = vst [vmem:[#allocation29_spill] sm:$0xff] %v9163_v33  ;;  %v4260_v27 = vand.u32 4294901760, %v4259_v56  ;;  %v9177_v57 = vpop.f32.mrf.mxu1  ;;  %v9182_v58 = vsub.f32 %v4120_v47, %v9163_v33  ;;  %v9250_v47 = vand.u32 4294901760, %v4115_v35 }
 0x4b4   :  { %6319 = vmatprep.subr.mxu0 %v8842_v12  ;;  %6432 = vmatprep.mubr.msk.f32.mxu1 %vm6615_vm1, %v10005_v61 }
 0x4b5   :  { %6320 = vmatpush3.msra.mxu0 %v8842_v12  ;;  %6402 = vmatprep.subr.mxu1 %v10005_v61  ;;  %v4266_v12 = vsub.f32 %v9143_v50, %v9748_v39  ;;  %10024 = vst [vmem:[#allocation31_spill] sm:$0xff] %v9182_v58  ;;  %v9746_v31 = vand.u32 4294901760, %v9182_v58  ;;  %v9211_v19 = vpop.f32.mrf.mxu1  ;;  %10032 = vst [vmem:[#allocation33_spill] sm:$0xff] %v9250_v47  ;;  %v9265_v26 = vsub.f32 %v4115_v35, %v9250_v47 }
 0x4b6   :  { %6322 = vmatmul.mubr.f32.vlgmr.msra.gmra.mxu0 %v8853_v1  ;;  %6365 = vmatprep.subr.mxu0 %v10005_v61  ;;  %v9747_v1 = vand.u32 4294901760, %v9160_v25 }
 0x4b7   :  { %6324 = vmatprep.mubr.f32.mxu0 %v8857_v48  ;;  %6366 = vmatpush3.msra.mxu0 %v9055_v5  ;;  %v9174_v48 = vand.u32 4294901760, %v4119_v29  ;;  %v4267_v28 = vand.u32 4294901760, %v4266_v12  ;;  %v4280_v3 = vsub.f32 %v9182_v58, %v9746_v31  ;;  %v9243_v53 = vpop.f32.mrf.mxu1  ;;  %10034 = vst [vmem:[#allocation34_spill] sm:$0xff] %v9265_v26 }
 0x4b8   :  { %6367 = vmatprep.subr.mxu0 %v10005_v61  ;;  %6403 = vmatpush3.msra.mxu1 %v4232_v4  ;;  %v4273_v37 = vsub.f32 %v9160_v25, %v9747_v1 }
 0x4b9   :  { %6368 = vmatpush3.msra.mxu0 %v9063_v49  ;;  %6404 = vmatprep.subr.mxu1 %v10005_v61  ;;  %10023 = vst [vmem:[#allocation30_spill] sm:$0xff] %v9174_v48  ;;  %v9193_v20 = vsub.f32 %v4119_v29, %v9174_v48  ;;  %v4281_v4 = vand.u32 4294901760, %v4280_v3  ;;  %v4301_v29 = vsub.f32 %v9228_v0, %v9743_v10 }
 0x4ba   :  { %6325 = vmatmul.mubr.f32.gmra.mxu0 %v8865_v45  ;;  %6369 = vmatprep.subr.mxu0 %v10005_v61  ;;  %v9179_v45 = vpop.f32.mrf.mxu0  ;;  %v4274_v38 = vand.u32 4294901760, %v4273_v37  ;;  %v9278_v3 = vpop.f32.mrf.mxu1 }
 0x4bb   :  { %6397 = vmatprep.mubr.msk.f32.mxu0 %vm6615_vm1, %v10005_v61  ;;  %6370 = vmatpush3.msra.mxu0 %v9074_v15  ;;  %10025 = vst [vmem:[#allocation6_spill] sm:$0xff] %v9193_v20  ;;  %v9745_v23 = vand.u32 4294901760, %v9193_v20  ;;  %v4302_v37 = vand.u32 4294901760, %v4301_v29 }
 0x4bc   :  { %6371 = vmatprep.subr.mxu0 %v10005_v61  ;;  %6405 = vmatpush3.msra.mxu1 %v4239_v24  ;;  %v9213_v44 = vpop.f32.mrf.mxu0  ;;  %v4294_v24 = vsub.f32 %v9206_v60, %v9744_v14 }
 0x4bd   :  { %6372 = vmatpush3.msra.mxu0 %v9089_v32  ;;  %6406 = vmatprep.subr.mxu1 %v10005_v61  ;;  %v4287_v6 = vsub.f32 %v9193_v20, %v9745_v23  ;;  %v5433_v59 = vadd.f32 %v9213_v44, %v9179_v45 }
 0x4be   :  { %6373 = vmatprep.subr.mxu0 %v10005_v61  ;;  %6407 = vmatpush3.msra.mxu1 %v4246_v8  ;;  %v9248_v8 = vsub.f32 %v4116_v42, %v9230_v55  ;;  %v4295_v56 = vand.u32 4294901760, %v4294_v24 }
 0x4bf   :  { %6374 = vmatpush3.msra.mxu0 %v9099_v34  ;;  %6408 = vmatprep.subr.mxu1 %v10005_v61  ;;  %v4288_v52 = vand.u32 4294901760, %v4287_v6  ;;  %v9245_v13 = vpop.f32.mrf.mxu0 }
 0x4c0   :  { %6375 = vmatprep.subr.mxu0 %v10005_v61  ;;  %6409 = vmatpush3.msra.mxu1 %v4253_v7  ;;  %10031 = vst [vmem:[#allocation22_spill] sm:$0xff] %v9248_v8  ;;  %v4114_v7 = vld [vmem:[%s9573_s9 + $0x8] sm:$0xff]  ;;  %v9741_v12 = vand.u32 4294901760, %v9248_v8 }
 0x4c1   :  { %6376 = vmatpush3.msra.mxu0 %v9114_v22  ;;  %6410 = vmatprep.subr.mxu1 %v10005_v61  ;;  %v9280_v42 = vpop.f32.mrf.mxu0  ;;  %v5477_v22 = vadd.f32 %v9177_v57, %v9148_v30 }
 0x4c2   :  { %6377 = vmatprep.subr.mxu0 %v10005_v61  ;;  %6411 = vmatpush3.msra.mxu1 %v4260_v27  ;;  %v9260_v27 = vand.u32 4294901760, %v4114_v7  ;;  %v4308_v6 = vsub.f32 %v9248_v8, %v9741_v12 }
 0x4c3   :  { %6378 = vmatpush3.msra.mxu0 %v9127_v16  ;;  %6412 = vmatprep.subr.mxu1 %v10005_v61  ;;  %v5480_v16 = vadd.f32 %v9243_v53, %v9211_v19  ;;  %v2676_v32 = vadd.f32 %v5477_v22, %v5433_v59 }
 0x4c4   :  { %6379 = vmatprep.subr.mxu0 %v10005_v61  ;;  %6413 = vmatpush3.msra.mxu1 %v4267_v28  ;;  %10033 = vst [vmem:[#allocation32_spill] sm:$0xff] %v9260_v27  ;;  %v4113_v28 = vld [vmem:[%s9573_s9] sm:$0xff]  ;;  %v9273_v40 = vsub.f32 %v4114_v7, %v9260_v27  ;;  %v4309_v24 = vand.u32 4294901760, %v4308_v6 }
 0x4c5   :  { %6380 = vmatpush3.msra.mxu0 %v9145_v36  ;;  %6414 = vmatprep.subr.mxu1 %v10005_v61 }
 0x4c6   :  { %6381 = vmatprep.subr.mxu0 %v10005_v61  ;;  %6415 = vmatpush3.msra.mxu1 %v4274_v38  ;;  %10035 = vst [vmem:[#allocation35_spill] sm:$0xff] %v9273_v40  ;;  %v9275_v38 = vand.u32 4294901760, %v4113_v28  ;;  %v9742_v35 = vand.u32 4294901760, %v9273_v40 }
 0x4c7   :  { %6382 = vmatpush3.msra.mxu0 %v9163_v33  ;;  %6416 = vmatprep.subr.mxu1 %v10005_v61  ;;  %v5436_v33 = vadd.f32 %v9280_v42, %v9245_v13 }
 0x4c8   :  { %6383 = vmatprep.subr.mxu0 %v10005_v61  ;;  %6417 = vmatpush3.msra.mxu1 %v4281_v4  ;;  %10036 = vst [vmem:[#allocation36_spill] sm:$0xff] %v9275_v38  ;;  %v9740_v4 = vand.u32 4294901760, %v9265_v26 }
 0x4c9   :  { %6384 = vmatpush3.msra.mxu0 %v9174_v48  ;;  %6418 = vmatprep.subr.mxu1 %v10005_v61  ;;  %v2683_v34 = vadd.f32 %v5480_v16, %v5436_v33 }
 0x4ca   :  { %6385 = vmatprep.subr.mxu0 %v10005_v61  ;;  %6419 = vmatpush3.msra.mxu1 %v4288_v52  ;;  %v9290_v52 = vsub.f32 %v4113_v28, %v9275_v38  ;;  %v4315_v7 = vsub.f32 %v9265_v26, %v9740_v4  ;;  %v9303_v28 = vpop.f32.mrf.mxu1 }
 0x4cb   :  { %6386 = vmatpush3.msra.mxu0 %v9195_v54  ;;  %6420 = vmatprep.subr.mxu1 %v10005_v61  ;;  %v5483_v44 = vadd.f32 %v9303_v28, %v9278_v3 }
 0x4cc   :  { %6387 = vmatprep.subr.mxu0 %v10005_v61  ;;  %6421 = vmatpush3.msra.mxu1 %v4295_v56  ;;  %10037 = vst [vmem:[#allocation37_spill] sm:$0xff] %v9290_v52  ;;  %v4322_v56 = vsub.f32 %v9273_v40, %v9742_v35  ;;  %v9749_v29 = vand.u32 4294901760, %v9290_v52  ;;  %v4316_v6 = vand.u32 4294901760, %v4315_v7  ;;  %v5484_v10 = vpop.f32.mrf.mxu1 }
 0x4cd   :  { %6388 = vmatpush3.msra.mxu0 %v9208_v46  ;;  %6422 = vmatprep.subr.mxu1 %v10005_v61 }
 0x4ce   :  { %6389 = vmatprep.subr.mxu0 %v10005_v61  ;;  %6423 = vmatpush3.msra.mxu1 %v4302_v37  ;;  %v9305_v37 = vpop.f32.mrf.mxu0  ;;  %v4323_v4 = vand.u32 4294901760, %v4322_v56  ;;  %v4329_v12 = vsub.f32 %v9290_v52, %v9749_v29 }
 0x4cf   :  { %6390 = vmatpush3.msra.mxu0 %v9230_v55  ;;  %6424 = vmatprep.subr.mxu1 %v10005_v61 }
 0x4d0   :  { %6391 = vmatprep.subr.mxu0 %v10005_v61  ;;  %6425 = vmatpush3.msra.mxu1 %v4309_v24  ;;  %v4330_v35 = vand.u32 4294901760, %v4329_v12  ;;  %v5438_v14 = vpop.f32.mrf.mxu0  ;;  %v5485_v24 = vpop.f32.mrf.mxu1 }
 0x4d1   :  { %6392 = vmatpush3.msra.mxu0 %v9250_v47  ;;  %6426 = vmatprep.subr.mxu1 %v10005_v61  ;;  %v5439_v13 = vadd.f32 %v5438_v14, %v9305_v37 }
 0x4d2   :  { %6393 = vmatprep.subr.mxu0 %v10005_v61  ;;  %6427 = vmatpush3.msra.mxu1 %v4316_v6  ;;  %v5440_v7 = vpop.f32.mrf.mxu0 }
 0x4d3   :  { %6394 = vmatpush3.msra.mxu0 %v9260_v27  ;;  %6428 = vmatprep.subr.mxu1 %v10005_v61  ;;  %v2690_v33 = vadd.f32 %v5483_v44, %v5439_v13 }
 0x4d4   :  { %6395 = vmatprep.subr.mxu0 %v10005_v61  ;;  %6429 = vmatpush3.msra.mxu1 %v4323_v4  ;;  %v5441_v56 = vpop.f32.mrf.mxu0 }
 0x4d5   :  { %6396 = vmatpush3.msra.mxu0 %v9275_v38  ;;  %6430 = vmatprep.subr.mxu1 %v10005_v61  ;;  %v5442_v2 = vadd.f32 %v5441_v56, %v5440_v7 }
 0x4d6   :  { %6435 = vmatprep.subr.mxu0 %v10005_v61  ;;  %6431 = vmatpush3.msra.mxu1 %v4330_v35 }
 0x4d7   :  { %6470 = vmatprep.subr.mxu1 %v10005_v61  ;;  %v5563_v23 = vpop.f32.mrf.mxu1  ;;  %v5486_v61 = vadd.f32 %v5485_v24, %v5484_v10 }
 0x4d9   :  { %v5564_v31 = vpop.f32.mrf.mxu1  ;;  %v2697_v19 = vadd.f32 %v5486_v61, %v5442_v2 }
 0x4da   :  { %v5565_v30 = vadd.f32 %v5564_v31, %v5563_v23 }
 0x4dc   :  { %v5566_v39 = vpop.f32.mrf.mxu1 }
 0x4de   :  { %v5567_v6 = vpop.f32.mrf.mxu1 }
 0x4e0   :  { %v5519_v1 = vpop.f32.mrf.mxu0 }
 0x4e1   :  { %v5569_v51 = vpop.f32.mrf.mxu1 }
 0x4e2   :  { %v5520_v29 = vpop.f32.mrf.mxu0 }
 0x4e3   :  { %v5570_v18 = vpop.f32.mrf.mxu1  ;;  %v5521_v63 = vadd.f32 %v5520_v29, %v5519_v1 }
 0x4e4   :  { %v5571_v37 = vadd.f32 %v5570_v18, %v5569_v51 }
 0x4e5   :  { %v2835_v5 = vadd.f32 %v5521_v63, %v2676_v32 }
 0x4e6   :  { %v5522_v62 = vpop.f32.mrf.mxu0 }
 0x4e7   :  { %v5572_v4 = vpop.f32.mrf.mxu1  ;;  %v2970_v10 = vadd.f32 %v5565_v30, %v2835_v5 }
 0x4e8   :  { %v5523_v12 = vpop.f32.mrf.mxu0 }
 0x4e9   :  { %v5573_v41 = vpop.f32.mrf.mxu1  ;;  %v5524_v11 = vadd.f32 %v5523_v12, %v5522_v62  ;;  %v5568_v62 = vadd.f32 %v5567_v6, %v5566_v39 }
 0x4ea   :  { %v5574_v14 = vadd.f32 %v5573_v41, %v5572_v4 }
 0x4eb   :  { %v2844_v42 = vadd.f32 %v5524_v11, %v2683_v34 }
 0x4ec   :  { %v5525_v9 = vpop.f32.mrf.mxu0 }
 0x4ed   :  { %v2981_v57 = vadd.f32 %v5568_v62, %v2844_v42 }
 0x4ee   :  { %v5526_v43 = vpop.f32.mrf.mxu0 }
 0x4ef   :  { %v5527_v53 = vadd.f32 %v5526_v43, %v5525_v9 }
 0x4f1   :  { %v5528_v35 = vpop.f32.mrf.mxu0  ;;  %v2853_v11 = vadd.f32 %v5527_v53, %v2690_v33 }
 0x4f3   :  { %v5529_v40 = vpop.f32.mrf.mxu0 }
 0x4f4   :  { %v5530_v45 = vadd.f32 %v5529_v40, %v5528_v35 }
 0x4f6   :  { %v2862_v59 = vadd.f32 %v5530_v45, %v2697_v19 }
 0x4f8   :  { %v3003_v43 = vadd.f32 %v5574_v14, %v2862_v59 }
 0x4ff   :  { %v5651_v52 = vpop.f32.mrf.mxu1 }
 0x501   :  { %v5652_v26 = vpop.f32.mrf.mxu1 }
 0x502   :  { %v5653_v39 = vadd.f32 %v5652_v26, %v5651_v52 }
 0x504   :  { %v5654_v38 = vpop.f32.mrf.mxu1 }
 0x506   :  { %v5655_v27 = vpop.f32.mrf.mxu1 }
 0x507   :  { %v5656_v63 = vadd.f32 %v5655_v27, %v5654_v38 }
 0x508   :  { %v5607_v8 = vpop.f32.mrf.mxu0 }
 0x509   :  { %v9314_v47 = vpop.f32.mrf.mxu1 }
 0x50a   :  { %v5608_v0 = vpop.f32.mrf.mxu0 }
 0x50b   :  { %v5658_v55 = vpop.f32.mrf.mxu1  ;;  %v5609_v22 = vadd.f32 %v5608_v0, %v5607_v8 }
 0x50d   :  { %v3171_v61 = vadd.f32 %v5609_v22, %v2970_v10 }
 0x50e   :  { %v5610_v60 = vpop.f32.mrf.mxu0 }
 0x50f   :  { %v5660_v46 = vpop.f32.mrf.mxu1  ;;  %v3296_v8 = vadd.f32 %v5653_v39, %v3171_v61 }
 0x510   :  { %v5611_v20 = vpop.f32.mrf.mxu0 }
 0x511   :  { %v5661_v54 = vpop.f32.mrf.mxu1  ;;  %v5612_v12 = vadd.f32 %v5611_v20, %v5610_v60  ;;  %v2992_v20 = vadd.f32 %v5571_v37, %v2853_v11 }
 0x512   :  { %v5662_v60 = vadd.f32 %v5661_v54, %v5660_v46 }
 0x513   :  { %v3178_v34 = vadd.f32 %v5612_v12, %v2981_v57 }
 0x514   :  { %v5613_v58 = vpop.f32.mrf.mxu0 }
 0x515   :  { %v3303_v23 = vadd.f32 %v5656_v63, %v3178_v34 }
 0x516   :  { %v5614_v25 = vpop.f32.mrf.mxu0 }
 0x517   :  { %v5615_v2 = vadd.f32 %v5614_v25, %v5613_v58 }
 0x519   :  { %v5616_v50 = vpop.f32.mrf.mxu0  ;;  %v3185_v0 = vadd.f32 %v5615_v2, %v2992_v20 }
 0x51b   :  { %v5617_v21 = vpop.f32.mrf.mxu0 }
 0x51c   :  { %v5618_v40 = vadd.f32 %v5617_v21, %v5616_v50  ;;  %v5659_v21 = vadd.f32 %v5658_v55, %v9314_v47 }
 0x51e   :  { %v3192_v31 = vadd.f32 %v5618_v40, %v3003_v43  ;;  %v3310_v27 = vadd.f32 %v5659_v21, %v3185_v0 }
 0x520   :  { %v3317_v51 = vadd.f32 %v5662_v60, %v3192_v31 }
 0x527   :  { %v6209_v48 = vpop.f32.mrf.mxu1 }
 0x529   :  { %v3588_v36 = vpop.f32.mrf.mxu1 }
 0x52c   :  { %v6212_v15 = vpop.f32.mrf.mxu1 }
 0x52e   :  { %v3600_v1 = vpop.f32.mrf.mxu1 }
 0x530   :  { %v6171_v17 = vpop.f32.mrf.mxu0 }
 0x531   :  { %v3418_v5 = vadd.f32 %v6171_v17, %v3303_v23 }
 0x532   :  { %v3407_v49 = vpop.f32.mrf.mxu0 }
 0x533   :  { %v3408_v18 = vadd.f32 %v3407_v49, %v3296_v8  ;;  %v3595_v25 = vadd.f32 %v6209_v48, %v3418_v5 }
 0x535   :  { %v6174_v16 = vpop.f32.mrf.mxu0  ;;  %v3589_v52 = vadd.f32 %v3588_v36, %v3408_v18  ;;  %v10040_v18 = vld [vmem:[#allocation14_spill] sm:$0xff] }
 0x536   :  { %v3438_v50 = vadd.f32 %v6174_v16, %v3317_v51 }
 0x537   :  { %v3427_v3 = vpop.f32.mrf.mxu0 }
 0x538   :  { %v3428_v24 = vadd.f32 %v3427_v3, %v3310_v27  ;;  %v3607_v54 = vadd.f32 %v6212_v15, %v3438_v50  ;;  %v10041_v50 = vld [vmem:[#allocation17_spill] sm:$0xff] }
 0x53a   :  { %v3601_v6 = vadd.f32 %v3600_v1, %v3428_v24  ;;  %v10045_v24 = vld [vmem:[#allocation8_spill] sm:$0xff] }
 0x54b   :  { %v6285_v29 = vpop.f32.mrf.mxu1 }
 0x54d   :  { %v3820_v32 = vpop.f32.mrf.mxu1 }
 0x550   :  { %v6288_v41 = vpop.f32.mrf.mxu1 }
 0x552   :  { %v3836_v58 = vpop.f32.mrf.mxu1 }
 0x554   :  { %v6247_v9 = vpop.f32.mrf.mxu0 }
 0x555   :  { %v3718_v26 = vadd.f32 %v6247_v9, %v3595_v25  ;;  %v10042_v25 = vld [vmem:[#allocation20_spill] sm:$0xff] }
 0x556   :  { %v3710_v28 = vpop.f32.mrf.mxu0 }
 0x557   :  { %v3711_v56 = vadd.f32 %v3710_v28, %v3589_v52  ;;  %v3829_v4 = vadd.f32 %v6285_v29, %v3718_v26  ;;  %v10039_v28 = vmov 0.0   ;;  %v10046_v26 = vld [vmem:[#allocation13_spill] sm:$0xff] }
 0x558   :  { %v10047_v52 = vld [vmem:[#allocation9_spill] sm:$0xff] }
 0x559   :  { %v6250_v38 = vpop.f32.mrf.mxu0  ;;  %v3821_v47 = vadd.f32 %v3820_v32, %v3711_v56  ;;  %v10049_v56 = vld [vmem:[#allocation21_spill] sm:$0xff] }
 0x55a   :  { %v3732_v17 = vadd.f32 %v6250_v38, %v3607_v54  ;;  %v10044_v38 = vld [vmem:[#allocation10_spill] sm:$0xff]  ;;  %v10050_v54 = vld [vmem:[#allocation27_spill] sm:$0xff] }
 0x55b   :  { %v3724_v46 = vpop.f32.mrf.mxu0 }
 0x55c   :  { %v3725_v55 = vadd.f32 %v3724_v46, %v3601_v6  ;;  %v3845_v48 = vadd.f32 %v6288_v41, %v3732_v17  ;;  %v10038_v41 = vld [vmem:[#allocation12_spill] sm:$0xff]  ;;  %v10051_v46 = vld [vmem:[#allocation11_spill] sm:$0xff]  ;;  %v10052_v17 = vld [vmem:[#allocation29_spill] sm:$0xff] }
 0x55d   :  { %v10053_v6 = vld [vmem:[#allocation15_spill] sm:$0xff] }
 0x55e   :  { %v3837_v15 = vadd.f32 %v3836_v58, %v3725_v55  ;;  %v10043_v58 = vld [vmem:[#allocation7_spill] sm:$0xff]  ;;  %v10057_v55 = vld [vmem:[#allocation28_spill] sm:$0xff] }
 0x56f   :  { %v6361_v7 = vpop.f32.mrf.mxu1 }
 0x571   :  { %v4068_v35 = vpop.f32.mrf.mxu1 }
 0x573   :  { %v6364_v44 = vpop.f32.mrf.mxu1 }
 0x575   :  { %v4080_v16 = vpop.f32.mrf.mxu1 }
 0x576   :  { %v6323_v13 = vpop.f32.mrf.mxu0 }
 0x577   :  { %v3970_v49 = vadd.f32 %v6323_v13, %v3829_v4  ;;  %v10054_v4 = vld [vmem:[#allocation30_spill] sm:$0xff]  ;;  %v10056_v13 = vld [vmem:[#allocation25_spill] sm:$0xff] }
 0x578   :  { %v3963_v42 = vpop.f32.mrf.mxu0 }
 0x579   :  { %v3964_v45 = vadd.f32 %v3963_v42, %v3821_v47  ;;  %v9328_v62 = vadd.f32 %v6361_v7, %v3970_v49  ;;  %v10048_v7 = vld [vmem:[#allocation23_spill] sm:$0xff]  ;;  %v10058_v49 = vld [vmem:[#allocation16_spill] sm:$0xff] }
 0x57a   :  { %v6326_v19 = vpop.f32.mrf.mxu0  ;;  %v10059_v47 = vld [vmem:[#allocation31_spill] sm:$0xff] }
 0x57b   :  { %v9330_v36 = vadd.f32 %v4068_v35, %v3964_v45  ;;  %v3982_v53 = vadd.f32 %v6326_v19, %v3845_v48  ;;  %v4100_v33 = vmul.f32 %v9328_v62, %v9328_v62  ;;  %v10055_v35 = vld [vmem:[#allocation24_spill] sm:$0xff]  ;;  %v10060_v42 = vld [vmem:[#allocation19_spill] sm:$0xff]  ;;  %v10061_v45 = vld [vmem:[#allocation6_spill] sm:$0xff] }
 0x57c   :  { %v3975_v12 = vpop.f32.mrf.mxu0  ;;  %v10062_v48 = vld [vmem:[#allocation33_spill] sm:$0xff]  ;;  %v10064_v19 = vld [vmem:[#allocation32_spill] sm:$0xff] }
 0x57d   :  { %v4099_v30 = vmul.f32 %v9330_v36, %v9330_v36  ;;  %v3976_v1 = vadd.f32 %v3975_v12, %v3837_v15  ;;  %v4090_v59 = vadd.f32 %v9328_v62, %v9330_v36  ;;  %v9338_v22 = vadd.f32 %v6364_v44, %v3982_v53  ;;  %v10063_v44 = vld [vmem:[#allocation26_spill] sm:$0xff]  ;;  %v10066_v15 = vld [vmem:[#allocation36_spill] sm:$0xff] }
 0x57e   :  { %v10065_v53 = vld [vmem:[#allocation18_spill] sm:$0xff] }
 0x57f   :  { %v9340_v57 = vadd.f32 %v4080_v16, %v3976_v1  ;;  %v4103_v10 = vadd.f32 %v4100_v33, %v4099_v30  ;;  %v4102_v11 = vmul.f32 %v9338_v22, %v9338_v22  ;;  %v10067_v12 = vld [vmem:[#allocation22_spill] sm:$0xff]  ;;  %v10069_v1 = vld [vmem:[#allocation35_spill] sm:$0xff]  ;;  %v10070_v16 = vld [vmem:[#allocation37_spill] sm:$0xff]  ;;  %v10071_v33 = vand.u32 4294901760, %v10043_v58 }
 0x580   :  { %v10068_v30 = vld [vmem:[#allocation34_spill] sm:$0xff] }
 0x581   :  { %v4091_v29 = vadd.f32 %v4090_v59, %v9340_v57  ;;  %v4101_v14 = vmul.f32 %v9340_v57, %v9340_v57  ;;  %v10072_v59 = vand.u32 4294901760, %v10045_v24 }
 0x583   :  { %v4092_v34 = vadd.f32 %v4091_v29, %v9338_v22  ;;  %v4104_v40 = vadd.f32 %v4103_v10, %v4101_v14  ;;  %v10073_v10 = vand.u32 4294901760, %v10047_v52  ;;  %v10074_v29 = vand.u32 4294901760, %v10049_v56 }
 0x584   :  { %v10075_v14 = vand.u32 4294901760, %v10051_v46 }
 0x585   :  { %v4093_v37 = vrot.slane %v4092_v34, 4  ;;  %v4105_v3 = vadd.f32 %v4104_v40, %v4102_v11  ;;  %v10076_v11 = vand.u32 4294901760, %v10053_v6  ;;  %v10078_v40 = vand.u32 4294901760, %v10057_v55 }
 0x587   :  { %v4094_v63 = vadd.f32 %v4093_v37, %v4092_v34  ;;  %v4106_v61 = vrot.slane %v4105_v3, 4  ;;  %v10077_v34 = vand.u32 4294901760, %v10055_v35  ;;  %v10079_v37 = vand.u32 4294901760, %v10059_v47 }
 0x589   :  { %v4095_v2 = vrot.slane %v4094_v63, 2  ;;  %v4107_v43 = vadd.f32 %v4106_v61, %v4105_v3  ;;  %v10080_v3 = vand.u32 4294901760, %v10061_v45  ;;  %v10082_v61 = vand.u32 4294901760, %v10065_v53 }
 0x58b   :  { %v4096_v32 = vadd.f32 %v4095_v2, %v4094_v63  ;;  %v4108_v9 = vrot.slane %v4107_v43, 2  ;;  %v10081_v63 = vand.u32 4294901760, %v10063_v44  ;;  %v10083_v2 = vand.u32 4294901760, %v10067_v12 }
 0x58d   :  { %v4097_v39 = vrot.slane %v4096_v32, 1  ;;  %v4109_v20 = vadd.f32 %v4108_v9, %v4107_v43  ;;  %v10084_v43 = vand.u32 4294901760, %v10068_v30  ;;  %v10086_v9 = vand.u32 4294901760, %v10070_v16 }
 0x58f   :  { %v4110_v31 = vrot.slane %v4109_v20, 1  ;;  %v4098_v23 = vadd.f32 %v4097_v39, %v4096_v32  ;;  %v10085_v32 = vand.u32 4294901760, %v10069_v1  ;;  %v4807_v39 = vld [vmem:[%s9574_s10] sm:$0xff] }
 0x591   :  { %v4111_v60 = vadd.f32 %v4110_v31, %v4109_v20  ;;  %v4842_v20 = vand.u32 4294901760, %v4807_v39 }
 0x593   :  { %v4112_v0 = vsel %vm1055_vm2, %v4098_v23, %v4111_v60  ;;  %v9519_v31 = vsub.f32 %v4807_v39, %v4842_v20 }
 0x594   :  { %v9349_v5 = vand.u32 4294901760, %v4112_v0 }
 0x595   :  { %v4920_v23 = vand.u32 4294901760, %v9519_v31 }
 0x596   :  { %v9352_v8 = vsub.f32 %v4112_v0, %v9349_v5  ;;  %6433 = vmatmul.mubr.f32.vlgmr.msra.gmra.mxu1 %v9349_v5 }
 0x597   :  { %6471 = vmatpush3.msra.mxu1 %v10038_v41  ;;  %6502 = vmatprep.mubr.msk.f32.mxu1 %vm6615_vm1, %v10039_v28  ;;  %v4921_v60 = vsub.f32 %v9519_v31, %v4920_v23 }
 0x598   :  { %6472 = vmatprep.subr.mxu1 %v10039_v28  ;;  %v4212_v21 = vand.u32 4294901760, %v9352_v8 }
 0x599   :  { %6473 = vmatpush3.msra.mxu1 %v10040_v18  ;;  %v4922_v0 = vand.u32 4294901760, %v4921_v60 }
 0x59a   :  { %6474 = vmatprep.subr.mxu1 %v10039_v28  ;;  %v4213_v51 = vsub.f32 %v9352_v8, %v4212_v21 }
 0x59b   :  { %6475 = vmatpush3.msra.mxu1 %v10041_v50 }
 0x59c   :  { %6476 = vmatprep.subr.mxu1 %v10039_v28  ;;  %v4214_v27 = vand.u32 4294901760, %v4213_v51 }
 0x59d   :  { %6477 = vmatpush3.msra.mxu1 %v10042_v25 }
 0x59e   :  { %6478 = vmatprep.subr.mxu1 %v10039_v28  ;;  %6398 = vmatmul.mubr.f32.vlgmr.msra.gmra.mxu0 %v4214_v27 }
 0x59f   :  { %6436 = vmatpush3.msra.mxu0 %v10043_v58  ;;  %6479 = vmatpush3.msra.mxu1 %v10044_v38 }
 0x5a0   :  { %6437 = vmatprep.subr.mxu0 %v10039_v28  ;;  %6480 = vmatprep.subr.mxu1 %v10039_v28 }
 0x5a1   :  { %6438 = vmatpush3.msra.mxu0 %v10045_v24  ;;  %6481 = vmatpush3.msra.mxu1 %v10046_v26 }
 0x5a2   :  { %6439 = vmatprep.subr.mxu0 %v10039_v28  ;;  %6482 = vmatprep.subr.mxu1 %v10039_v28 }
 0x5a3   :  { %6440 = vmatpush3.msra.mxu0 %v10047_v52  ;;  %6483 = vmatpush3.msra.mxu1 %v10048_v7 }
 0x5a4   :  { %6441 = vmatprep.subr.mxu0 %v10039_v28  ;;  %6484 = vmatprep.subr.mxu1 %v10039_v28 }
 0x5a5   :  { %6442 = vmatpush3.msra.mxu0 %v10049_v56  ;;  %6485 = vmatpush3.msra.mxu1 %v10050_v54 }
 0x5a6   :  { %6443 = vmatprep.subr.mxu0 %v10039_v28  ;;  %6486 = vmatprep.subr.mxu1 %v10039_v28 }
 0x5a7   :  { %6444 = vmatpush3.msra.mxu0 %v10051_v46  ;;  %6487 = vmatpush3.msra.mxu1 %v10052_v17 }
 0x5a8   :  { %6445 = vmatprep.subr.mxu0 %v10039_v28  ;;  %6488 = vmatprep.subr.mxu1 %v10039_v28 }
 0x5a9   :  { %6446 = vmatpush3.msra.mxu0 %v10053_v6  ;;  %6489 = vmatpush3.msra.mxu1 %v10054_v4 }
 0x5aa   :  { %6447 = vmatprep.subr.mxu0 %v10039_v28  ;;  %6490 = vmatprep.subr.mxu1 %v10039_v28 }
 0x5ab   :  { %6448 = vmatpush3.msra.mxu0 %v10055_v35  ;;  %6491 = vmatpush3.msra.mxu1 %v10056_v13 }
 0x5ac   :  { %6449 = vmatprep.subr.mxu0 %v10039_v28  ;;  %6492 = vmatprep.subr.mxu1 %v10039_v28 }
 0x5ad   :  { %6450 = vmatpush3.msra.mxu0 %v10057_v55  ;;  %6493 = vmatpush3.msra.mxu1 %v10058_v49  ;;  %v10087_v55 = vld [vmem:[#allocation5_spill] sm:$0xff] }
 0x5ae   :  { %6451 = vmatprep.subr.mxu0 %v10039_v28  ;;  %6494 = vmatprep.subr.mxu1 %v10039_v28 }
 0x5af   :  { %6452 = vmatpush3.msra.mxu0 %v10059_v47  ;;  %6495 = vmatpush3.msra.mxu1 %v10060_v42 }
 0x5b0   :  { %6453 = vmatprep.subr.mxu0 %v10039_v28  ;;  %6496 = vmatprep.subr.mxu1 %v10039_v28 }
 0x5b1   :  { %6454 = vmatpush3.msra.mxu0 %v10061_v45  ;;  %6497 = vmatpush3.msra.mxu1 %v10062_v48 }
 0x5b2   :  { %6455 = vmatprep.subr.mxu0 %v10039_v28  ;;  %6498 = vmatprep.subr.mxu1 %v10039_v28 }
 0x5b3   :  { %6456 = vmatpush3.msra.mxu0 %v10063_v44  ;;  %6499 = vmatpush3.msra.mxu1 %v10064_v19  ;;  %v4797_v44 = vld [vmem:[%s9576_s8] sm:$0x1] }
 0x5b4   :  { %6457 = vmatprep.subr.mxu0 %v10039_v28  ;;  %6500 = vmatprep.subr.mxu1 %v10039_v28 }
 0x5b5   :  { %6458 = vmatpush3.msra.mxu0 %v10065_v53  ;;  %6501 = vmatpush3.msra.mxu1 %v10066_v15 }
 0x5b6   :  { %6459 = vmatprep.subr.mxu0 %v10039_v28  ;;  %6503 = vmatmul.mubr.f32.vlgmr.msra.gmra.mxu1 %v4212_v21 }
 0x5b7   :  { %6540 = vmatprep.subr.mxu1 %v10039_v28  ;;  %6460 = vmatpush3.msra.mxu0 %v10067_v12 }
 0x5b8   :  { %6541 = vmatpush3.msra.mxu1 %v10038_v41  ;;  %6461 = vmatprep.subr.mxu0 %v10039_v28 }
 0x5b9   :  { %6542 = vmatprep.subr.mxu1 %v10039_v28  ;;  %6462 = vmatpush3.msra.mxu0 %v10068_v30 }
 0x5ba   :  { %6543 = vmatpush3.msra.mxu1 %v10040_v18  ;;  %6463 = vmatprep.subr.mxu0 %v10039_v28 }
 0x5bb   :  { %6544 = vmatprep.subr.mxu1 %v10039_v28  ;;  %6464 = vmatpush3.msra.mxu0 %v10069_v1 }
 0x5bc   :  { %6545 = vmatpush3.msra.mxu1 %v10041_v50  ;;  %6465 = vmatprep.subr.mxu0 %v10039_v28 }
 0x5bd   :  { %6546 = vmatprep.subr.mxu1 %v10039_v28  ;;  %6466 = vmatpush3.msra.mxu0 %v10070_v16 }
 0x5be   :  { %6467 = vmatprep.mubr.msk.f32.mxu0 %vm6615_vm1, %v10039_v28  ;;  %6547 = vmatpush3.msra.mxu1 %v10042_v25 }
 0x5bf   :  { %6468 = vmatmul.mubr.f32.vlgmr.msra.gmra.mxu0 %v9352_v8  ;;  %6505 = vmatprep.subr.mxu0 %v10039_v28 }
 0x5c0   :  { %6548 = vmatprep.subr.mxu1 %v10039_v28  ;;  %6506 = vmatpush3.msra.mxu0 %v10071_v33 }
 0x5c1   :  { %6549 = vmatpush3.msra.mxu1 %v10044_v38  ;;  %6507 = vmatprep.subr.mxu0 %v10039_v28 }
 0x5c2   :  { %6550 = vmatprep.subr.mxu1 %v10039_v28  ;;  %6508 = vmatpush3.msra.mxu0 %v10072_v59 }
 0x5c3   :  { %6551 = vmatpush3.msra.mxu1 %v10046_v26  ;;  %6509 = vmatprep.subr.mxu0 %v10039_v28 }
 0x5c4   :  { %6552 = vmatprep.subr.mxu1 %v10039_v28  ;;  %6510 = vmatpush3.msra.mxu0 %v10073_v10 }
 0x5c5   :  { %6553 = vmatpush3.msra.mxu1 %v10048_v7  ;;  %6511 = vmatprep.subr.mxu0 %v10039_v28 }
 0x5c6   :  { %6554 = vmatprep.subr.mxu1 %v10039_v28  ;;  %6512 = vmatpush3.msra.mxu0 %v10074_v29 }
 0x5c7   :  { %6555 = vmatpush3.msra.mxu1 %v10050_v54  ;;  %6513 = vmatprep.subr.mxu0 %v10039_v28 }
 0x5c8   :  { %6556 = vmatprep.subr.mxu1 %v10039_v28  ;;  %6514 = vmatpush3.msra.mxu0 %v10075_v14 }
 0x5c9   :  { %6557 = vmatpush3.msra.mxu1 %v10052_v17  ;;  %6515 = vmatprep.subr.mxu0 %v10039_v28 }
 0x5ca   :  { %6558 = vmatprep.subr.mxu1 %v10039_v28  ;;  %6516 = vmatpush3.msra.mxu0 %v10076_v11 }
 0x5cb   :  { %6559 = vmatpush3.msra.mxu1 %v10054_v4  ;;  %6517 = vmatprep.subr.mxu0 %v10039_v28 }
 0x5cc   :  { %6560 = vmatprep.subr.mxu1 %v10039_v28  ;;  %6518 = vmatpush3.msra.mxu0 %v10077_v34 }
 0x5cd   :  { %6561 = vmatpush3.msra.mxu1 %v10056_v13  ;;  %6519 = vmatprep.subr.mxu0 %v10039_v28 }
 0x5ce   :  { %6562 = vmatprep.subr.mxu1 %v10039_v28  ;;  %6520 = vmatpush3.msra.mxu0 %v10078_v40 }
 0x5cf   :  { %6563 = vmatpush3.msra.mxu1 %v10058_v49  ;;  %6521 = vmatprep.subr.mxu0 %v10039_v28 }
 0x5d0   :  { %6564 = vmatprep.subr.mxu1 %v10039_v28  ;;  %6522 = vmatpush3.msra.mxu0 %v10079_v37 }
 0x5d1   :  { %6565 = vmatpush3.msra.mxu1 %v10060_v42  ;;  %6523 = vmatprep.subr.mxu0 %v10039_v28  ;;  %v4776_v42 = vld [vmem:[%s9575_s7] sm:$0x1] }
 0x5d2   :  { %6566 = vmatprep.subr.mxu1 %v10039_v28  ;;  %6524 = vmatpush3.msra.mxu0 %v10080_v3 }
 0x5d3   :  { %6567 = vmatpush3.msra.mxu1 %v10062_v48  ;;  %6525 = vmatprep.subr.mxu0 %v10039_v28 }
 0x5d4   :  { %6568 = vmatprep.subr.mxu1 %v10039_v28  ;;  %6526 = vmatpush3.msra.mxu0 %v10081_v63 }
 0x5d5   :  { %6569 = vmatpush3.msra.mxu1 %v10064_v19  ;;  %6527 = vmatprep.subr.mxu0 %v10039_v28 }
 0x5d6   :  { %6570 = vmatprep.subr.mxu1 %v10039_v28  ;;  %6528 = vmatpush3.msra.mxu0 %v10082_v61 }
 0x5d7   :  { %6571 = vmatpush3.msra.mxu1 %v10066_v15  ;;  %6572 = vmatprep.mubr.msk.f32.mxu1 %vm6615_vm1, %v10039_v28  ;;  %v10088_v15 = vld [vmem:[#allocation4_spill] sm:$0xff] }
 0x5d8   :  { %6529 = vmatprep.subr.mxu0 %v10039_v28  ;;  %6573 = vmatmul.mubr.f32.vlgmr.msra.gmra.mxu1 %v9349_v5 }
 0x5d9   :  { %6530 = vmatpush3.msra.mxu0 %v10083_v2  ;;  %6537 = vmatprep.mubr.msk.f32.mxu0 %vm6615_vm1, %v10039_v28 }
 0x5da   :  { %6531 = vmatprep.subr.mxu0 %v10039_v28  ;;  %6580 = vmatprep.subr.mxu1 %v10039_v28 }
 0x5db   :  { %6532 = vmatpush3.msra.mxu0 %v10084_v43  ;;  %6582 = vmatprep.mubr.msk.f32.mxu1 %vm6615_vm1, %v10039_v28 }
 0x5dc   :  { %6533 = vmatprep.subr.mxu0 %v10039_v28  ;;  %6581 = vmatpush3.msra.mxu1 %v4922_v0  ;;  %v10089_v0 = vld [vmem:[#allocation3_spill] sm:$0xff] }
 0x5dd   :  { %6534 = vmatpush3.msra.mxu0 %v10085_v32  ;;  %6590 = vmatprep.subr.mxu1 %v10039_v28 }
 0x5de   :  { %6535 = vmatprep.subr.mxu0 %v10039_v28 }
 0x5df   :  { %6536 = vmatpush3.msra.mxu0 %v10086_v9 }
 0x5e0   :  { %6538 = vmatmul.mubr.f32.vlgmr.msra.gmra.mxu0 %v9349_v5  ;;  %6575 = vmatprep.subr.mxu0 %v10039_v28 }
 0x5e1   :  { %6577 = vmatprep.mubr.msk.f32.mxu0 %vm6615_vm1, %v10039_v28  ;;  %6576 = vmatpush3.msra.mxu0 %v4842_v20 }
 0x5e2   :  { %6585 = vmatprep.subr.mxu0 %v10039_v28 }
 0x656   :  { %v4367_v5 = vpop.f32.mrf.mxu1 }
 0x658   :  { %v6434_v8 = vpop.f32.mrf.mxu1 }
 0x65e   :  { %v4216_v41 = vpop.f32.mrf.mxu0 }
 0x65f   :  { %v4368_v58 = vadd.f32 %v4367_v5, %v4216_v41  ;;  %v10090_v5 = vsub.s32 1, %v10089_v0 }
 0x660   :  { %v6399_v21 = vpop.f32.mrf.mxu0 }
 0x676   :  { %v4560_v18 = vpop.f32.mrf.mxu1 }
 0x678   :  { %v6504_v51 = vpop.f32.mrf.mxu1 }
 0x67f   :  { %v4471_v50 = vpop.f32.mrf.mxu0 }
 0x680   :  { %v4472_v24 = vadd.f32 %v4471_v50, %v4368_v58 }
 0x681   :  { %v6469_v27 = vpop.f32.mrf.mxu0 }
 0x682   :  { %v4561_v26 = vadd.f32 %v4560_v18, %v4472_v24 }
 0x698   :  { %v4766_v25 = vpop.f32.mrf.mxu1 }
 0x69a   :  { %v6574_v38 = vpop.f32.mrf.mxu1 }
 0x6a0   :  { %v4679_v52 = vpop.f32.mrf.mxu0 }
 0x6a1   :  { %v4680_v7 = vadd.f32 %v4679_v52, %v4561_v26 }
 0x6a2   :  { %v6539_v56 = vpop.f32.mrf.mxu0 }
 0x6a3   :  { %v4767_v54 = vadd.f32 %v4766_v25, %v4680_v7 }
 0x6a5   :  { %v4770_v46 = vmul.f32 0.001953125, %v4767_v54 }
 0x6a7   :  { %v4771_v17 = vmul.f32 %v4770_v46, %v4770_v46 }
 0x6a9   :  { %v4773_v6 = vrot.slane %v4771_v17, 7 }
 0x6ab   :  { %v4775_v4 = vsub.f32 %v4770_v46, %v4773_v6 }
 0x6ad   :  { %v4777_v35 = vadd.f32 1e-05, %v4775_v4 }
 0x6af   :  { %6611 = vrsqrt.f32 %v4777_v35 }
 0x6bc   :  { %v6612_v13 = vpop.eup %6611 }
 0x6bd   :  { %v4786_v49 = vrot.slane %v6612_v13, %v10087_v55 }
 0x6bf   :  { %v4787_v47 = vcombine.high %v4786_v49, %v4786_v49 }
 0x6c1   :  { %v4794_v45 = vrot.slane %v4787_v47, %v10087_v55 }
 0x6c3   :  { %v4796_v48 = vmul.f32 %v4794_v45, %v4776_v42 }
 0x6c5   :  { %v4798_v19 = vmul.f32 %v4796_v48, %v4770_v46 }
 0x6c7   :  { %v4799_v53 = vsub.f32 %v4797_v44, %v4798_v19 }
 0x6c9   :  { %v4804_v12 = vrot.slane %v4799_v53, %v10088_v15 }
 0x6cb   :  { %v4806_v30 = vsel %vm1055_vm2, %v4796_v48, %v4804_v12 }
 0x6cc   :  { %v4809_v1 = vsel %vm1752_vm3, %v4806_v30, 0 }
 0x6cd   :  { %v4877_v16 = vand.u32 4294901760, %v4809_v1 }
 0x6cf   :  { %v4878_v33 = vsub.f32 %v4809_v1, %v4877_v16  ;;  %6583 = vmatmul.mubr.f32.vlgmr.msra.gmra.mxu1 %v4877_v16 }
 0x6d0   :  { %6591 = vmatpush3.msra.mxu1 %v4842_v20  ;;  %6592 = vmatprep.mubr.msk.f32.mxu1 %vm6615_vm1, %v10039_v28 }
 0x6d1   :  { %v4879_v59 = vand.u32 4294901760, %v4878_v33  ;;  %6600 = vmatprep.subr.mxu1 %v10039_v28 }
 0x6d3   :  { %6593 = vmatmul.mubr.f32.vlgmr.msra.gmra.mxu1 %v4879_v59  ;;  %v4880_v10 = vsub.f32 %v4878_v33, %v4879_v59 }
 0x6d4   :  { %6601 = vmatpush3.msra.mxu1 %v4842_v20  ;;  %6602 = vmatprep.mubr.msk.f32.mxu1 %vm6615_vm1, %v10039_v28 }
 0x6d5   :  { %v4881_v29 = vand.u32 4294901760, %v4880_v10 }
 0x6d7   :  { %6578 = vmatmul.mubr.f32.vlgmr.msra.gmra.mxu0 %v4881_v29  ;;  %6603 = vmatmul.mubr.f32.vlgmr.msra.gmra.mxu1 %v4877_v16 }
 0x6d8   :  { %6586 = vmatpush3.msra.mxu0 %v9519_v31  ;;  %6587 = vmatprep.mubr.msk.f32.mxu0 %vm6615_vm1, %v10039_v28 }
 0x6d9   :  { %6595 = vmatprep.subr.mxu0 %v10039_v28 }
 0x6db   :  { %6588 = vmatmul.mubr.f32.vlgmr.msra.gmra.mxu0 %v4878_v33 }
 0x6dc   :  { %6596 = vmatpush3.msra.mxu0 %v4920_v23  ;;  %6597 = vmatprep.mubr.msk.f32.mxu0 %vm6615_vm1, %v10039_v28 }
 0x6df   :  { %6598 = vmatmul.mubr.f32.vlgmr.msra.gmra.mxu0 %v4877_v16 }
 0x78f   :  { %v4959_v14 = vpop.f32.mrf.mxu1 }
 0x791   :  { %v6584_v11 = vpop.f32.mrf.mxu1 }
 0x793   :  { %v5107_v34 = vpop.f32.mrf.mxu1 }
 0x795   :  { %v6594_v40 = vpop.f32.mrf.mxu1 }
 0x797   :  { %v4883_v37 = vpop.f32.mrf.mxu0  ;;  %v5253_v3 = vpop.f32.mrf.mxu1 }
 0x798   :  { %v4960_v2 = vadd.f32 %v4959_v14, %v4883_v37 }
 0x799   :  { %v6579_v63 = vpop.f32.mrf.mxu0  ;;  %v6604_v61 = vpop.f32.mrf.mxu1 }
 0x79b   :  { %v5033_v43 = vpop.f32.mrf.mxu0 }
 0x79c   :  { %v5034_v32 = vadd.f32 %v5033_v43, %v4960_v2 }
 0x79d   :  { %v6589_v9 = vpop.f32.mrf.mxu0 }
 0x79e   :  { %v5108_v39 = vadd.f32 %v5107_v34, %v5034_v32 }
 0x79f   :  { %v5181_v20 = vpop.f32.mrf.mxu0 }
 0x7a0   :  { %v5182_v31 = vadd.f32 %v5181_v20, %v5108_v39 }
 0x7a1   :  { %v6599_v23 = vpop.f32.mrf.mxu0 }
 0x7a2   :  { %v5254_v60 = vadd.f32 %v5253_v3, %v5182_v31 }
 0x7a4   :  { %v5260_v28 = vrot.slane %v5254_v60, %v10088_v15  ;;  %v5268_v8 = vrot.slane %v5254_v60, %v10090_v5 }
 0x7a6   :  { %v5261_v41 = vmul.f32 %v5260_v28, %v9330_v36  ;;  %v5262_v21 = vmul.f32 %v5260_v28, %v9328_v62  ;;  %v5263_v18 = vmul.f32 %v5260_v28, %v9340_v57  ;;  %v5264_v51 = vmul.f32 %v5260_v28, %v9338_v22 }
 0x7a8   :  { %v5269_v50 = vadd.f32 %v5268_v8, %v5261_v41  ;;  %v5270_v27 = vadd.f32 %v5268_v8, %v5262_v21  ;;  %v5271_v25 = vadd.f32 %v5268_v8, %v5263_v18  ;;  %v5272_v58 = vadd.f32 %v5268_v8, %v5264_v51 }
 0x7aa   :  { %v5273_v38 = vmax.f32 %v5269_v50, 0.0  ;;  %v5274_v24 = vmax.f32 %v5270_v27, 0.0  ;;  %v5275_v26 = vmax.f32 %v5271_v25, 0.0  ;;  %v5276_v52 = vmax.f32 %v5272_v58, 0.0 }
 0x7ac   :  { %5277 = vst [vmem:[%s9577_s11] sm:$0xff] %v5273_v38  ;;  %5278 = vst [vmem:[%s9577_s11 + $0x8] sm:$0xff] %v5274_v24 }
 0x7ad   :  { %5279 = vst [vmem:[%s9577_s11 + $0x10] sm:$0xff] %v5275_v26  ;;  %5280 = vst [vmem:[%s9577_s11 + $0x18] sm:$0xff] %v5276_v52 }

</bundles_post_ra>
